<compile_context>
chip_gen: v6e
topology: v6e:2x2x1
jax: 0.10.0
libtpu: 0.0.40
codegen_flags: <defaults>
</compile_context>

<pallas_src>
import math
import functools

import jax
import jax.numpy as jnp
from jax import lax
from jax.experimental import pallas as pl
from jax.experimental.pallas import tpu as pltpu


def _round_up(x, m):
    return ((x + m - 1) // m) * m


def _vmem_limit(nbytes):
    # Right-sized scoped-VMEM request: actual block footprint + headroom,
    # capped at 32 MiB so it stays comfortable on v7x's 64 MiB per-core VMEM.
    return int(min(max(nbytes + (2 << 20), 4 << 20), 32 << 20))


# ----------------------------- matmul kernels ------------------------------

def _mm_kernel(a_ref, w_ref, b_ref, o_ref, *, act):
    """bf16 matmul on the MXU, f32 accumulate, bias + optional ReLU epilogue."""
    acc = jnp.dot(a_ref[...], w_ref[...], preferred_element_type=jnp.float32)
    acc = acc + b_ref[...]
    if act == "relu":
        acc = jnp.maximum(acc, 0.0)
    o_ref[...] = acc.astype(o_ref.dtype)


def _mm_res_kernel(a_ref, w_ref, b_ref, r_ref, o_ref, *, act):
    """Same as _mm_kernel but with a fused f32 residual add (f1 + up fusion)."""
    acc = jnp.dot(a_ref[...], w_ref[...], preferred_element_type=jnp.float32)
    acc = acc + b_ref[...] + r_ref[...]            # residual arrives as f32
    if act == "relu":
        acc = jnp.maximum(acc, 0.0)
    o_ref[...] = acc.astype(o_ref.dtype)


def _choose_tm(M, cap=512):
    """Largest divisor of M (multiple of 8, <= cap); prefer >=2 row tiles so
    both v7x TensorCores get work.  Returns None if M has no such divisor."""
    divs = [d for d in range(8, min(cap, M) + 1, 8) if M % d == 0]
    if not divs:
        return None
    multi = [d for d in divs if M // d >= 2]
    return max(multi) if multi else max(divs)


def pallas_matmul(a, w, bias, act="none", residual=None,
                  out_dtype=jnp.bfloat16, tm_cap=512):
    """a:[M,K] @ w:[K,N] + bias[N] (+ f32 residual[M,N]) tiled over M."""
    M, K = a.shape
    N = w.shape[1]
    a = a.astype(jnp.bfloat16)
    w = w.astype(jnp.bfloat16)
    bias = bias.reshape(1, N).astype(jnp.float32)

    tm = _choose_tm(M, tm_cap)
    pad = 0
    if tm is None:                                  # ragged M: rare fallback
        tm = min(tm_cap, _round_up(M, 8))
        pad = _round_up(M, tm) - M
        a = jnp.pad(a, ((0, pad), (0, 0)))
        if residual is not None:
            residual = jnp.pad(residual, ((0, pad), (0, 0)))
    m_tot = M + pad
    grid = (m_tot // tm,)

    in_specs = [pl.BlockSpec((tm, K), lambda i: (i, 0)),    # activation row tile
                pl.BlockSpec((K, N), lambda i: (0, 0)),     # resident weights
                pl.BlockSpec((1, N), lambda i: (0, 0))]     # resident bias
    args = [a, w, bias]
    if residual is not None:
        in_specs.append(pl.BlockSpec((tm, N), lambda i: (i, 0)))
        args.append(residual.astype(jnp.float32))
        kernel = functools.partial(_mm_res_kernel, act=act)
    else:
        kernel = functools.partial(_mm_kernel, act=act)

    ob = jnp.dtype(out_dtype).itemsize
    footprint = (2 * tm * K * 2 + K * N * 2 + N * 4 + 2 * tm * N * ob
                 + (2 * tm * N * 4 if residual is not None else 0))
    # TODO(perf): for production channel widths (K ~ 9*1024) add a K grid axis
    # ("arbitrary") with an f32 VMEM accumulator so tm=512 stays viable on v7x.
    out = pl.pallas_call(
        kernel,
        grid=grid,
        out_shape=jax.ShapeDtypeStruct((m_tot, N), out_dtype),
        in_specs=in_specs,
        out_specs=pl.BlockSpec((tm, N), lambda i: (i, 0)),
        compiler_params=pltpu.CompilerParams(
            dimension_semantics=("parallel",),
            vmem_limit_bytes=_vmem_limit(footprint)),
    )(*args)
    return out[:M] if pad else out


# ----------------------------- direct 3x3 stride-1 conv --------------------

def _conv3x3s1_kernel(x0_ref, x1_ref, x2_ref, w_ref, b_ref, o_ref, *, cin, wo, act):
    """One output row per grid step.  The three padded input rows arrive as
    separate block-size-1 operands (the halo), the nine shifted column windows
    are gathered in-kernel and accumulated through nine MXU dots in f32."""
    rows = (x0_ref[...], x1_ref[...], x2_ref[...])          # (1,1,Wp,Cin) bf16
    acc = None
    for di in range(3):
        for dj in range(3):
            patch = rows[di][0, 0, dj:dj + wo, :]           # (Wo, Cin)
            k = (di * 3 + dj) * cin
            wij = w_ref[k:k + cin, :]                       # (Cin, Cout)
            d = jnp.dot(patch, wij, preferred_element_type=jnp.float32)
            acc = d if acc is None else acc + d
    acc = acc + b_ref[...]
    if act == "relu":
        acc = jnp.maximum(acc, 0.0)
    o_ref[...] = acc.reshape(o_ref.shape).astype(o_ref.dtype)


def _shift_spec(d, wp, cin):
    return pl.BlockSpec((1, 1, wp, cin), lambda bi, r: (bi, r + d, 0, 0))


def conv3x3_s1(x, w, b, act="none", out_dtype=jnp.bfloat16):
    """Direct (no im2col) NHWC 3x3 stride-1 pad-1 conv.
    w: [9*Cin, Cout] with row order (di, dj, cin)."""
    B, H, W, Cin = x.shape
    Cout = w.shape[1]
    xp = jnp.pad(x.astype(jnp.bfloat16), ((0, 0), (1, 1), (1, 1), (0, 0)))
    Wp = W + 2
    footprint = (2 * 3 * Wp * Cin * 2 + 9 * Cin * Cout * 2 + Cout * 4
                 + 2 * W * Cout * jnp.dtype(out_dtype).itemsize)
    return pl.pallas_call(
        functools.partial(_conv3x3s1_kernel, cin=Cin, wo=W, act=act),
        grid=(B, H),
        out_shape=jax.ShapeDtypeStruct((B, H, W, Cout), out_dtype),
        in_specs=[_shift_spec(0, Wp, Cin), _shift_spec(1, Wp, Cin), _shift_spec(2, Wp, Cin),
                  pl.BlockSpec((9 * Cin, Cout), lambda bi, r: (0, 0)),
                  pl.BlockSpec((1, Cout), lambda bi, r: (0, 0))],
        out_specs=pl.BlockSpec((1, 1, W, Cout), lambda bi, r: (bi, r, 0, 0)),
        compiler_params=pltpu.CompilerParams(
            dimension_semantics=("parallel", "parallel"),
            vmem_limit_bytes=_vmem_limit(footprint)),
    )(xp, xp, xp, w.astype(jnp.bfloat16), b.reshape(1, Cout).astype(jnp.float32))


# ----------------------------- fused depth head ----------------------------

def _head_kernel(fpx_ref, x0_ref, x1_ref, x2_ref, w_ref, b_ref, w2_ref, b2_ref,
                 o_ref, *, cin, wo):
    """Direct h2 3x3 conv + ReLU, 1x1 h3 + ReLU, inverse_depth = canonical*f_px,
    clamp, depth = 1/inv.  Result stored as a lane-dense (1, W) row."""
    f_px = fpx_ref[pl.program_id(0)]                        # per-batch scalar (SMEM)
    rows = (x0_ref[...], x1_ref[...], x2_ref[...])
    acc = None
    for di in range(3):
        for dj in range(3):
            patch = rows[di][0, 0, dj:dj + wo, :]
            k = (di * 3 + dj) * cin
            wij = w_ref[k:k + cin, :]
            d = jnp.dot(patch, wij, preferred_element_type=jnp.float32)
            acc = d if acc is None else acc + d
    h = jnp.maximum(acc + b_ref[...], 0.0)                  # h2 + ReLU, (Wo, N) f32
    # h3 as a transposed-RHS contraction so the result is laid out along lanes
    # (unmasked vst) instead of Wo single-lane stores.
    canon = lax.dot_general(w2_ref[...], h, (((1,), (1,)), ((), ())),
                            preferred_element_type=jnp.float32)     # (1, Wo)
    canon = jnp.maximum(canon + b2_ref[...], 0.0)           # h3 + ReLU
    inv = jnp.clip(canon * f_px, 1e-4, 1e4)
    o_ref[...] = (1.0 / inv).reshape(o_ref.shape)           # exact reciprocal


def fused_head_depth(h_nhwc, w, b, w2, b2, f_px):
    B, H, W, Cin = h_nhwc.shape
    N = w.shape[1]
    xp = jnp.pad(h_nhwc.astype(jnp.bfloat16), ((0, 0), (1, 1), (1, 1), (0, 0)))
    Wp = W + 2
    footprint = 2 * 3 * Wp * Cin * 2 + 9 * Cin * N * 2 + 3 * N * 4 + 2 * W * 4
    out = pl.pallas_call(
        functools.partial(_head_kernel, cin=Cin, wo=W),
        grid=(B, H),
        out_shape=jax.ShapeDtypeStruct((B, H, 1, W), jnp.float32),
        in_specs=[
            pl.BlockSpec(memory_space=pltpu.MemorySpace.SMEM),        # f_px [B]
            _shift_spec(0, Wp, Cin), _shift_spec(1, Wp, Cin), _shift_spec(2, Wp, Cin),
            pl.BlockSpec((9 * Cin, N), lambda bi, r: (0, 0)),         # h2 weight
            pl.BlockSpec((1, N), lambda bi, r: (0, 0)),               # h2 bias
            pl.BlockSpec((1, N), lambda bi, r: (0, 0)),               # h3 weight (row)
            pl.BlockSpec((1, 1), lambda bi, r: (0, 0)),               # h3 bias
        ],
        out_specs=pl.BlockSpec((1, 1, 1, W), lambda bi, r: (bi, r, 0, 0)),
        compiler_params=pltpu.CompilerParams(
            dimension_semantics=("parallel", "parallel"),
            vmem_limit_bytes=_vmem_limit(footprint)),
    )(f_px.astype(jnp.float32), xp, xp, xp,
      w.astype(jnp.bfloat16), b.reshape(1, N).astype(jnp.float32),
      w2.reshape(1, N).astype(jnp.float32), b2.reshape(1, 1).astype(jnp.float32))
    return out.reshape(B, H, W)


# ----------------------------- stride-2 convs (im2col fallback) ------------

def _im2col(x, k, stride, padding, pad_value=0.0):
    B, H, W, C = x.shape
    xp = jnp.pad(x, ((0, 0), (padding, padding), (padding, padding), (0, 0)),
                 constant_values=pad_value)
    Ho = (H + 2 * padding - k) // stride + 1
    Wo = (W + 2 * padding - k) // stride + 1
    cols = [xp[:, di:di + stride * Ho:stride, dj:dj + stride * Wo:stride, :]
            for di in range(k) for dj in range(k)]
    cols = jnp.concatenate(cols, axis=-1)                   # [B,Ho,Wo,9*C]
    return cols.reshape(B * Ho * Wo, k * k * C), (B, Ho, Wo)


def conv2d_s2(x, w, b, act="none", out_dtype=jnp.bfloat16, pad_value=0.0):
    """3x3 stride-2 pad-1 conv.
    TODO(synk): in-kernel strided (stride-2) window gather not implemented;
    these layers still use a JAX-level im2col (the stride-1 3x3 layers that
    dominate HBM traffic use the direct conv3x3_s1 kernel instead)."""
    cols, (Bo, Ho, Wo) = _im2col(x, 3, 2, 1, pad_value)
    y = pallas_matmul(cols, w, b, act=act, out_dtype=out_dtype)
    return y.reshape(Bo, Ho, Wo, -1)


def conv1x1(x, w, b, act="none", residual=None, out_dtype=jnp.bfloat16):
    B, H, W, C = x.shape
    res2d = None if residual is None else residual.reshape(B * H * W, -1)
    y = pallas_matmul(x.reshape(B * H * W, C), w, b, act=act,
                      residual=res2d, out_dtype=out_dtype)
    return y.reshape(B, H, W, -1)


def conv_transpose2x(x, w, b, act="none", out_dtype=jnp.bfloat16):
    """ConvTranspose2d(kernel=2, stride=2) as per-pixel matmul + interleave.
    w: [Cin, 4*Cout] with column order (di, dj, cout); b: [Cout]."""
    B, H, W, Cin = x.shape
    Cout = w.shape[1] // 4
    y = pallas_matmul(x.reshape(B * H * W, Cin), w, jnp.tile(b, 4),
                      act=act, out_dtype=out_dtype)
    # TODO(synk): fold this 2x2 interleave into the consumer kernel's window
    # gather (saves one full-HBM round trip over the largest activations).
    y = y.reshape(B, H, W, 2, 2, Cout)
    y = jnp.transpose(y, (0, 1, 3, 2, 4, 5))                # B, H, di, W, dj, C
    return y.reshape(B, 2 * H, 2 * W, Cout)


# ----------------------------- parameters ----------------------------------

def init_params(key, c_enc=128, c_dec=128, ch=128):
    # Channel widths are multiples of 128 (lane-dense stores, full v5e MXU
    # tiles).  Note: once compute-bound, N>=256 would better fill v6e/v7x MXUs.
    ks = jax.random.split(key, 12)
    w = lambda k, shape, s=0.05: jax.random.normal(k, shape, jnp.float32) * s
    p = {
        # encoder (two strided conv stages)
        "enc1_w": w(ks[0], (3 * 3 * 3, c_enc)),         "enc1_b": jnp.zeros((c_enc,), jnp.float32),
        "enc2_w": w(ks[1], (3 * 3 * c_enc, 2 * c_enc)), "enc2_b": jnp.zeros((2 * c_enc,), jnp.float32),
        # multires decoder
        "proj1_w": w(ks[2], (c_enc, c_dec)),            "proj1_b": jnp.zeros((c_dec,), jnp.float32),
        "proj2_w": w(ks[3], (2 * c_enc, c_dec)),        "proj2_b": jnp.zeros((c_dec,), jnp.float32),
        "up_w":    w(ks[4], (c_dec, 4 * c_dec)),        "up_b":    jnp.zeros((c_dec,), jnp.float32),
        "fuse_w":  w(ks[5], (3 * 3 * c_dec, c_dec)),    "fuse_b":  jnp.zeros((c_dec,), jnp.float32),
        # depth head
        "h1_w":  w(ks[6], (3 * 3 * c_dec, ch)),         "h1_b":  jnp.zeros((ch,), jnp.float32),
        "hup_w": w(ks[7], (ch, 4 * ch)),                "hup_b": jnp.zeros((ch,), jnp.float32),
        "h2_w":  w(ks[8], (3 * 3 * ch, c_dec)),         "h2_b":  jnp.zeros((c_dec,), jnp.float32),
        "h3_w":  w(ks[9], (c_dec, 1)),                  "h3_b":  jnp.full((1,), 0.1, jnp.float32),
        # FOV head (FOVNetwork.head; no FOVNetwork.encoder attribute).
        # Resolution-independent: conv -> global mean pool -> linear.
        "f1_w":   w(ks[10], (3 * 3 * c_dec, ch)),       "f1_b":   jnp.zeros((ch,), jnp.float32),
        "flin_w": w(ks[11], (ch, 1)),                   "flin_b": jnp.full((1,), 50.0, jnp.float32),
    }
    return p


# ----------------------------- full forward --------------------------------

def depth_pro_scaled(params, x):
    # DepthProScaled.forward
    if x.ndim == 3 and x.shape[0] == 3:                      # x.unsqueeze(0)
        x = x[None]
    B, C, H, W = x.shape
    x_nhwc = jnp.transpose(x, (0, 2, 3, 1)).astype(jnp.bfloat16)

    # transform: (x - 0.5) / 0.5 folded into enc1 (w' = 2w, b' = b - sum(w));
    # padding the raw image with 0.5 keeps the zero-after-normalize border.
    enc1_w = params["enc1_w"] * 2.0
    enc1_b = params["enc1_b"] - jnp.sum(params["enc1_w"], axis=0)

    # encoder (DepthProEncoder, synthetic two-scale conv encoder)
    enc1 = conv2d_s2(x_nhwc, enc1_w, enc1_b, "relu", pad_value=0.5)       # [B,H/2,W/2,128]
    enc2 = conv2d_s2(enc1, params["enc2_w"], params["enc2_b"], "relu")    # [B,H/4,W/4,256]

    # decoder (MultiresConvDecoder) -> (features, features_0)
    features_0 = conv1x1(enc2, params["proj2_w"], params["proj2_b"])      # lowest-res features
    up = conv_transpose2x(features_0, params["up_w"], params["up_b"],
                          out_dtype=jnp.float32)                          # f32 residual
    s = conv1x1(enc1, params["proj1_w"], params["proj1_b"], residual=up)  # `+ up` fused (f32)
    features = conv3x3_s1(s, params["fuse_w"], params["fuse_b"], "relu")

    # DepthDecoder.forward([image, features, features_0])
    # fov has no `encoder` attribute -> x = features_0.detach()
    # TODO(synk): fov.encoder branch (bilinear resize + ViT patch encoder) not
    # built; the no-FOV-encoder configuration uses the else-branch here.
    fx = conv2d_s2(features_0, params["f1_w"], params["f1_b"], "relu")    # [B,H/8,W/8,128]
    fx = jnp.mean(fx.astype(jnp.float32), axis=(1, 2))                    # global pool [B,128]
    fov_deg = fx @ params["flin_w"] + params["flin_b"]                    # tiny matvec: plain XLA
    f_px = (0.5 * jnp.tan(math.pi * fov_deg / 360.0)).reshape(B)          # per-batch scalar

    # self.head(features) -> canonical inverse depth; h3 + depth math fused in-kernel
    h = conv3x3_s1(features, params["h1_w"], params["h1_b"])
    h = conv_transpose2x(h, params["hup_w"], params["hup_b"])             # back to H x W
    depth = fused_head_depth(h, params["h2_w"], params["h2_b"],
                             params["h3_w"], params["h3_b"], f_px)        # [B,H,W] f32
    return depth.reshape(B, 1, H, W)                                      # NCHW output


# ----------------------------- main -----------------------------------------

if __name__ == "__main__":
    key = jax.random.PRNGKey(0)
    k_x, k_p = jax.random.split(key)
    x = jax.random.uniform(k_x, (2, 3, 16, 16), jnp.float32)   # NCHW, values in [0,1]
    params = init_params(k_p)

    fwd = jax.jit(depth_pro_scaled)
    depth = jax.block_until_ready(fwd(params, x))

    assert depth.shape == (2, 1, 16, 16)
    assert bool(jnp.all(jnp.isfinite(depth)))
    print("KERNEL_OK")
</pallas_src>

<mosaic_0001>
module attributes {stable_mosaic.version = 11 : i64} {
  func.func @_mm_kernel(%arg0: i32, %arg1: memref<64x27xbf16, #tpu.memory_space<vmem>>, %arg2: memref<27x128xbf16, #tpu.memory_space<vmem>>, %arg3: memref<1x128xf32, #tpu.memory_space<vmem>>, %arg4: memref<64x128xbf16, #tpu.memory_space<vmem>>) attributes {dimension_semantics = [#tpu.dimension_semantics<parallel>], iteration_bounds = array<i64: 2>, scalar_prefetch = 0 : i64, scratch_operands = 0 : i64, tpu.core_type = #tpu.core_type<tc>, window_params = [{transform_indices = @transform_0, window_bounds = array<i64: 64, 27>}, {pipeline_mode = #tpu.pipeline_mode<synchronous>, transform_indices = @transform_1, window_bounds = array<i64: 27, 128>}, {pipeline_mode = #tpu.pipeline_mode<synchronous>, transform_indices = @transform_2, window_bounds = array<i64: 1, 128>}, {transform_indices = @transform_3, window_bounds = array<i64: 64, 128>}]} {
    %c0 = arith.constant 0 : index
    %c0_0 = arith.constant 0 : index
    %0 = vector.load %arg1[%c0, %c0_0] : memref<64x27xbf16, #tpu.memory_space<vmem>>, vector<64x27xbf16>
    %c0_1 = arith.constant 0 : index
    %c0_2 = arith.constant 0 : index
    %1 = vector.load %arg2[%c0_1, %c0_2] : memref<27x128xbf16, #tpu.memory_space<vmem>>, vector<27x128xbf16>
    %cst = arith.constant dense<0.000000e+00> : vector<64x128xf32>
    %2 = tpu.matmul %0, %1, %cst {dimension_numbers = #tpu.dot_dimension_numbers<[1], [0], [0], [1], [0, 0, 1, 1], [], []>} : vector<64x27xbf16>, vector<27x128xbf16>, vector<64x128xf32> -> vector<64x128xf32>
    %c0_3 = arith.constant 0 : index
    %c0_4 = arith.constant 0 : index
    %3 = vector.load %arg3[%c0_3, %c0_4] : memref<1x128xf32, #tpu.memory_space<vmem>>, vector<1x128xf32>
    %4 = vector.broadcast %3 : vector<1x128xf32> to vector<64x128xf32>
    %5 = arith.addf %2, %4 : vector<64x128xf32>
    %cst_5 = arith.constant 0.000000e+00 : f32
    %6 = vector.broadcast %cst_5 : f32 to vector<64x128xf32>
    %7 = arith.maximumf %5, %6 : vector<64x128xf32>
    %8 = arith.truncf %7 : vector<64x128xf32> to vector<64x128xbf16>
    %c0_6 = arith.constant 0 : index
    %c0_7 = arith.constant 0 : index
    %9 = vector.load %arg4[%c0_6, %c0_7] : memref<64x128xbf16, #tpu.memory_space<vmem>>, vector<64x128xbf16>
    tpu.vector_store %arg4[%c0_6, %c0_7], %8 {strides = array<i32>} : memref<64x128xbf16, #tpu.memory_space<vmem>>, vector<64x128xbf16>,
    return
  }
  func.func @transform_0(%arg0: i32) -> (i32, i32) {
    %c0_i32 = arith.constant 0 : i32
    %c0_i32_0 = arith.constant 0 : i32
    return %arg0, %c0_i32 : i32, i32
  }
  func.func @transform_1(%arg0: i32) -> (i32, i32) {
    %c0_i32 = arith.constant 0 : i32
    %c0_i32_0 = arith.constant 0 : i32
    %c0_i32_1 = arith.constant 0 : i32
    return %c0_i32, %c0_i32_0 : i32, i32
  }
  func.func @transform_2(%arg0: i32) -> (i32, i32) {
    %c0_i32 = arith.constant 0 : i32
    %c0_i32_0 = arith.constant 0 : i32
    %c0_i32_1 = arith.constant 0 : i32
    return %c0_i32, %c0_i32_0 : i32, i32
  }
  func.func @transform_3(%arg0: i32) -> (i32, i32) {
    %c0_i32 = arith.constant 0 : i32
    %c0_i32_0 = arith.constant 0 : i32
    return %arg0, %c0_i32 : i32, i32
  }
}

module attributes {stable_mosaic.version = 11 : i64} {
  func.func @_mm_kernel(%arg0: i32, %arg1: memref<16x1152xbf16, #tpu.memory_space<vmem>>, %arg2: memref<1152x256xbf16, #tpu.memory_space<vmem>>, %arg3: memref<1x256xf32, #tpu.memory_space<vmem>>, %arg4: memref<16x256xbf16, #tpu.memory_space<vmem>>) attributes {dimension_semantics = [#tpu.dimension_semantics<parallel>], iteration_bounds = array<i64: 2>, scalar_prefetch = 0 : i64, scratch_operands = 0 : i64, tpu.core_type = #tpu.core_type<tc>, window_params = [{transform_indices = @transform_0, window_bounds = array<i64: 16, 1152>}, {pipeline_mode = #tpu.pipeline_mode<synchronous>, transform_indices = @transform_1, window_bounds = array<i64: 1152, 256>}, {pipeline_mode = #tpu.pipeline_mode<synchronous>, transform_indices = @transform_2, window_bounds = array<i64: 1, 256>}, {transform_indices = @transform_3, window_bounds = array<i64: 16, 256>}]} {
    %c0 = arith.constant 0 : index
    %c0_0 = arith.constant 0 : index
    %0 = vector.load %arg1[%c0, %c0_0] : memref<16x1152xbf16, #tpu.memory_space<vmem>>, vector<16x1152xbf16>
    %c0_1 = arith.constant 0 : index
    %c0_2 = arith.constant 0 : index
    %1 = vector.load %arg2[%c0_1, %c0_2] : memref<1152x256xbf16, #tpu.memory_space<vmem>>, vector<1152x256xbf16>
    %cst = arith.constant dense<0.000000e+00> : vector<16x256xf32>
    %2 = tpu.matmul %0, %1, %cst {dimension_numbers = #tpu.dot_dimension_numbers<[1], [0], [0], [1], [0, 0, 1, 1], [], []>} : vector<16x1152xbf16>, vector<1152x256xbf16>, vector<16x256xf32> -> vector<16x256xf32>
    %c0_3 = arith.constant 0 : index
    %c0_4 = arith.constant 0 : index
    %3 = vector.load %arg3[%c0_3, %c0_4] : memref<1x256xf32, #tpu.memory_space<vmem>>, vector<1x256xf32>
    %4 = vector.broadcast %3 : vector<1x256xf32> to vector<16x256xf32>
    %5 = arith.addf %2, %4 : vector<16x256xf32>
    %cst_5 = arith.constant 0.000000e+00 : f32
    %6 = vector.broadcast %cst_5 : f32 to vector<16x256xf32>
    %7 = arith.maximumf %5, %6 : vector<16x256xf32>
    %8 = arith.truncf %7 : vector<16x256xf32> to vector<16x256xbf16>
    %c0_6 = arith.constant 0 : index
    %c0_7 = arith.constant 0 : index
    %9 = vector.load %arg4[%c0_6, %c0_7] : memref<16x256xbf16, #tpu.memory_space<vmem>>, vector<16x256xbf16>
    tpu.vector_store %arg4[%c0_6, %c0_7], %8 {strides = array<i32>} : memref<16x256xbf16, #tpu.memory_space<vmem>>, vector<16x256xbf16>,
    return
  }
  func.func @transform_0(%arg0: i32) -> (i32, i32) {
    %c0_i32 = arith.constant 0 : i32
    %c0_i32_0 = arith.constant 0 : i32
    return %arg0, %c0_i32 : i32, i32
  }
  func.func @transform_1(%arg0: i32) -> (i32, i32) {
    %c0_i32 = arith.constant 0 : i32
    %c0_i32_0 = arith.constant 0 : i32
    %c0_i32_1 = arith.constant 0 : i32
    return %c0_i32, %c0_i32_0 : i32, i32
  }
  func.func @transform_2(%arg0: i32) -> (i32, i32) {
    %c0_i32 = arith.constant 0 : i32
    %c0_i32_0 = arith.constant 0 : i32
    %c0_i32_1 = arith.constant 0 : i32
    return %c0_i32, %c0_i32_0 : i32, i32
  }
  func.func @transform_3(%arg0: i32) -> (i32, i32) {
    %c0_i32 = arith.constant 0 : i32
    %c0_i32_0 = arith.constant 0 : i32
    return %arg0, %c0_i32 : i32, i32
  }
}

module attributes {stable_mosaic.version = 11 : i64} {
  func.func @_mm_kernel(%arg0: i32, %arg1: memref<16x256xbf16, #tpu.memory_space<vmem>>, %arg2: memref<256x128xbf16, #tpu.memory_space<vmem>>, %arg3: memref<1x128xf32, #tpu.memory_space<vmem>>, %arg4: memref<16x128xbf16, #tpu.memory_space<vmem>>) attributes {dimension_semantics = [#tpu.dimension_semantics<parallel>], iteration_bounds = array<i64: 2>, scalar_prefetch = 0 : i64, scratch_operands = 0 : i64, tpu.core_type = #tpu.core_type<tc>, window_params = [{transform_indices = @transform_0, window_bounds = array<i64: 16, 256>}, {pipeline_mode = #tpu.pipeline_mode<synchronous>, transform_indices = @transform_1, window_bounds = array<i64: 256, 128>}, {pipeline_mode = #tpu.pipeline_mode<synchronous>, transform_indices = @transform_2, window_bounds = array<i64: 1, 128>}, {transform_indices = @transform_3, window_bounds = array<i64: 16, 128>}]} {
    %c0 = arith.constant 0 : index
    %c0_0 = arith.constant 0 : index
    %0 = vector.load %arg1[%c0, %c0_0] : memref<16x256xbf16, #tpu.memory_space<vmem>>, vector<16x256xbf16>
    %c0_1 = arith.constant 0 : index
    %c0_2 = arith.constant 0 : index
    %1 = vector.load %arg2[%c0_1, %c0_2] : memref<256x128xbf16, #tpu.memory_space<vmem>>, vector<256x128xbf16>
    %cst = arith.constant dense<0.000000e+00> : vector<16x128xf32>
    %2 = tpu.matmul %0, %1, %cst {dimension_numbers = #tpu.dot_dimension_numbers<[1], [0], [0], [1], [0, 0, 1, 1], [], []>} : vector<16x256xbf16>, vector<256x128xbf16>, vector<16x128xf32> -> vector<16x128xf32>
    %c0_3 = arith.constant 0 : index
    %c0_4 = arith.constant 0 : index
    %3 = vector.load %arg3[%c0_3, %c0_4] : memref<1x128xf32, #tpu.memory_space<vmem>>, vector<1x128xf32>
    %4 = vector.broadcast %3 : vector<1x128xf32> to vector<16x128xf32>
    %5 = arith.addf %2, %4 : vector<16x128xf32>
    %6 = arith.truncf %5 : vector<16x128xf32> to vector<16x128xbf16>
    %c0_5 = arith.constant 0 : index
    %c0_6 = arith.constant 0 : index
    %7 = vector.load %arg4[%c0_5, %c0_6] : memref<16x128xbf16, #tpu.memory_space<vmem>>, vector<16x128xbf16>
    tpu.vector_store %arg4[%c0_5, %c0_6], %6 {strides = array<i32>} : memref<16x128xbf16, #tpu.memory_space<vmem>>, vector<16x128xbf16>,
    return
  }
  func.func @transform_0(%arg0: i32) -> (i32, i32) {
    %c0_i32 = arith.constant 0 : i32
    %c0_i32_0 = arith.constant 0 : i32
    return %arg0, %c0_i32 : i32, i32
  }
  func.func @transform_1(%arg0: i32) -> (i32, i32) {
    %c0_i32 = arith.constant 0 : i32
    %c0_i32_0 = arith.constant 0 : i32
    %c0_i32_1 = arith.constant 0 : i32
    return %c0_i32, %c0_i32_0 : i32, i32
  }
  func.func @transform_2(%arg0: i32) -> (i32, i32) {
    %c0_i32 = arith.constant 0 : i32
    %c0_i32_0 = arith.constant 0 : i32
    %c0_i32_1 = arith.constant 0 : i32
    return %c0_i32, %c0_i32_0 : i32, i32
  }
  func.func @transform_3(%arg0: i32) -> (i32, i32) {
    %c0_i32 = arith.constant 0 : i32
    %c0_i32_0 = arith.constant 0 : i32
    return %arg0, %c0_i32 : i32, i32
  }
}

module attributes {stable_mosaic.version = 11 : i64} {
  func.func @_mm_kernel(%arg0: i32, %arg1: memref<16x128xbf16, #tpu.memory_space<vmem>>, %arg2: memref<128x512xbf16, #tpu.memory_space<vmem>>, %arg3: memref<1x512xf32, #tpu.memory_space<vmem>>, %arg4: memref<16x512xf32, #tpu.memory_space<vmem>>) attributes {dimension_semantics = [#tpu.dimension_semantics<parallel>], iteration_bounds = array<i64: 2>, scalar_prefetch = 0 : i64, scratch_operands = 0 : i64, tpu.core_type = #tpu.core_type<tc>, window_params = [{transform_indices = @transform_0, window_bounds = array<i64: 16, 128>}, {pipeline_mode = #tpu.pipeline_mode<synchronous>, transform_indices = @transform_1, window_bounds = array<i64: 128, 512>}, {pipeline_mode = #tpu.pipeline_mode<synchronous>, transform_indices = @transform_2, window_bounds = array<i64: 1, 512>}, {transform_indices = @transform_3, window_bounds = array<i64: 16, 512>}]} {
    %c0 = arith.constant 0 : index
    %c0_0 = arith.constant 0 : index
    %0 = vector.load %arg1[%c0, %c0_0] : memref<16x128xbf16, #tpu.memory_space<vmem>>, vector<16x128xbf16>
    %c0_1 = arith.constant 0 : index
    %c0_2 = arith.constant 0 : index
    %1 = vector.load %arg2[%c0_1, %c0_2] : memref<128x512xbf16, #tpu.memory_space<vmem>>, vector<128x512xbf16>
    %cst = arith.constant dense<0.000000e+00> : vector<16x512xf32>
    %2 = tpu.matmul %0, %1, %cst {dimension_numbers = #tpu.dot_dimension_numbers<[1], [0], [0], [1], [0, 0, 1, 1], [], []>} : vector<16x128xbf16>, vector<128x512xbf16>, vector<16x512xf32> -> vector<16x512xf32>
    %c0_3 = arith.constant 0 : index
    %c0_4 = arith.constant 0 : index
    %3 = vector.load %arg3[%c0_3, %c0_4] : memref<1x512xf32, #tpu.memory_space<vmem>>, vector<1x512xf32>
    %4 = vector.broadcast %3 : vector<1x512xf32> to vector<16x512xf32>
    %5 = arith.addf %2, %4 : vector<16x512xf32>
    %c0_5 = arith.constant 0 : index
    %c0_6 = arith.constant 0 : index
    %6 = vector.load %arg4[%c0_5, %c0_6] : memref<16x512xf32, #tpu.memory_space<vmem>>, vector<16x512xf32>
    tpu.vector_store %arg4[%c0_5, %c0_6], %5 {strides = array<i32>} : memref<16x512xf32, #tpu.memory_space<vmem>>, vector<16x512xf32>,
    return
  }
  func.func @transform_0(%arg0: i32) -> (i32, i32) {
    %c0_i32 = arith.constant 0 : i32
    %c0_i32_0 = arith.constant 0 : i32
    return %arg0, %c0_i32 : i32, i32
  }
  func.func @transform_1(%arg0: i32) -> (i32, i32) {
    %c0_i32 = arith.constant 0 : i32
    %c0_i32_0 = arith.constant 0 : i32
    %c0_i32_1 = arith.constant 0 : i32
    return %c0_i32, %c0_i32_0 : i32, i32
  }
  func.func @transform_2(%arg0: i32) -> (i32, i32) {
    %c0_i32 = arith.constant 0 : i32
    %c0_i32_0 = arith.constant 0 : i32
    %c0_i32_1 = arith.constant 0 : i32
    return %c0_i32, %c0_i32_0 : i32, i32
  }
  func.func @transform_3(%arg0: i32) -> (i32, i32) {
    %c0_i32 = arith.constant 0 : i32
    %c0_i32_0 = arith.constant 0 : i32
    return %arg0, %c0_i32 : i32, i32
  }
}

module attributes {stable_mosaic.version = 11 : i64} {
  func.func @_mm_res_kernel(%arg0: i32, %arg1: memref<64x128xbf16, #tpu.memory_space<vmem>>, %arg2: memref<128x128xbf16, #tpu.memory_space<vmem>>, %arg3: memref<1x128xf32, #tpu.memory_space<vmem>>, %arg4: memref<64x128xf32, #tpu.memory_space<vmem>>, %arg5: memref<64x128xbf16, #tpu.memory_space<vmem>>) attributes {dimension_semantics = [#tpu.dimension_semantics<parallel>], iteration_bounds = array<i64: 2>, scalar_prefetch = 0 : i64, scratch_operands = 0 : i64, tpu.core_type = #tpu.core_type<tc>, window_params = [{transform_indices = @transform_0, window_bounds = array<i64: 64, 128>}, {pipeline_mode = #tpu.pipeline_mode<synchronous>, transform_indices = @transform_1, window_bounds = array<i64: 128, 128>}, {pipeline_mode = #tpu.pipeline_mode<synchronous>, transform_indices = @transform_2, window_bounds = array<i64: 1, 128>}, {transform_indices = @transform_3, window_bounds = array<i64: 64, 128>}, {transform_indices = @transform_4, window_bounds = array<i64: 64, 128>}]} {
    %c0 = arith.constant 0 : index
    %c0_0 = arith.constant 0 : index
    %0 = vector.load %arg1[%c0, %c0_0] : memref<64x128xbf16, #tpu.memory_space<vmem>>, vector<64x128xbf16>
    %c0_1 = arith.constant 0 : index
    %c0_2 = arith.constant 0 : index
    %1 = vector.load %arg2[%c0_1, %c0_2] : memref<128x128xbf16, #tpu.memory_space<vmem>>, vector<128x128xbf16>
    %cst = arith.constant dense<0.000000e+00> : vector<64x128xf32>
    %2 = tpu.matmul %0, %1, %cst {dimension_numbers = #tpu.dot_dimension_numbers<[1], [0], [0], [1], [0, 0, 1, 1], [], []>} : vector<64x128xbf16>, vector<128x128xbf16>, vector<64x128xf32> -> vector<64x128xf32>
    %c0_3 = arith.constant 0 : index
    %c0_4 = arith.constant 0 : index
    %3 = vector.load %arg3[%c0_3, %c0_4] : memref<1x128xf32, #tpu.memory_space<vmem>>, vector<1x128xf32>
    %4 = vector.broadcast %3 : vector<1x128xf32> to vector<64x128xf32>
    %5 = arith.addf %2, %4 : vector<64x128xf32>
    %c0_5 = arith.constant 0 : index
    %c0_6 = arith.constant 0 : index
    %6 = vector.load %arg4[%c0_5, %c0_6] : memref<64x128xf32, #tpu.memory_space<vmem>>, vector<64x128xf32>
    %7 = arith.addf %5, %6 : vector<64x128xf32>
    %8 = arith.truncf %7 : vector<64x128xf32> to vector<64x128xbf16>
    %c0_7 = arith.constant 0 : index
    %c0_8 = arith.constant 0 : index
    %9 = vector.load %arg5[%c0_7, %c0_8] : memref<64x128xbf16, #tpu.memory_space<vmem>>, vector<64x128xbf16>
    tpu.vector_store %arg5[%c0_7, %c0_8], %8 {strides = array<i32>} : memref<64x128xbf16, #tpu.memory_space<vmem>>, vector<64x128xbf16>,
    return
  }
  func.func @transform_0(%arg0: i32) -> (i32, i32) {
    %c0_i32 = arith.constant 0 : i32
    %c0_i32_0 = arith.constant 0 : i32
    return %arg0, %c0_i32 : i32, i32
  }
  func.func @transform_1(%arg0: i32) -> (i32, i32) {
    %c0_i32 = arith.constant 0 : i32
    %c0_i32_0 = arith.constant 0 : i32
    %c0_i32_1 = arith.constant 0 : i32
    return %c0_i32, %c0_i32_0 : i32, i32
  }
  func.func @transform_2(%arg0: i32) -> (i32, i32) {
    %c0_i32 = arith.constant 0 : i32
    %c0_i32_0 = arith.constant 0 : i32
    %c0_i32_1 = arith.constant 0 : i32
    return %c0_i32, %c0_i32_0 : i32, i32
  }
  func.func @transform_3(%arg0: i32) -> (i32, i32) {
    %c0_i32 = arith.constant 0 : i32
    %c0_i32_0 = arith.constant 0 : i32
    return %arg0, %c0_i32 : i32, i32
  }
  func.func @transform_4(%arg0: i32) -> (i32, i32) {
    %c0_i32 = arith.constant 0 : i32
    %c0_i32_0 = arith.constant 0 : i32
    return %arg0, %c0_i32 : i32, i32
  }
}

module attributes {stable_mosaic.version = 11 : i64} {
  func.func @_mm_kernel(%arg0: i32, %arg1: memref<64x128xbf16, #tpu.memory_space<vmem>>, %arg2: memref<128x512xbf16, #tpu.memory_space<vmem>>, %arg3: memref<1x512xf32, #tpu.memory_space<vmem>>, %arg4: memref<64x512xbf16, #tpu.memory_space<vmem>>) attributes {dimension_semantics = [#tpu.dimension_semantics<parallel>], iteration_bounds = array<i64: 2>, scalar_prefetch = 0 : i64, scratch_operands = 0 : i64, tpu.core_type = #tpu.core_type<tc>, window_params = [{transform_indices = @transform_0, window_bounds = array<i64: 64, 128>}, {pipeline_mode = #tpu.pipeline_mode<synchronous>, transform_indices = @transform_1, window_bounds = array<i64: 128, 512>}, {pipeline_mode = #tpu.pipeline_mode<synchronous>, transform_indices = @transform_2, window_bounds = array<i64: 1, 512>}, {transform_indices = @transform_3, window_bounds = array<i64: 64, 512>}]} {
    %c0 = arith.constant 0 : index
    %c0_0 = arith.constant 0 : index
    %0 = vector.load %arg1[%c0, %c0_0] : memref<64x128xbf16, #tpu.memory_space<vmem>>, vector<64x128xbf16>
    %c0_1 = arith.constant 0 : index
    %c0_2 = arith.constant 0 : index
    %1 = vector.load %arg2[%c0_1, %c0_2] : memref<128x512xbf16, #tpu.memory_space<vmem>>, vector<128x512xbf16>
    %cst = arith.constant dense<0.000000e+00> : vector<64x512xf32>
    %2 = tpu.matmul %0, %1, %cst {dimension_numbers = #tpu.dot_dimension_numbers<[1], [0], [0], [1], [0, 0, 1, 1], [], []>} : vector<64x128xbf16>, vector<128x512xbf16>, vector<64x512xf32> -> vector<64x512xf32>
    %c0_3 = arith.constant 0 : index
    %c0_4 = arith.constant 0 : index
    %3 = vector.load %arg3[%c0_3, %c0_4] : memref<1x512xf32, #tpu.memory_space<vmem>>, vector<1x512xf32>
    %4 = vector.broadcast %3 : vector<1x512xf32> to vector<64x512xf32>
    %5 = arith.addf %2, %4 : vector<64x512xf32>
    %6 = arith.truncf %5 : vector<64x512xf32> to vector<64x512xbf16>
    %c0_5 = arith.constant 0 : index
    %c0_6 = arith.constant 0 : index
    %7 = vector.load %arg4[%c0_5, %c0_6] : memref<64x512xbf16, #tpu.memory_space<vmem>>, vector<64x512xbf16>
    tpu.vector_store %arg4[%c0_5, %c0_6], %6 {strides = array<i32>} : memref<64x512xbf16, #tpu.memory_space<vmem>>, vector<64x512xbf16>,
    return
  }
  func.func @transform_0(%arg0: i32) -> (i32, i32) {
    %c0_i32 = arith.constant 0 : i32
    %c0_i32_0 = arith.constant 0 : i32
    return %arg0, %c0_i32 : i32, i32
  }
  func.func @transform_1(%arg0: i32) -> (i32, i32) {
    %c0_i32 = arith.constant 0 : i32
    %c0_i32_0 = arith.constant 0 : i32
    %c0_i32_1 = arith.constant 0 : i32
    return %c0_i32, %c0_i32_0 : i32, i32
  }
  func.func @transform_2(%arg0: i32) -> (i32, i32) {
    %c0_i32 = arith.constant 0 : i32
    %c0_i32_0 = arith.constant 0 : i32
    %c0_i32_1 = arith.constant 0 : i32
    return %c0_i32, %c0_i32_0 : i32, i32
  }
  func.func @transform_3(%arg0: i32) -> (i32, i32) {
    %c0_i32 = arith.constant 0 : i32
    %c0_i32_0 = arith.constant 0 : i32
    return %arg0, %c0_i32 : i32, i32
  }
}

module attributes {stable_mosaic.version = 11 : i64} {
  func.func @_conv3x3s1_kernel(%arg0: i32, %arg1: i32, %arg2: memref<1x1x10x128xbf16, #tpu.memory_space<vmem>>, %arg3: memref<1x1x10x128xbf16, #tpu.memory_space<vmem>>, %arg4: memref<1x1x10x128xbf16, #tpu.memory_space<vmem>>, %arg5: memref<1152x128xbf16, #tpu.memory_space<vmem>>, %arg6: memref<1x128xf32, #tpu.memory_space<vmem>>, %arg7: memref<1x1x8x128xbf16, #tpu.memory_space<vmem>>) attributes {dimension_semantics = [#tpu.dimension_semantics<parallel>, #tpu.dimension_semantics<parallel>], iteration_bounds = array<i64: 2, 8>, scalar_prefetch = 0 : i64, scratch_operands = 0 : i64, tpu.core_type = #tpu.core_type<tc>, window_params = [{transform_indices = @transform_0, window_bounds = array<i64: 1, 1, 10, 128>}, {transform_indices = @transform_1, window_bounds = array<i64: 1, 1, 10, 128>}, {transform_indices = @transform_2, window_bounds = array<i64: 1, 1, 10, 128>}, {pipeline_mode = #tpu.pipeline_mode<synchronous>, transform_indices = @transform_3, window_bounds = array<i64: 1152, 128>}, {pipeline_mode = #tpu.pipeline_mode<synchronous>, transform_indices = @transform_4, window_bounds = array<i64: 1, 128>}, {transform_indices = @transform_5, window_bounds = array<i64: 1, 1, 8, 128>}]} {
    %c0 = arith.constant 0 : index
    %c0_0 = arith.constant 0 : index
    %c0_1 = arith.constant 0 : index
    %c0_2 = arith.constant 0 : index
    %0 = vector.load %arg2[%c0, %c0_0, %c0_1, %c0_2] : memref<1x1x10x128xbf16, #tpu.memory_space<vmem>>, vector<1x1x10x128xbf16>
    %c0_3 = arith.constant 0 : index
    %c0_4 = arith.constant 0 : index
    %c0_5 = arith.constant 0 : index
    %c0_6 = arith.constant 0 : index
    %1 = vector.load %arg3[%c0_3, %c0_4, %c0_5, %c0_6] : memref<1x1x10x128xbf16, #tpu.memory_space<vmem>>, vector<1x1x10x128xbf16>
    %c0_7 = arith.constant 0 : index
    %c0_8 = arith.constant 0 : index
    %c0_9 = arith.constant 0 : index
    %c0_10 = arith.constant 0 : index
    %2 = vector.load %arg4[%c0_7, %c0_8, %c0_9, %c0_10] : memref<1x1x10x128xbf16, #tpu.memory_space<vmem>>, vector<1x1x10x128xbf16>
    %3 = vector.extract_strided_slice %0 {offsets = [0, 0, 0, 0], sizes = [1, 1, 8, 128], strides = [1, 1, 1, 1]} : vector<1x1x10x128xbf16> to vector<1x1x8x128xbf16>
    %4 = vector.shape_cast %3 : vector<1x1x8x128xbf16> to vector<8x128xbf16>
    %c0_11 = arith.constant 0 : index
    %c0_12 = arith.constant 0 : index
    %5 = vector.load %arg5[%c0_11, %c0_12] : memref<1152x128xbf16, #tpu.memory_space<vmem>>, vector<128x128xbf16>
    %cst = arith.constant dense<0.000000e+00> : vector<8x128xf32>
    %6 = tpu.matmul %4, %5, %cst {dimension_numbers = #tpu.dot_dimension_numbers<[1], [0], [0], [1], [0, 0, 1, 1], [], []>} : vector<8x128xbf16>, vector<128x128xbf16>, vector<8x128xf32> -> vector<8x128xf32>
    %7 = vector.extract_strided_slice %0 {offsets = [0, 0, 1, 0], sizes = [1, 1, 8, 128], strides = [1, 1, 1, 1]} : vector<1x1x10x128xbf16> to vector<1x1x8x128xbf16>
    %8 = vector.shape_cast %7 : vector<1x1x8x128xbf16> to vector<8x128xbf16>
    %c128 = arith.constant 128 : index
    %c0_13 = arith.constant 0 : index
    %9 = vector.load %arg5[%c128, %c0_13] : memref<1152x128xbf16, #tpu.memory_space<vmem>>, vector<128x128xbf16>
    %cst_14 = arith.constant dense<0.000000e+00> : vector<8x128xf32>
    %10 = tpu.matmul %8, %9, %cst_14 {dimension_numbers = #tpu.dot_dimension_numbers<[1], [0], [0], [1], [0, 0, 1, 1], [], []>} : vector<8x128xbf16>, vector<128x128xbf16>, vector<8x128xf32> -> vector<8x128xf32>
    %11 = arith.addf %6, %10 : vector<8x128xf32>
    %12 = vector.extract_strided_slice %0 {offsets = [0, 0, 2, 0], sizes = [1, 1, 8, 128], strides = [1, 1, 1, 1]} : vector<1x1x10x128xbf16> to vector<1x1x8x128xbf16>
    %13 = vector.shape_cast %12 : vector<1x1x8x128xbf16> to vector<8x128xbf16>
    %c256 = arith.constant 256 : index
    %c0_15 = arith.constant 0 : index
    %14 = vector.load %arg5[%c256, %c0_15] : memref<1152x128xbf16, #tpu.memory_space<vmem>>, vector<128x128xbf16>
    %cst_16 = arith.constant dense<0.000000e+00> : vector<8x128xf32>
    %15 = tpu.matmul %13, %14, %cst_16 {dimension_numbers = #tpu.dot_dimension_numbers<[1], [0], [0], [1], [0, 0, 1, 1], [], []>} : vector<8x128xbf16>, vector<128x128xbf16>, vector<8x128xf32> -> vector<8x128xf32>
    %16 = arith.addf %11, %15 : vector<8x128xf32>
    %17 = vector.extract_strided_slice %1 {offsets = [0, 0, 0, 0], sizes = [1, 1, 8, 128], strides = [1, 1, 1, 1]} : vector<1x1x10x128xbf16> to vector<1x1x8x128xbf16>
    %18 = vector.shape_cast %17 : vector<1x1x8x128xbf16> to vector<8x128xbf16>
    %c384 = arith.constant 384 : index
    %c0_17 = arith.constant 0 : index
    %19 = vector.load %arg5[%c384, %c0_17] : memref<1152x128xbf16, #tpu.memory_space<vmem>>, vector<128x128xbf16>
    %cst_18 = arith.constant dense<0.000000e+00> : vector<8x128xf32>
    %20 = tpu.matmul %18, %19, %cst_18 {dimension_numbers = #tpu.dot_dimension_numbers<[1], [0], [0], [1], [0, 0, 1, 1], [], []>} : vector<8x128xbf16>, vector<128x128xbf16>, vector<8x128xf32> -> vector<8x128xf32>
    %21 = arith.addf %16, %20 : vector<8x128xf32>
    %22 = vector.extract_strided_slice %1 {offsets = [0, 0, 1, 0], sizes = [1, 1, 8, 128], strides = [1, 1, 1, 1]} : vector<1x1x10x128xbf16> to vector<1x1x8x128xbf16>
    %23 = vector.shape_cast %22 : vector<1x1x8x128xbf16> to vector<8x128xbf16>
    %c512 = arith.constant 512 : index
    %c0_19 = arith.constant 0 : index
    %24 = vector.load %arg5[%c512, %c0_19] : memref<1152x128xbf16, #tpu.memory_space<vmem>>, vector<128x128xbf16>
    %cst_20 = arith.constant dense<0.000000e+00> : vector<8x128xf32>
    %25 = tpu.matmul %23, %24, %cst_20 {dimension_numbers = #tpu.dot_dimension_numbers<[1], [0], [0], [1], [0, 0, 1, 1], [], []>} : vector<8x128xbf16>, vector<128x128xbf16>, vector<8x128xf32> -> vector<8x128xf32>
    %26 = arith.addf %21, %25 : vector<8x128xf32>
    %27 = vector.extract_strided_slice %1 {offsets = [0, 0, 2, 0], sizes = [1, 1, 8, 128], strides = [1, 1, 1, 1]} : vector<1x1x10x128xbf16> to vector<1x1x8x128xbf16>
    %28 = vector.shape_cast %27 : vector<1x1x8x128xbf16> to vector<8x128xbf16>
    %c640 = arith.constant 640 : index
    %c0_21 = arith.constant 0 : index
    %29 = vector.load %arg5[%c640, %c0_21] : memref<1152x128xbf16, #tpu.memory_space<vmem>>, vector<128x128xbf16>
    %cst_22 = arith.constant dense<0.000000e+00> : vector<8x128xf32>
    %30 = tpu.matmul %28, %29, %cst_22 {dimension_numbers = #tpu.dot_dimension_numbers<[1], [0], [0], [1], [0, 0, 1, 1], [], []>} : vector<8x128xbf16>, vector<128x128xbf16>, vector<8x128xf32> -> vector<8x128xf32>
    %31 = arith.addf %26, %30 : vector<8x128xf32>
    %32 = vector.extract_strided_slice %2 {offsets = [0, 0, 0, 0], sizes = [1, 1, 8, 128], strides = [1, 1, 1, 1]} : vector<1x1x10x128xbf16> to vector<1x1x8x128xbf16>
    %33 = vector.shape_cast %32 : vector<1x1x8x128xbf16> to vector<8x128xbf16>
    %c768 = arith.constant 768 : index
    %c0_23 = arith.constant 0 : index
    %34 = vector.load %arg5[%c768, %c0_23] : memref<1152x128xbf16, #tpu.memory_space<vmem>>, vector<128x128xbf16>
    %cst_24 = arith.constant dense<0.000000e+00> : vector<8x128xf32>
    %35 = tpu.matmul %33, %34, %cst_24 {dimension_numbers = #tpu.dot_dimension_numbers<[1], [0], [0], [1], [0, 0, 1, 1], [], []>} : vector<8x128xbf16>, vector<128x128xbf16>, vector<8x128xf32> -> vector<8x128xf32>
    %36 = arith.addf %31, %35 : vector<8x128xf32>
    %37 = vector.extract_strided_slice %2 {offsets = [0, 0, 1, 0], sizes = [1, 1, 8, 128], strides = [1, 1, 1, 1]} : vector<1x1x10x128xbf16> to vector<1x1x8x128xbf16>
    %38 = vector.shape_cast %37 : vector<1x1x8x128xbf16> to vector<8x128xbf16>
    %c896 = arith.constant 896 : index
    %c0_25 = arith.constant 0 : index
    %39 = vector.load %arg5[%c896, %c0_25] : memref<1152x128xbf16, #tpu.memory_space<vmem>>, vector<128x128xbf16>
    %cst_26 = arith.constant dense<0.000000e+00> : vector<8x128xf32>
    %40 = tpu.matmul %38, %39, %cst_26 {dimension_numbers = #tpu.dot_dimension_numbers<[1], [0], [0], [1], [0, 0, 1, 1], [], []>} : vector<8x128xbf16>, vector<128x128xbf16>, vector<8x128xf32> -> vector<8x128xf32>
    %41 = arith.addf %36, %40 : vector<8x128xf32>
    %42 = vector.extract_strided_slice %2 {offsets = [0, 0, 2, 0], sizes = [1, 1, 8, 128], strides = [1, 1, 1, 1]} : vector<1x1x10x128xbf16> to vector<1x1x8x128xbf16>
    %43 = vector.shape_cast %42 : vector<1x1x8x128xbf16> to vector<8x128xbf16>
    %c1024 = arith.constant 1024 : index
    %c0_27 = arith.constant 0 : index
    %44 = vector.load %arg5[%c1024, %c0_27] : memref<1152x128xbf16, #tpu.memory_space<vmem>>, vector<128x128xbf16>
    %cst_28 = arith.constant dense<0.000000e+00> : vector<8x128xf32>
    %45 = tpu.matmul %43, %44, %cst_28 {dimension_numbers = #tpu.dot_dimension_numbers<[1], [0], [0], [1], [0, 0, 1, 1], [], []>} : vector<8x128xbf16>, vector<128x128xbf16>, vector<8x128xf32> -> vector<8x128xf32>
    %46 = arith.addf %41, %45 : vector<8x128xf32>
    %c0_29 = arith.constant 0 : index
    %c0_30 = arith.constant 0 : index
    %47 = vector.load %arg6[%c0_29, %c0_30] : memref<1x128xf32, #tpu.memory_space<vmem>>, vector<1x128xf32>
    %48 = vector.broadcast %47 : vector<1x128xf32> to vector<8x128xf32>
    %49 = arith.addf %46, %48 : vector<8x128xf32>
    %50 = vector.shape_cast %49 : vector<8x128xf32> to vector<1x1x8x128xf32>
    %51 = arith.truncf %50 : vector<1x1x8x128xf32> to vector<1x1x8x128xbf16>
    %c0_31 = arith.constant 0 : index
    %c0_32 = arith.constant 0 : index
    %c0_33 = arith.constant 0 : index
    %c0_34 = arith.constant 0 : index
    %52 = vector.load %arg7[%c0_31, %c0_32, %c0_33, %c0_34] : memref<1x1x8x128xbf16, #tpu.memory_space<vmem>>, vector<1x1x8x128xbf16>
    tpu.vector_store %arg7[%c0_31, %c0_32, %c0_33, %c0_34], %51 {strides = array<i32>} : memref<1x1x8x128xbf16, #tpu.memory_space<vmem>>, vector<1x1x8x128xbf16>,
    return
  }
  func.func @transform_0(%arg0: i32, %arg1: i32) -> (i32, i32, i32, i32) {
    %c0_i32 = arith.constant 0 : i32
    %0 = arith.addi %arg1, %c0_i32 : i32
    %c0_i32_0 = arith.constant 0 : i32
    %c0_i32_1 = arith.constant 0 : i32
    %c0_i32_2 = arith.constant 0 : i32
    return %arg0, %0, %c0_i32_0, %c0_i32_1 : i32, i32, i32, i32
  }
  func.func @transform_1(%arg0: i32, %arg1: i32) -> (i32, i32, i32, i32) {
    %c1_i32 = arith.constant 1 : i32
    %0 = arith.addi %arg1, %c1_i32 : i32
    %c0_i32 = arith.constant 0 : i32
    %c0_i32_0 = arith.constant 0 : i32
    %c0_i32_1 = arith.constant 0 : i32
    return %arg0, %0, %c0_i32, %c0_i32_0 : i32, i32, i32, i32
  }
  func.func @transform_2(%arg0: i32, %arg1: i32) -> (i32, i32, i32, i32) {
    %c2_i32 = arith.constant 2 : i32
    %0 = arith.addi %arg1, %c2_i32 : i32
    %c0_i32 = arith.constant 0 : i32
    %c0_i32_0 = arith.constant 0 : i32
    %c0_i32_1 = arith.constant 0 : i32
    return %arg0, %0, %c0_i32, %c0_i32_0 : i32, i32, i32, i32
  }
  func.func @transform_3(%arg0: i32, %arg1: i32) -> (i32, i32) {
    %c0_i32 = arith.constant 0 : i32
    %c0_i32_0 = arith.constant 0 : i32
    %c0_i32_1 = arith.constant 0 : i32
    return %c0_i32, %c0_i32_0 : i32, i32
  }
  func.func @transform_4(%arg0: i32, %arg1: i32) -> (i32, i32) {
    %c0_i32 = arith.constant 0 : i32
    %c0_i32_0 = arith.constant 0 : i32
    %c0_i32_1 = arith.constant 0 : i32
    return %c0_i32, %c0_i32_0 : i32, i32
  }
  func.func @transform_5(%arg0: i32, %arg1: i32) -> (i32, i32, i32, i32) {
    %c0_i32 = arith.constant 0 : i32
    %c0_i32_0 = arith.constant 0 : i32
    %c0_i32_1 = arith.constant 0 : i32
    return %arg0, %arg1, %c0_i32, %c0_i32_0 : i32, i32, i32, i32
  }
}

module attributes {stable_mosaic.version = 11 : i64} {
  func.func @_conv3x3s1_kernel(%arg0: i32, %arg1: i32, %arg2: memref<1x1x10x128xbf16, #tpu.memory_space<vmem>>, %arg3: memref<1x1x10x128xbf16, #tpu.memory_space<vmem>>, %arg4: memref<1x1x10x128xbf16, #tpu.memory_space<vmem>>, %arg5: memref<1152x128xbf16, #tpu.memory_space<vmem>>, %arg6: memref<1x128xf32, #tpu.memory_space<vmem>>, %arg7: memref<1x1x8x128xbf16, #tpu.memory_space<vmem>>) attributes {dimension_semantics = [#tpu.dimension_semantics<parallel>, #tpu.dimension_semantics<parallel>], iteration_bounds = array<i64: 2, 8>, scalar_prefetch = 0 : i64, scratch_operands = 0 : i64, tpu.core_type = #tpu.core_type<tc>, window_params = [{transform_indices = @transform_0, window_bounds = array<i64: 1, 1, 10, 128>}, {transform_indices = @transform_1, window_bounds = array<i64: 1, 1, 10, 128>}, {transform_indices = @transform_2, window_bounds = array<i64: 1, 1, 10, 128>}, {pipeline_mode = #tpu.pipeline_mode<synchronous>, transform_indices = @transform_3, window_bounds = array<i64: 1152, 128>}, {pipeline_mode = #tpu.pipeline_mode<synchronous>, transform_indices = @transform_4, window_bounds = array<i64: 1, 128>}, {transform_indices = @transform_5, window_bounds = array<i64: 1, 1, 8, 128>}]} {
    %c0 = arith.constant 0 : index
    %c0_0 = arith.constant 0 : index
    %c0_1 = arith.constant 0 : index
    %c0_2 = arith.constant 0 : index
    %0 = vector.load %arg2[%c0, %c0_0, %c0_1, %c0_2] : memref<1x1x10x128xbf16, #tpu.memory_space<vmem>>, vector<1x1x10x128xbf16>
    %c0_3 = arith.constant 0 : index
    %c0_4 = arith.constant 0 : index
    %c0_5 = arith.constant 0 : index
    %c0_6 = arith.constant 0 : index
    %1 = vector.load %arg3[%c0_3, %c0_4, %c0_5, %c0_6] : memref<1x1x10x128xbf16, #tpu.memory_space<vmem>>, vector<1x1x10x128xbf16>
    %c0_7 = arith.constant 0 : index
    %c0_8 = arith.constant 0 : index
    %c0_9 = arith.constant 0 : index
    %c0_10 = arith.constant 0 : index
    %2 = vector.load %arg4[%c0_7, %c0_8, %c0_9, %c0_10] : memref<1x1x10x128xbf16, #tpu.memory_space<vmem>>, vector<1x1x10x128xbf16>
    %3 = vector.extract_strided_slice %0 {offsets = [0, 0, 0, 0], sizes = [1, 1, 8, 128], strides = [1, 1, 1, 1]} : vector<1x1x10x128xbf16> to vector<1x1x8x128xbf16>
    %4 = vector.shape_cast %3 : vector<1x1x8x128xbf16> to vector<8x128xbf16>
    %c0_11 = arith.constant 0 : index
    %c0_12 = arith.constant 0 : index
    %5 = vector.load %arg5[%c0_11, %c0_12] : memref<1152x128xbf16, #tpu.memory_space<vmem>>, vector<128x128xbf16>
    %cst = arith.constant dense<0.000000e+00> : vector<8x128xf32>
    %6 = tpu.matmul %4, %5, %cst {dimension_numbers = #tpu.dot_dimension_numbers<[1], [0], [0], [1], [0, 0, 1, 1], [], []>} : vector<8x128xbf16>, vector<128x128xbf16>, vector<8x128xf32> -> vector<8x128xf32>
    %7 = vector.extract_strided_slice %0 {offsets = [0, 0, 1, 0], sizes = [1, 1, 8, 128], strides = [1, 1, 1, 1]} : vector<1x1x10x128xbf16> to vector<1x1x8x128xbf16>
    %8 = vector.shape_cast %7 : vector<1x1x8x128xbf16> to vector<8x128xbf16>
    %c128 = arith.constant 128 : index
    %c0_13 = arith.constant 0 : index
    %9 = vector.load %arg5[%c128, %c0_13] : memref<1152x128xbf16, #tpu.memory_space<vmem>>, vector<128x128xbf16>
    %cst_14 = arith.constant dense<0.000000e+00> : vector<8x128xf32>
    %10 = tpu.matmul %8, %9, %cst_14 {dimension_numbers = #tpu.dot_dimension_numbers<[1], [0], [0], [1], [0, 0, 1, 1], [], []>} : vector<8x128xbf16>, vector<128x128xbf16>, vector<8x128xf32> -> vector<8x128xf32>
    %11 = arith.addf %6, %10 : vector<8x128xf32>
    %12 = vector.extract_strided_slice %0 {offsets = [0, 0, 2, 0], sizes = [1, 1, 8, 128], strides = [1, 1, 1, 1]} : vector<1x1x10x128xbf16> to vector<1x1x8x128xbf16>
    %13 = vector.shape_cast %12 : vector<1x1x8x128xbf16> to vector<8x128xbf16>
    %c256 = arith.constant 256 : index
    %c0_15 = arith.constant 0 : index
    %14 = vector.load %arg5[%c256, %c0_15] : memref<1152x128xbf16, #tpu.memory_space<vmem>>, vector<128x128xbf16>
    %cst_16 = arith.constant dense<0.000000e+00> : vector<8x128xf32>
    %15 = tpu.matmul %13, %14, %cst_16 {dimension_numbers = #tpu.dot_dimension_numbers<[1], [0], [0], [1], [0, 0, 1, 1], [], []>} : vector<8x128xbf16>, vector<128x128xbf16>, vector<8x128xf32> -> vector<8x128xf32>
    %16 = arith.addf %11, %15 : vector<8x128xf32>
    %17 = vector.extract_strided_slice %1 {offsets = [0, 0, 0, 0], sizes = [1, 1, 8, 128], strides = [1, 1, 1, 1]} : vector<1x1x10x128xbf16> to vector<1x1x8x128xbf16>
    %18 = vector.shape_cast %17 : vector<1x1x8x128xbf16> to vector<8x128xbf16>
    %c384 = arith.constant 384 : index
    %c0_17 = arith.constant 0 : index
    %19 = vector.load %arg5[%c384, %c0_17] : memref<1152x128xbf16, #tpu.memory_space<vmem>>, vector<128x128xbf16>
    %cst_18 = arith.constant dense<0.000000e+00> : vector<8x128xf32>
    %20 = tpu.matmul %18, %19, %cst_18 {dimension_numbers = #tpu.dot_dimension_numbers<[1], [0], [0], [1], [0, 0, 1, 1], [], []>} : vector<8x128xbf16>, vector<128x128xbf16>, vector<8x128xf32> -> vector<8x128xf32>
    %21 = arith.addf %16, %20 : vector<8x128xf32>
    %22 = vector.extract_strided_slice %1 {offsets = [0, 0, 1, 0], sizes = [1, 1, 8, 128], strides = [1, 1, 1, 1]} : vector<1x1x10x128xbf16> to vector<1x1x8x128xbf16>
    %23 = vector.shape_cast %22 : vector<1x1x8x128xbf16> to vector<8x128xbf16>
    %c512 = arith.constant 512 : index
    %c0_19 = arith.constant 0 : index
    %24 = vector.load %arg5[%c512, %c0_19] : memref<1152x128xbf16, #tpu.memory_space<vmem>>, vector<128x128xbf16>
    %cst_20 = arith.constant dense<0.000000e+00> : vector<8x128xf32>
    %25 = tpu.matmul %23, %24, %cst_20 {dimension_numbers = #tpu.dot_dimension_numbers<[1], [0], [0], [1], [0, 0, 1, 1], [], []>} : vector<8x128xbf16>, vector<128x128xbf16>, vector<8x128xf32> -> vector<8x128xf32>
    %26 = arith.addf %21, %25 : vector<8x128xf32>
    %27 = vector.extract_strided_slice %1 {offsets = [0, 0, 2, 0], sizes = [1, 1, 8, 128], strides = [1, 1, 1, 1]} : vector<1x1x10x128xbf16> to vector<1x1x8x128xbf16>
    %28 = vector.shape_cast %27 : vector<1x1x8x128xbf16> to vector<8x128xbf16>
    %c640 = arith.constant 640 : index
    %c0_21 = arith.constant 0 : index
    %29 = vector.load %arg5[%c640, %c0_21] : memref<1152x128xbf16, #tpu.memory_space<vmem>>, vector<128x128xbf16>
    %cst_22 = arith.constant dense<0.000000e+00> : vector<8x128xf32>
    %30 = tpu.matmul %28, %29, %cst_22 {dimension_numbers = #tpu.dot_dimension_numbers<[1], [0], [0], [1], [0, 0, 1, 1], [], []>} : vector<8x128xbf16>, vector<128x128xbf16>, vector<8x128xf32> -> vector<8x128xf32>
    %31 = arith.addf %26, %30 : vector<8x128xf32>
    %32 = vector.extract_strided_slice %2 {offsets = [0, 0, 0, 0], sizes = [1, 1, 8, 128], strides = [1, 1, 1, 1]} : vector<1x1x10x128xbf16> to vector<1x1x8x128xbf16>
    %33 = vector.shape_cast %32 : vector<1x1x8x128xbf16> to vector<8x128xbf16>
    %c768 = arith.constant 768 : index
    %c0_23 = arith.constant 0 : index
    %34 = vector.load %arg5[%c768, %c0_23] : memref<1152x128xbf16, #tpu.memory_space<vmem>>, vector<128x128xbf16>
    %cst_24 = arith.constant dense<0.000000e+00> : vector<8x128xf32>
    %35 = tpu.matmul %33, %34, %cst_24 {dimension_numbers = #tpu.dot_dimension_numbers<[1], [0], [0], [1], [0, 0, 1, 1], [], []>} : vector<8x128xbf16>, vector<128x128xbf16>, vector<8x128xf32> -> vector<8x128xf32>
    %36 = arith.addf %31, %35 : vector<8x128xf32>
    %37 = vector.extract_strided_slice %2 {offsets = [0, 0, 1, 0], sizes = [1, 1, 8, 128], strides = [1, 1, 1, 1]} : vector<1x1x10x128xbf16> to vector<1x1x8x128xbf16>
    %38 = vector.shape_cast %37 : vector<1x1x8x128xbf16> to vector<8x128xbf16>
    %c896 = arith.constant 896 : index
    %c0_25 = arith.constant 0 : index
    %39 = vector.load %arg5[%c896, %c0_25] : memref<1152x128xbf16, #tpu.memory_space<vmem>>, vector<128x128xbf16>
    %cst_26 = arith.constant dense<0.000000e+00> : vector<8x128xf32>
    %40 = tpu.matmul %38, %39, %cst_26 {dimension_numbers = #tpu.dot_dimension_numbers<[1], [0], [0], [1], [0, 0, 1, 1], [], []>} : vector<8x128xbf16>, vector<128x128xbf16>, vector<8x128xf32> -> vector<8x128xf32>
    %41 = arith.addf %36, %40 : vector<8x128xf32>
    %42 = vector.extract_strided_slice %2 {offsets = [0, 0, 2, 0], sizes = [1, 1, 8, 128], strides = [1, 1, 1, 1]} : vector<1x1x10x128xbf16> to vector<1x1x8x128xbf16>
    %43 = vector.shape_cast %42 : vector<1x1x8x128xbf16> to vector<8x128xbf16>
    %c1024 = arith.constant 1024 : index
    %c0_27 = arith.constant 0 : index
    %44 = vector.load %arg5[%c1024, %c0_27] : memref<1152x128xbf16, #tpu.memory_space<vmem>>, vector<128x128xbf16>
    %cst_28 = arith.constant dense<0.000000e+00> : vector<8x128xf32>
    %45 = tpu.matmul %43, %44, %cst_28 {dimension_numbers = #tpu.dot_dimension_numbers<[1], [0], [0], [1], [0, 0, 1, 1], [], []>} : vector<8x128xbf16>, vector<128x128xbf16>, vector<8x128xf32> -> vector<8x128xf32>
    %46 = arith.addf %41, %45 : vector<8x128xf32>
    %c0_29 = arith.constant 0 : index
    %c0_30 = arith.constant 0 : index
    %47 = vector.load %arg6[%c0_29, %c0_30] : memref<1x128xf32, #tpu.memory_space<vmem>>, vector<1x128xf32>
    %48 = vector.broadcast %47 : vector<1x128xf32> to vector<8x128xf32>
    %49 = arith.addf %46, %48 : vector<8x128xf32>
    %cst_31 = arith.constant 0.000000e+00 : f32
    %50 = vector.broadcast %cst_31 : f32 to vector<8x128xf32>
    %51 = arith.maximumf %49, %50 : vector<8x128xf32>
    %52 = vector.shape_cast %51 : vector<8x128xf32> to vector<1x1x8x128xf32>
    %53 = arith.truncf %52 : vector<1x1x8x128xf32> to vector<1x1x8x128xbf16>
    %c0_32 = arith.constant 0 : index
    %c0_33 = arith.constant 0 : index
    %c0_34 = arith.constant 0 : index
    %c0_35 = arith.constant 0 : index
    %54 = vector.load %arg7[%c0_32, %c0_33, %c0_34, %c0_35] : memref<1x1x8x128xbf16, #tpu.memory_space<vmem>>, vector<1x1x8x128xbf16>
    tpu.vector_store %arg7[%c0_32, %c0_33, %c0_34, %c0_35], %53 {strides = array<i32>} : memref<1x1x8x128xbf16, #tpu.memory_space<vmem>>, vector<1x1x8x128xbf16>,
    return
  }
  func.func @transform_0(%arg0: i32, %arg1: i32) -> (i32, i32, i32, i32) {
    %c0_i32 = arith.constant 0 : i32
    %0 = arith.addi %arg1, %c0_i32 : i32
    %c0_i32_0 = arith.constant 0 : i32
    %c0_i32_1 = arith.constant 0 : i32
    %c0_i32_2 = arith.constant 0 : i32
    return %arg0, %0, %c0_i32_0, %c0_i32_1 : i32, i32, i32, i32
  }
  func.func @transform_1(%arg0: i32, %arg1: i32) -> (i32, i32, i32, i32) {
    %c1_i32 = arith.constant 1 : i32
    %0 = arith.addi %arg1, %c1_i32 : i32
    %c0_i32 = arith.constant 0 : i32
    %c0_i32_0 = arith.constant 0 : i32
    %c0_i32_1 = arith.constant 0 : i32
    return %arg0, %0, %c0_i32, %c0_i32_0 : i32, i32, i32, i32
  }
  func.func @transform_2(%arg0: i32, %arg1: i32) -> (i32, i32, i32, i32) {
    %c2_i32 = arith.constant 2 : i32
    %0 = arith.addi %arg1, %c2_i32 : i32
    %c0_i32 = arith.constant 0 : i32
    %c0_i32_0 = arith.constant 0 : i32
    %c0_i32_1 = arith.constant 0 : i32
    return %arg0, %0, %c0_i32, %c0_i32_0 : i32, i32, i32, i32
  }
  func.func @transform_3(%arg0: i32, %arg1: i32) -> (i32, i32) {
    %c0_i32 = arith.constant 0 : i32
    %c0_i32_0 = arith.constant 0 : i32
    %c0_i32_1 = arith.constant 0 : i32
    return %c0_i32, %c0_i32_0 : i32, i32
  }
  func.func @transform_4(%arg0: i32, %arg1: i32) -> (i32, i32) {
    %c0_i32 = arith.constant 0 : i32
    %c0_i32_0 = arith.constant 0 : i32
    %c0_i32_1 = arith.constant 0 : i32
    return %c0_i32, %c0_i32_0 : i32, i32
  }
  func.func @transform_5(%arg0: i32, %arg1: i32) -> (i32, i32, i32, i32) {
    %c0_i32 = arith.constant 0 : i32
    %c0_i32_0 = arith.constant 0 : i32
    %c0_i32_1 = arith.constant 0 : i32
    return %arg0, %arg1, %c0_i32, %c0_i32_0 : i32, i32, i32, i32
  }
}

module attributes {stable_mosaic.version = 11 : i64} {
  func.func @_mm_kernel(%arg0: i32, %arg1: memref<8x1152xbf16, #tpu.memory_space<vmem>>, %arg2: memref<1152x128xbf16, #tpu.memory_space<vmem>>, %arg3: memref<1x128xf32, #tpu.memory_space<vmem>>, %arg4: memref<8x128xbf16, #tpu.memory_space<vmem>>) attributes {dimension_semantics = [#tpu.dimension_semantics<parallel>], iteration_bounds = array<i64: 1>, scalar_prefetch = 0 : i64, scratch_operands = 0 : i64, tpu.core_type = #tpu.core_type<tc>, window_params = [{transform_indices = @transform_0, window_bounds = array<i64: 8, 1152>}, {pipeline_mode = #tpu.pipeline_mode<synchronous>, transform_indices = @transform_1, window_bounds = array<i64: 1152, 128>}, {pipeline_mode = #tpu.pipeline_mode<synchronous>, transform_indices = @transform_2, window_bounds = array<i64: 1, 128>}, {transform_indices = @transform_3, window_bounds = array<i64: 8, 128>}]} {
    %c0 = arith.constant 0 : index
    %c0_0 = arith.constant 0 : index
    %0 = vector.load %arg1[%c0, %c0_0] : memref<8x1152xbf16, #tpu.memory_space<vmem>>, vector<8x1152xbf16>
    %c0_1 = arith.constant 0 : index
    %c0_2 = arith.constant 0 : index
    %1 = vector.load %arg2[%c0_1, %c0_2] : memref<1152x128xbf16, #tpu.memory_space<vmem>>, vector<1152x128xbf16>
    %cst = arith.constant dense<0.000000e+00> : vector<8x128xf32>
    %2 = tpu.matmul %0, %1, %cst {dimension_numbers = #tpu.dot_dimension_numbers<[1], [0], [0], [1], [0, 0, 1, 1], [], []>} : vector<8x1152xbf16>, vector<1152x128xbf16>, vector<8x128xf32> -> vector<8x128xf32>
    %c0_3 = arith.constant 0 : index
    %c0_4 = arith.constant 0 : index
    %3 = vector.load %arg3[%c0_3, %c0_4] : memref<1x128xf32, #tpu.memory_space<vmem>>, vector<1x128xf32>
    %4 = vector.broadcast %3 : vector<1x128xf32> to vector<8x128xf32>
    %5 = arith.addf %2, %4 : vector<8x128xf32>
    %cst_5 = arith.constant 0.000000e+00 : f32
    %6 = vector.broadcast %cst_5 : f32 to vector<8x128xf32>
    %7 = arith.maximumf %5, %6 : vector<8x128xf32>
    %8 = arith.truncf %7 : vector<8x128xf32> to vector<8x128xbf16>
    %c0_6 = arith.constant 0 : index
    %c0_7 = arith.constant 0 : index
    %9 = vector.load %arg4[%c0_6, %c0_7] : memref<8x128xbf16, #tpu.memory_space<vmem>>, vector<8x128xbf16>
    tpu.vector_store %arg4[%c0_6, %c0_7], %8 {strides = array<i32>} : memref<8x128xbf16, #tpu.memory_space<vmem>>, vector<8x128xbf16>,
    return
  }
  func.func @transform_0(%arg0: i32) -> (i32, i32) {
    %c0_i32 = arith.constant 0 : i32
    %c0_i32_0 = arith.constant 0 : i32
    return %arg0, %c0_i32 : i32, i32
  }
  func.func @transform_1(%arg0: i32) -> (i32, i32) {
    %c0_i32 = arith.constant 0 : i32
    %c0_i32_0 = arith.constant 0 : i32
    %c0_i32_1 = arith.constant 0 : i32
    return %c0_i32, %c0_i32_0 : i32, i32
  }
  func.func @transform_2(%arg0: i32) -> (i32, i32) {
    %c0_i32 = arith.constant 0 : i32
    %c0_i32_0 = arith.constant 0 : i32
    %c0_i32_1 = arith.constant 0 : i32
    return %c0_i32, %c0_i32_0 : i32, i32
  }
  func.func @transform_3(%arg0: i32) -> (i32, i32) {
    %c0_i32 = arith.constant 0 : i32
    %c0_i32_0 = arith.constant 0 : i32
    return %arg0, %c0_i32 : i32, i32
  }
}

module attributes {stable_mosaic.version = 11 : i64} {
  func.func @_head_kernel(%arg0: i32, %arg1: i32, %arg2: memref<2xf32, #tpu.memory_space<smem>>, %arg3: memref<1x1x18x128xbf16, #tpu.memory_space<vmem>>, %arg4: memref<1x1x18x128xbf16, #tpu.memory_space<vmem>>, %arg5: memref<1x1x18x128xbf16, #tpu.memory_space<vmem>>, %arg6: memref<1152x128xbf16, #tpu.memory_space<vmem>>, %arg7: memref<1x128xf32, #tpu.memory_space<vmem>>, %arg8: memref<1x128xf32, #tpu.memory_space<vmem>>, %arg9: memref<1x1xf32, #tpu.memory_space<vmem>>, %arg10: memref<1x1x1x16xf32, #tpu.memory_space<vmem>>) attributes {dimension_semantics = [#tpu.dimension_semantics<parallel>, #tpu.dimension_semantics<parallel>], iteration_bounds = array<i64: 2, 16>, scalar_prefetch = 0 : i64, scratch_operands = 0 : i64, tpu.core_type = #tpu.core_type<tc>, window_params = [{transform_indices = @transform_0, window_bounds = array<i64: 2>}, {transform_indices = @transform_1, window_bounds = array<i64: 1, 1, 18, 128>}, {transform_indices = @transform_2, window_bounds = array<i64: 1, 1, 18, 128>}, {transform_indices = @transform_3, window_bounds = array<i64: 1, 1, 18, 128>}, {pipeline_mode = #tpu.pipeline_mode<synchronous>, transform_indices = @transform_4, window_bounds = array<i64: 1152, 128>}, {pipeline_mode = #tpu.pipeline_mode<synchronous>, transform_indices = @transform_5, window_bounds = array<i64: 1, 128>}, {pipeline_mode = #tpu.pipeline_mode<synchronous>, transform_indices = @transform_6, window_bounds = array<i64: 1, 128>}, {pipeline_mode = #tpu.pipeline_mode<synchronous>, transform_indices = @transform_7, window_bounds = array<i64: 1, 1>}, {transform_indices = @transform_8, window_bounds = array<i64: 1, 1, 1, 16>}]} {
    %0 = arith.index_cast %arg0 : i32 to index
    %1 = memref.load %arg2[%0] : memref<2xf32, #tpu.memory_space<smem>>
    %c0 = arith.constant 0 : index
    %c0_0 = arith.constant 0 : index
    %c0_1 = arith.constant 0 : index
    %c0_2 = arith.constant 0 : index
    %2 = vector.load %arg3[%c0, %c0_0, %c0_1, %c0_2] : memref<1x1x18x128xbf16, #tpu.memory_space<vmem>>, vector<1x1x18x128xbf16>
    %c0_3 = arith.constant 0 : index
    %c0_4 = arith.constant 0 : index
    %c0_5 = arith.constant 0 : index
    %c0_6 = arith.constant 0 : index
    %3 = vector.load %arg4[%c0_3, %c0_4, %c0_5, %c0_6] : memref<1x1x18x128xbf16, #tpu.memory_space<vmem>>, vector<1x1x18x128xbf16>
    %c0_7 = arith.constant 0 : index
    %c0_8 = arith.constant 0 : index
    %c0_9 = arith.constant 0 : index
    %c0_10 = arith.constant 0 : index
    %4 = vector.load %arg5[%c0_7, %c0_8, %c0_9, %c0_10] : memref<1x1x18x128xbf16, #tpu.memory_space<vmem>>, vector<1x1x18x128xbf16>
    %5 = vector.extract_strided_slice %2 {offsets = [0, 0, 0, 0], sizes = [1, 1, 16, 128], strides = [1, 1, 1, 1]} : vector<1x1x18x128xbf16> to vector<1x1x16x128xbf16>
    %6 = vector.shape_cast %5 : vector<1x1x16x128xbf16> to vector<16x128xbf16>
    %c0_11 = arith.constant 0 : index
    %c0_12 = arith.constant 0 : index
    %7 = vector.load %arg6[%c0_11, %c0_12] : memref<1152x128xbf16, #tpu.memory_space<vmem>>, vector<128x128xbf16>
    %cst = arith.constant dense<0.000000e+00> : vector<16x128xf32>
    %8 = tpu.matmul %6, %7, %cst {dimension_numbers = #tpu.dot_dimension_numbers<[1], [0], [0], [1], [0, 0, 1, 1], [], []>} : vector<16x128xbf16>, vector<128x128xbf16>, vector<16x128xf32> -> vector<16x128xf32>
    %9 = vector.extract_strided_slice %2 {offsets = [0, 0, 1, 0], sizes = [1, 1, 16, 128], strides = [1, 1, 1, 1]} : vector<1x1x18x128xbf16> to vector<1x1x16x128xbf16>
    %10 = vector.shape_cast %9 : vector<1x1x16x128xbf16> to vector<16x128xbf16>
    %c128 = arith.constant 128 : index
    %c0_13 = arith.constant 0 : index
    %11 = vector.load %arg6[%c128, %c0_13] : memref<1152x128xbf16, #tpu.memory_space<vmem>>, vector<128x128xbf16>
    %cst_14 = arith.constant dense<0.000000e+00> : vector<16x128xf32>
    %12 = tpu.matmul %10, %11, %cst_14 {dimension_numbers = #tpu.dot_dimension_numbers<[1], [0], [0], [1], [0, 0, 1, 1], [], []>} : vector<16x128xbf16>, vector<128x128xbf16>, vector<16x128xf32> -> vector<16x128xf32>
    %13 = arith.addf %8, %12 : vector<16x128xf32>
    %14 = vector.extract_strided_slice %2 {offsets = [0, 0, 2, 0], sizes = [1, 1, 16, 128], strides = [1, 1, 1, 1]} : vector<1x1x18x128xbf16> to vector<1x1x16x128xbf16>
    %15 = vector.shape_cast %14 : vector<1x1x16x128xbf16> to vector<16x128xbf16>
    %c256 = arith.constant 256 : index
    %c0_15 = arith.constant 0 : index
    %16 = vector.load %arg6[%c256, %c0_15] : memref<1152x128xbf16, #tpu.memory_space<vmem>>, vector<128x128xbf16>
    %cst_16 = arith.constant dense<0.000000e+00> : vector<16x128xf32>
    %17 = tpu.matmul %15, %16, %cst_16 {dimension_numbers = #tpu.dot_dimension_numbers<[1], [0], [0], [1], [0, 0, 1, 1], [], []>} : vector<16x128xbf16>, vector<128x128xbf16>, vector<16x128xf32> -> vector<16x128xf32>
    %18 = arith.addf %13, %17 : vector<16x128xf32>
    %19 = vector.extract_strided_slice %3 {offsets = [0, 0, 0, 0], sizes = [1, 1, 16, 128], strides = [1, 1, 1, 1]} : vector<1x1x18x128xbf16> to vector<1x1x16x128xbf16>
    %20 = vector.shape_cast %19 : vector<1x1x16x128xbf16> to vector<16x128xbf16>
    %c384 = arith.constant 384 : index
    %c0_17 = arith.constant 0 : index
    %21 = vector.load %arg6[%c384, %c0_17] : memref<1152x128xbf16, #tpu.memory_space<vmem>>, vector<128x128xbf16>
    %cst_18 = arith.constant dense<0.000000e+00> : vector<16x128xf32>
    %22 = tpu.matmul %20, %21, %cst_18 {dimension_numbers = #tpu.dot_dimension_numbers<[1], [0], [0], [1], [0, 0, 1, 1], [], []>} : vector<16x128xbf16>, vector<128x128xbf16>, vector<16x128xf32> -> vector<16x128xf32>
    %23 = arith.addf %18, %22 : vector<16x128xf32>
    %24 = vector.extract_strided_slice %3 {offsets = [0, 0, 1, 0], sizes = [1, 1, 16, 128], strides = [1, 1, 1, 1]} : vector<1x1x18x128xbf16> to vector<1x1x16x128xbf16>
    %25 = vector.shape_cast %24 : vector<1x1x16x128xbf16> to vector<16x128xbf16>
    %c512 = arith.constant 512 : index
    %c0_19 = arith.constant 0 : index
    %26 = vector.load %arg6[%c512, %c0_19] : memref<1152x128xbf16, #tpu.memory_space<vmem>>, vector<128x128xbf16>
    %cst_20 = arith.constant dense<0.000000e+00> : vector<16x128xf32>
    %27 = tpu.matmul %25, %26, %cst_20 {dimension_numbers = #tpu.dot_dimension_numbers<[1], [0], [0], [1], [0, 0, 1, 1], [], []>} : vector<16x128xbf16>, vector<128x128xbf16>, vector<16x128xf32> -> vector<16x128xf32>
    %28 = arith.addf %23, %27 : vector<16x128xf32>
    %29 = vector.extract_strided_slice %3 {offsets = [0, 0, 2, 0], sizes = [1, 1, 16, 128], strides = [1, 1, 1, 1]} : vector<1x1x18x128xbf16> to vector<1x1x16x128xbf16>
    %30 = vector.shape_cast %29 : vector<1x1x16x128xbf16> to vector<16x128xbf16>
    %c640 = arith.constant 640 : index
    %c0_21 = arith.constant 0 : index
    %31 = vector.load %arg6[%c640, %c0_21] : memref<1152x128xbf16, #tpu.memory_space<vmem>>, vector<128x128xbf16>
    %cst_22 = arith.constant dense<0.000000e+00> : vector<16x128xf32>
    %32 = tpu.matmul %30, %31, %cst_22 {dimension_numbers = #tpu.dot_dimension_numbers<[1], [0], [0], [1], [0, 0, 1, 1], [], []>} : vector<16x128xbf16>, vector<128x128xbf16>, vector<16x128xf32> -> vector<16x128xf32>
    %33 = arith.addf %28, %32 : vector<16x128xf32>
    %34 = vector.extract_strided_slice %4 {offsets = [0, 0, 0, 0], sizes = [1, 1, 16, 128], strides = [1, 1, 1, 1]} : vector<1x1x18x128xbf16> to vector<1x1x16x128xbf16>
    %35 = vector.shape_cast %34 : vector<1x1x16x128xbf16> to vector<16x128xbf16>
    %c768 = arith.constant 768 : index
    %c0_23 = arith.constant 0 : index
    %36 = vector.load %arg6[%c768, %c0_23] : memref<1152x128xbf16, #tpu.memory_space<vmem>>, vector<128x128xbf16>
    %cst_24 = arith.constant dense<0.000000e+00> : vector<16x128xf32>
    %37 = tpu.matmul %35, %36, %cst_24 {dimension_numbers = #tpu.dot_dimension_numbers<[1], [0], [0], [1], [0, 0, 1, 1], [], []>} : vector<16x128xbf16>, vector<128x128xbf16>, vector<16x128xf32> -> vector<16x128xf32>
    %38 = arith.addf %33, %37 : vector<16x128xf32>
    %39 = vector.extract_strided_slice %4 {offsets = [0, 0, 1, 0], sizes = [1, 1, 16, 128], strides = [1, 1, 1, 1]} : vector<1x1x18x128xbf16> to vector<1x1x16x128xbf16>
    %40 = vector.shape_cast %39 : vector<1x1x16x128xbf16> to vector<16x128xbf16>
    %c896 = arith.constant 896 : index
    %c0_25 = arith.constant 0 : index
    %41 = vector.load %arg6[%c896, %c0_25] : memref<1152x128xbf16, #tpu.memory_space<vmem>>, vector<128x128xbf16>
    %cst_26 = arith.constant dense<0.000000e+00> : vector<16x128xf32>
    %42 = tpu.matmul %40, %41, %cst_26 {dimension_numbers = #tpu.dot_dimension_numbers<[1], [0], [0], [1], [0, 0, 1, 1], [], []>} : vector<16x128xbf16>, vector<128x128xbf16>, vector<16x128xf32> -> vector<16x128xf32>
    %43 = arith.addf %38, %42 : vector<16x128xf32>
    %44 = vector.extract_strided_slice %4 {offsets = [0, 0, 2, 0], sizes = [1, 1, 16, 128], strides = [1, 1, 1, 1]} : vector<1x1x18x128xbf16> to vector<1x1x16x128xbf16>
    %45 = vector.shape_cast %44 : vector<1x1x16x128xbf16> to vector<16x128xbf16>
    %c1024 = arith.constant 1024 : index
    %c0_27 = arith.constant 0 : index
    %46 = vector.load %arg6[%c1024, %c0_27] : memref<1152x128xbf16, #tpu.memory_space<vmem>>, vector<128x128xbf16>
    %cst_28 = arith.constant dense<0.000000e+00> : vector<16x128xf32>
    %47 = tpu.matmul %45, %46, %cst_28 {dimension_numbers = #tpu.dot_dimension_numbers<[1], [0], [0], [1], [0, 0, 1, 1], [], []>} : vector<16x128xbf16>, vector<128x128xbf16>, vector<16x128xf32> -> vector<16x128xf32>
    %48 = arith.addf %43, %47 : vector<16x128xf32>
    %c0_29 = arith.constant 0 : index
    %c0_30 = arith.constant 0 : index
    %49 = vector.load %arg7[%c0_29, %c0_30] : memref<1x128xf32, #tpu.memory_space<vmem>>, vector<1x128xf32>
    %50 = vector.broadcast %49 : vector<1x128xf32> to vector<16x128xf32>
    %51 = arith.addf %48, %50 : vector<16x128xf32>
    %cst_31 = arith.constant 0.000000e+00 : f32
    %52 = vector.broadcast %cst_31 : f32 to vector<16x128xf32>
    %53 = arith.maximumf %51, %52 : vector<16x128xf32>
    %c0_32 = arith.constant 0 : index
    %c0_33 = arith.constant 0 : index
    %54 = vector.load %arg8[%c0_32, %c0_33] : memref<1x128xf32, #tpu.memory_space<vmem>>, vector<1x128xf32>
    %cst_34 = arith.constant dense<0.000000e+00> : vector<1x16xf32>
    %55 = tpu.matmul %54, %53, %cst_34 {dimension_numbers = #tpu.dot_dimension_numbers<[1], [1], [0], [0], [0, 0, 1, 0], [], []>} : vector<1x128xf32>, vector<16x128xf32>, vector<1x16xf32> -> vector<1x16xf32>
    %c0_35 = arith.constant 0 : index
    %c0_36 = arith.constant 0 : index
    %56 = vector.load %arg9[%c0_35, %c0_36] : memref<1x1xf32, #tpu.memory_space<vmem>>, vector<1x1xf32>
    %57 = vector.broadcast %56 : vector<1x1xf32> to vector<1x16xf32>
    %58 = arith.addf %55, %57 : vector<1x16xf32>
    %cst_37 = arith.constant 0.000000e+00 : f32
    %59 = vector.broadcast %cst_37 : f32 to vector<1x16xf32>
    %60 = arith.maximumf %58, %59 : vector<1x16xf32>
    %61 = vector.broadcast %1 : f32 to vector<1x16xf32>
    %62 = arith.mulf %60, %61 : vector<1x16xf32>
    %cst_38 = arith.constant 9.99999974E-5 : f32
    %cst_39 = arith.constant 1.000000e+04 : f32
    %63 = vector.broadcast %cst_38 : f32 to vector<1x16xf32>
    %64 = arith.maximumf %63, %62 : vector<1x16xf32>
    %65 = vector.broadcast %cst_39 : f32 to vector<1x16xf32>
    %66 = arith.minimumf %65, %64 : vector<1x16xf32>
    %cst_40 = arith.constant 1.000000e+00 : f32
    %67 = vector.broadcast %cst_40 : f32 to vector<1x16xf32>
    %68 = arith.divf %67, %66 : vector<1x16xf32>
    %69 = vector.shape_cast %68 : vector<1x16xf32> to vector<1x1x1x16xf32>
    %c0_41 = arith.constant 0 : index
    %c0_42 = arith.constant 0 : index
    %c0_43 = arith.constant 0 : index
    %c0_44 = arith.constant 0 : index
    %70 = vector.load %arg10[%c0_41, %c0_42, %c0_43, %c0_44] : memref<1x1x1x16xf32, #tpu.memory_space<vmem>>, vector<1x1x1x16xf32>
    tpu.vector_store %arg10[%c0_41, %c0_42, %c0_43, %c0_44], %69 {strides = array<i32>} : memref<1x1x1x16xf32, #tpu.memory_space<vmem>>, vector<1x1x1x16xf32>,
    return
  }
  func.func @transform_0(%arg0: i32, %arg1: i32) -> i32 {
    %c0_i32 = arith.constant 0 : i32
    %c0_i32_0 = arith.constant 0 : i32
    return %c0_i32 : i32
  }
  func.func @transform_1(%arg0: i32, %arg1: i32) -> (i32, i32, i32, i32) {
    %c0_i32 = arith.constant 0 : i32
    %0 = arith.addi %arg1, %c0_i32 : i32
    %c0_i32_0 = arith.constant 0 : i32
    %c0_i32_1 = arith.constant 0 : i32
    %c0_i32_2 = arith.constant 0 : i32
    return %arg0, %0, %c0_i32_0, %c0_i32_1 : i32, i32, i32, i32
  }
  func.func @transform_2(%arg0: i32, %arg1: i32) -> (i32, i32, i32, i32) {
    %c1_i32 = arith.constant 1 : i32
    %0 = arith.addi %arg1, %c1_i32 : i32
    %c0_i32 = arith.constant 0 : i32
    %c0_i32_0 = arith.constant 0 : i32
    %c0_i32_1 = arith.constant 0 : i32
    return %arg0, %0, %c0_i32, %c0_i32_0 : i32, i32, i32, i32
  }
  func.func @transform_3(%arg0: i32, %arg1: i32) -> (i32, i32, i32, i32) {
    %c2_i32 = arith.constant 2 : i32
    %0 = arith.addi %arg1, %c2_i32 : i32
    %c0_i32 = arith.constant 0 : i32
    %c0_i32_0 = arith.constant 0 : i32
    %c0_i32_1 = arith.constant 0 : i32
    return %arg0, %0, %c0_i32, %c0_i32_0 : i32, i32, i32, i32
  }
  func.func @transform_4(%arg0: i32, %arg1: i32) -> (i32, i32) {
    %c0_i32 = arith.constant 0 : i32
    %c0_i32_0 = arith.constant 0 : i32
    %c0_i32_1 = arith.constant 0 : i32
    return %c0_i32, %c0_i32_0 : i32, i32
  }
  func.func @transform_5(%arg0: i32, %arg1: i32) -> (i32, i32) {
    %c0_i32 = arith.constant 0 : i32
    %c0_i32_0 = arith.constant 0 : i32
    %c0_i32_1 = arith.constant 0 : i32
    return %c0_i32, %c0_i32_0 : i32, i32
  }
  func.func @transform_6(%arg0: i32, %arg1: i32) -> (i32, i32) {
    %c0_i32 = arith.constant 0 : i32
    %c0_i32_0 = arith.constant 0 : i32
    %c0_i32_1 = arith.constant 0 : i32
    return %c0_i32, %c0_i32_0 : i32, i32
  }
  func.func @transform_7(%arg0: i32, %arg1: i32) -> (i32, i32) {
    %c0_i32 = arith.constant 0 : i32
    %c0_i32_0 = arith.constant 0 : i32
    %c0_i32_1 = arith.constant 0 : i32
    return %c0_i32, %c0_i32_0 : i32, i32
  }
  func.func @transform_8(%arg0: i32, %arg1: i32) -> (i32, i32, i32, i32) {
    %c0_i32 = arith.constant 0 : i32
    %c0_i32_0 = arith.constant 0 : i32
    %c0_i32_1 = arith.constant 0 : i32
    return %arg0, %arg1, %c0_i32, %c0_i32_0 : i32, i32, i32, i32
  }
}

</mosaic_0001>

<bundles_post_ra>
// kernel: tile.13
= control target key start
LH: loop header
LB: loop body
LE: loop exit
PB: predicated region body
PF: predicated region fallthrough
CT: control target
= control target key end

     0   :  { %s22_s0 = inlined_call_operand.vmem [shape: f32[128], index: 0, kind: input, shape index: {}]   ;;  %s23_s1 = inlined_call_operand.vmem [shape: f32[4,128], index: 1, kind: output, shape index: {}]  }
   0x1   :  { %v4_v0 = vld [vmem:[%s22_s0] ss:$0 sm:$0xff] }
   0x2   :  { %5 = vst [vmem:[%s23_s1] sm:$0xf] %v4_v0 }

// kernel: depth_pro_scaled.10
= control target key start
LH: loop header
LB: loop body
LE: loop exit
PB: predicated region body
PF: predicated region fallthrough
CT: control target
= control target key end

     0   :  { %s541_s12 = smov 0   ;;  %s574_s0 = inlined_call_operand.vmem [shape: bf16[128,27], index: 0, kind: input, shape index: {}]   ;;  %s575_s1 = inlined_call_operand.vmem [shape: bf16[27,128], index: 1, kind: input, shape index: {}]   ;;  %s576_s2 = inlined_call_operand.vmem [shape: f32[1,128], index: 2, kind: input, shape index: {}]   ;;  %s577_s3 = inlined_call_operand.vmem [shape: bf16[128,128], index: 3, kind: output, shape index: {}]  }
   0x1 LB: > { %s414_s13 = sadd.s32 4294967295, %s518_s12   ;;  %p418_p0 = scmp.ge.s32.totalorder %s518_s12, 1  ;;  %s518_s12 = sphi %s541_s12, %s13_s12  }
   0x2   : > { %p138_p1 = scmp.lt.s32.totalorder %s518_s12, 3 }
   0x4   : > { %p139_p2 = pnand %p418_p0, %p138_p1 }
   0x5   : > { %s419_s16 = sshll.u32 (!%p139_p2), %s414_s13, 3 }
   0x6   : > { %142 = sbr.rel (%p139_p2) target bundleno = 230 (0xe6), region = 32  ;;  %p163_p3 = scmp.lt.s32.totalorder (!%p139_p2), %s419_s16, 15 }
   0xb   : > { %v506_v0 = vld [vmem:[%s575_s1 + $0x8] sm:$0x3f]   ;;  %vm238_vm0 = vcmask 1044480   ;;  %vm239_vm1 = vcmask 1045504   ;;  %v520_v1 = vmov 65535   ;;  %v507_v5 = vld [vmem:[%s575_s1] sm:$0xff]  }
   0xc   : > { %v240_v2 = vsel %vm238_vm0, 4294967295, %v520_v1  ;;  %s579_s16 = smov (!%p163_p3, %s419_s16), 15  ;;  %vm225_vm2 = vcmask 220160   ;;  %v423_v10 = vld [vmem:[%s576_s2] ss:$0 sm:$0xff] }
   0xd   : > { %v241_v3 = vsel %vm239_vm1, %v240_v2, 0  ;;  %s420_s19 = sshll.u32 %s579_s16, 2 }
   0xe   : > { %v243_v4 = vand.u32 %v506_v0, %v241_v3  ;;  %s166_s22 = scalar_lea.vmem %s574_s0, %s420_s19  ;;  %s172_s27 = scalar_lea.vmem %s577_s3, %s420_s19 }
   0xf   : > { %v508_v6 = vld [vmem:[%s166_s22] sm:$0xff]   ;;  %v509_v7 = vld [vmem:[%s166_s22 + $0x10] sm:$0xff]   ;;  %v510_v8 = vld [vmem:[%s166_s22 + $0x8] sm:$0xff]  }
  0x10   : > { %481 = vmatprep.subr.bf16.mxu0 %v243_v4  ;;  %493 = vmatprep.subr.bf16.mxu1 %v243_v4  ;;  %v511_v9 = vld [vmem:[%s166_s22 + $0x18] sm:$0xff]  }
  0x11   : > { %482 = vmatpush3.bf16.msra.mxu0 %v243_v4  ;;  %495 = vmatpush3.bf16.msra.mxu1 %v243_v4 }
  0x12   : > { %483 = vmatprep.subr.bf16.mxu0 %v507_v5  ;;  %494 = vmatprep.subr.bf16.mxu1 %v507_v5 }
  0x13   : > { %485 = vmatprep.mubr.msk.bf16.mxu0 %vm225_vm2, %v508_v6  ;;  %489 = vmatprep.mubr.msk.bf16.mxu1 %vm225_vm2, %v509_v7 }
  0x15   : > { %484 = vmatpush3.bf16.msra.mxu0 %v507_v5  ;;  %496 = vmatpush3.bf16.msra.mxu1 %v507_v5 }
  0x18   : > { %486 = vmatmul.mubr.msk.bf16.vlgmr.msra.gmra.mxu0 %vm225_vm2, %v510_v8  ;;  %490 = vmatmul.mubr.msk.bf16.vlgmr.msra.gmra.mxu1 %vm225_vm2, %v511_v9 }
  0xd8   : > { %v487_v11 = vpop.f32.mrf.mxu0  ;;  %v491_v12 = vpop.f32.mrf.mxu1 }
  0xd9   : > { %v288_v13 = vadd.f32 %v487_v11, %v423_v10  ;;  %v304_v14 = vadd.f32 %v491_v12, %v423_v10 }
  0xda   : > { %v279_v15 = vpop.f32.mrf.mxu0  ;;  %v295_v16 = vpop.f32.mrf.mxu1 }
  0xdb   : > { %v280_v17 = vadd.f32 %v423_v10, %v279_v15  ;;  %v296_v18 = vadd.f32 %v423_v10, %v295_v16  ;;  %v312_v23 = vmax.f32 %v288_v13, 0.0  ;;  %v316_v24 = vmax.f32 %v304_v14, 0.0 }
  0xdc   : > { %v488_v19 = vpop.f32.mrf.mxu0  ;;  %v492_v20 = vpop.f32.mrf.mxu1 }
  0xdd   : > { %v291_v21 = vadd.f32 %v488_v19, %v423_v10  ;;  %v307_v22 = vadd.f32 %v492_v20, %v423_v10  ;;  %v310_v31 = vmax.f32 %v280_v17, 0.0  ;;  %v314_v32 = vmax.f32 %v296_v18, 0.0 }
  0xde   : > { %v282_v25 = vpop.f32.mrf.mxu0  ;;  %v298_v26 = vpop.f32.mrf.mxu1 }
  0xdf   : > { %v313_v27 = vmax.f32 %v291_v21, 0.0  ;;  %v317_v28 = vmax.f32 %v307_v22, 0.0  ;;  %v283_v29 = vadd.f32 %v423_v10, %v282_v25  ;;  %v299_v30 = vadd.f32 %v423_v10, %v298_v26 }
  0xe1   : > { %v460_v33 = vpack.c.bf16 %v313_v27, %v312_v23  ;;  %v470_v34 = vpack.c.bf16 %v317_v28, %v316_v24  ;;  %v311_v35 = vmax.f32 %v283_v29, 0.0  ;;  %v315_v36 = vmax.f32 %v299_v30, 0.0 }
  0xe3   : > { %472 = vst [vmem:[%s172_s27 + $0x8] sm:$0xff] %v460_v33   ;;  %474 = vst [vmem:[%s172_s27 + $0x18] sm:$0xff] %v470_v34   ;;  %v455_v37 = vpack.c.bf16 %v311_v35, %v310_v31  ;;  %v465_v38 = vpack.c.bf16 %v315_v36, %v314_v32 }
  0xe5   : > { %456 = vst [vmem:[%s172_s27] sm:$0xff] %v455_v37   ;;  %473 = vst [vmem:[%s172_s27 + $0x10] sm:$0xff] %v465_v38  }
  0xe6 PF: > { %s13_s12 = sadd.s32 1, %s518_s12  }
  0xe7   : > { %p10_p4 = scmp.ge.s32.totalorder %s13_s12, 4  }
  0xe9   :  { %12 = sbr.rel (!%p10_p4) target bundleno = 1 (0x1), region = 62 }

// kernel: depth_pro_scaled.12
= control target key start
LH: loop header
LB: loop body
LE: loop exit
PB: predicated region body
PF: predicated region fallthrough
CT: control target
= control target key end

     0   :  { %s550_s12 = smov 0   ;;  %s622_s0 = inlined_call_operand.vmem [shape: bf16[32,256], index: 0, kind: input, shape index: {}]   ;;  %s623_s1 = inlined_call_operand.vmem [shape: bf16[256,128], index: 1, kind: input, shape index: {}]   ;;  %s624_s2 = inlined_call_operand.vmem [shape: f32[1,128], index: 2, kind: input, shape index: {}]   ;;  %s625_s3 = inlined_call_operand.vmem [shape: bf16[32,128], index: 3, kind: output, shape index: {}]  }
   0x1 LB: > { %s432_s13 = sadd.s32 4294967295, %s528_s12   ;;  %p436_p0 = scmp.ge.s32.totalorder %s528_s12, 1  ;;  %s528_s12 = sphi %s550_s12, %s13_s12  }
   0x2   : > { %p139_p1 = scmp.lt.s32.totalorder %s528_s12, 3 }
   0x4   : > { %p140_p2 = pnand %p436_p0, %p139_p1 }
   0x5   : > { %s437_s16 = sshll.u32 (!%p140_p2), %s432_s13, 1 }
   0x6   : > { %143 = sbr.rel (%p140_p2) target bundleno = 250 (0xfa), region = 32  ;;  %p165_p3 = scmp.lt.s32.totalorder (!%p140_p2), %s437_s16, 3 }
   0xb   : > { %v503_v0 = vld [vmem:[%s623_s1 + $0x78] sm:$0xff]   ;;  %v505_v2 = vld [vmem:[%s623_s1 + $0x70] sm:$0xff]   ;;  %v507_v4 = vld [vmem:[%s623_s1 + $0x68] sm:$0xff]   ;;  %s627_s16 = smov (!%p165_p3, %s437_s16), 3 }
   0xc   : > { %v504_v1 = vld [vmem:[%s623_s1 + $0x38] sm:$0xff]   ;;  %473 = vmatprep.subr.bf16.mxu0 %v503_v0  ;;  %v506_v3 = vld [vmem:[%s623_s1 + $0x30] sm:$0xff]   ;;  %v508_v5 = vld [vmem:[%s623_s1 + $0x28] sm:$0xff]   ;;  %s465_s4 = sshll.u32 %s627_s16, 3  ;;  %s441_s28 = sshll.u32 %s627_s16, 2 }
   0xd   : > { %474 = vmatpush3.bf16.msra.mxu0 %v504_v1  ;;  %v509_v6 = vld [vmem:[%s623_s1 + $0x60] sm:$0xff]   ;;  %v511_v8 = vld [vmem:[%s623_s1 + $0x58] sm:$0xff]   ;;  %s169_s9 = scalar_lea.vmem %s622_s0, %s465_s4  ;;  %v513_v10 = vld [vmem:[%s623_s1 + $0x50] sm:$0xff]   ;;  %s175_s4 = scalar_lea.vmem %s625_s3, %s441_s28 }
   0xe   : > { %475 = vmatprep.subr.bf16.mxu0 %v505_v2  ;;  %v510_v7 = vld [vmem:[%s623_s1 + $0x20] sm:$0xff]   ;;  %v512_v9 = vld [vmem:[%s623_s1 + $0x18] sm:$0xff]   ;;  %v514_v12 = vld [vmem:[%s623_s1 + $0x10] sm:$0xff]  }
   0xf   : > { %v521_v11 = vld [vmem:[%s169_s9 + $0x4] ss:$8 sps:$4 sm:$0xff]   ;;  %v519_v17 = vld [vmem:[%s169_s9] ss:$8 sps:$4 sm:$0xff]  }
  0x10   : > { %357 = vmatprep.mubr.bf16.mxu0 %v521_v11  ;;  %v515_v13 = vld [vmem:[%s623_s1 + $0x48] sm:$0xff]   ;;  %v517_v15 = vld [vmem:[%s623_s1 + $0x40] sm:$0xff]  }
  0x11   : > { %476 = vmatpush3.bf16.msra.mxu0 %v506_v3  ;;  %v516_v14 = vld [vmem:[%s623_s1 + $0x8] sm:$0xff]   ;;  %v518_v16 = vld [vmem:[%s623_s1] sm:$0xff]  }
  0x12   : > { %477 = vmatprep.subr.bf16.mxu0 %v507_v4  ;;  %v442_v22 = vld [vmem:[%s624_s2] ss:$0 sm:$0xff] }
  0x15   : > { %478 = vmatpush3.bf16.msra.mxu0 %v508_v5 }
  0x16   : > { %479 = vmatprep.subr.bf16.mxu0 %v509_v6 }
  0x19   : > { %480 = vmatpush3.bf16.msra.mxu0 %v510_v7 }
  0x1a   : > { %481 = vmatprep.subr.bf16.mxu0 %v511_v8 }
  0x1d   : > { %482 = vmatpush3.bf16.msra.mxu0 %v512_v9 }
  0x1e   : > { %483 = vmatprep.subr.bf16.mxu0 %v513_v10 }
  0x21   : > { %484 = vmatpush3.bf16.msra.mxu0 %v514_v12 }
  0x22   : > { %485 = vmatprep.subr.bf16.mxu0 %v515_v13 }
  0x25   : > { %486 = vmatpush3.bf16.msra.mxu0 %v516_v14 }
  0x26   : > { %487 = vmatprep.subr.bf16.mxu0 %v517_v15 }
  0x29   : > { %488 = vmatpush3.bf16.msra.mxu0 %v518_v16 }
  0x2c   : > { %358 = vmatmul.mubr.bf16.vlgmr.msra.gmra.mxu0 %v519_v17 }
  0xec   : > { %v489_v18 = vpop.f32.mrf.mxu0 }
  0xee   : > { %v490_v19 = vpop.f32.mrf.mxu0 }
  0xef   : > { %v491_v21 = vadd.f32 %v490_v19, %v489_v18 }
  0xf0   : > { %v492_v20 = vpop.f32.mrf.mxu0 }
  0xf1   : > { %v360_v25 = vadd.f32 %v491_v21, %v442_v22 }
  0xf2   : > { %v493_v23 = vpop.f32.mrf.mxu0 }
  0xf3   : > { %v494_v24 = vadd.f32 %v493_v23, %v492_v20 }
  0xf5   : > { %v363_v26 = vadd.f32 %v494_v24, %v442_v22 }
  0xf7   : > { %v471_v27 = vpack.c.bf16 %v363_v26, %v360_v25 }
  0xf9   : > { %472 = vst [vmem:[%s175_s4] sm:$0xff] %v471_v27  }
  0xfa PF: > { %s13_s12 = sadd.s32 1, %s528_s12  }
  0xfb   : > { %p10_p4 = scmp.ge.s32.totalorder %s13_s12, 4  }
  0xfd   :  { %12 = sbr.rel (!%p10_p4) target bundleno = 1 (0x1), region = 62 }

// kernel: depth_pro_scaled.13
= control target key start
LH: loop header
LB: loop body
LE: loop exit
PB: predicated region body
PF: predicated region fallthrough
CT: control target
= control target key end

     0   :  { %s684_s12 = smov 0   ;;  %s804_s0 = inlined_call_operand.vmem [shape: bf16[32,128], index: 0, kind: input, shape index: {}]   ;;  %s805_s1 = inlined_call_operand.vmem [shape: bf16[128,512], index: 1, kind: input, shape index: {}]   ;;  %s806_s2 = inlined_call_operand.vmem [shape: f32[1,512], index: 2, kind: input, shape index: {}]   ;;  %s807_s3 = inlined_call_operand.vmem [shape: f32[32,512], index: 3, kind: output, shape index: {}]  }
   0x1 LB: > { %s551_s13 = sadd.s32 4294967295, %s661_s12   ;;  %p555_p0 = scmp.ge.s32.totalorder %s661_s12, 1  ;;  %s661_s12 = sphi %s684_s12, %s13_s12  }
   0x2   : > { %p138_p1 = scmp.lt.s32.totalorder %s661_s12, 3 }
   0x4   : > { %p139_p2 = pnand %p555_p0, %p138_p1 }
   0x5   : > { %s556_s5 = sshll.u32 (!%p139_p2), %s551_s13, 1 }
   0x6   : > { %142 = sbr.rel (%p139_p2) target bundleno = 247 (0xf7), region = 32  ;;  %p164_p3 = scmp.lt.s32.totalorder (!%p139_p2), %s556_s5, 3 }
   0xb   : > { %v606_v0 = vld [vmem:[%s805_s1 + $0xe4] ss:$16 sps:$4 sm:$0xff]   ;;  %v608_v1 = vld [vmem:[%s805_s1 + $0xec] ss:$16 sps:$4 sm:$0xff]   ;;  %v663_v2 = vmov 0   ;;  %s809_s5 = smov (!%p164_p3, %s556_s5), 3  ;;  %v213_v34 = vlaneseq }
   0xc   : > { %431 = vmatprep.mubr.bf16.mxu0 %v663_v2  ;;  %474 = vmatprep.mubr.bf16.mxu1 %v663_v2  ;;  %v610_v3 = vld [vmem:[%s805_s1 + $0xe0] ss:$16 sps:$4 sm:$0xff]   ;;  %v611_v4 = vld [vmem:[%s805_s1 + $0xe8] ss:$16 sps:$4 sm:$0xff]   ;;  %v612_v5 = vld [vmem:[%s805_s1 + $0xc4] ss:$16 sps:$4 sm:$0xff]  }
   0xd   : > { %399 = vmatprep.subr.bf16.mxu0 %v606_v0  ;;  %442 = vmatprep.subr.bf16.mxu1 %v608_v1  ;;  %v614_v6 = vld [vmem:[%s805_s1 + $0xcc] ss:$16 sps:$4 sm:$0xff]   ;;  %v616_v7 = vld [vmem:[%s805_s1 + $0xc0] ss:$16 sps:$4 sm:$0xff]   ;;  %v617_v8 = vld [vmem:[%s805_s1 + $0xc8] ss:$16 sps:$4 sm:$0xff]  }
   0xe   : > { %400 = vmatpush1.bf16.msra.mxu0 %v610_v3  ;;  %443 = vmatpush1.bf16.msra.mxu1 %v611_v4  ;;  %v618_v9 = vld [vmem:[%s805_s1 + $0xa4] ss:$16 sps:$4 sm:$0xff]   ;;  %v620_v10 = vld [vmem:[%s805_s1 + $0xac] ss:$16 sps:$4 sm:$0xff]   ;;  %v622_v11 = vld [vmem:[%s805_s1 + $0xa0] ss:$16 sps:$4 sm:$0xff]  }
   0xf   : > { %401 = vmatprep.subr.bf16.mxu0 %v612_v5  ;;  %444 = vmatprep.subr.bf16.mxu1 %v614_v6  ;;  %v623_v12 = vld [vmem:[%s805_s1 + $0xa8] ss:$16 sps:$4 sm:$0xff]   ;;  %v624_v13 = vld [vmem:[%s805_s1 + $0x84] ss:$16 sps:$4 sm:$0xff]   ;;  %v626_v14 = vld [vmem:[%s805_s1 + $0x8c] ss:$16 sps:$4 sm:$0xff]  }
  0x10   : > { %v628_v15 = vld [vmem:[%s805_s1 + $0x80] ss:$16 sps:$4 sm:$0xff]   ;;  %v629_v16 = vld [vmem:[%s805_s1 + $0x88] ss:$16 sps:$4 sm:$0xff]   ;;  %v630_v17 = vld [vmem:[%s805_s1 + $0x64] ss:$16 sps:$4 sm:$0xff]  }
  0x11   : > { %v632_v18 = vld [vmem:[%s805_s1 + $0x6c] ss:$16 sps:$4 sm:$0xff]   ;;  %v634_v19 = vld [vmem:[%s805_s1 + $0x60] ss:$16 sps:$4 sm:$0xff]   ;;  %v635_v20 = vld [vmem:[%s805_s1 + $0x68] ss:$16 sps:$4 sm:$0xff]  }
  0x12   : > { %402 = vmatpush1.bf16.msra.mxu0 %v616_v7  ;;  %445 = vmatpush1.bf16.msra.mxu1 %v617_v8  ;;  %v636_v21 = vld [vmem:[%s805_s1 + $0x44] ss:$16 sps:$4 sm:$0xff]   ;;  %v638_v22 = vld [vmem:[%s805_s1 + $0x4c] ss:$16 sps:$4 sm:$0xff]   ;;  %s557_s7 = sshll.u32 %s809_s5, 2  ;;  %v214_v35 = vshrl.u32 %v213_v34, 7 }
  0x13   : > { %403 = vmatprep.subr.bf16.mxu0 %v618_v9  ;;  %446 = vmatprep.subr.bf16.mxu1 %v620_v10  ;;  %v640_v23 = vld [vmem:[%s805_s1 + $0x40] ss:$16 sps:$4 sm:$0xff]   ;;  %v641_v24 = vld [vmem:[%s805_s1 + $0x48] ss:$16 sps:$4 sm:$0xff]   ;;  %v642_v25 = vld [vmem:[%s805_s1 + $0x24] ss:$16 sps:$4 sm:$0xff]   ;;  %s167_s17 = scalar_lea.vmem %s804_s0, %s557_s7 }
  0x14   : > { %v644_v26 = vld [vmem:[%s805_s1 + $0x2c] ss:$16 sps:$4 sm:$0xff]   ;;  %v646_v27 = vld [vmem:[%s805_s1 + $0x20] ss:$16 sps:$4 sm:$0xff]   ;;  %v647_v28 = vld [vmem:[%s805_s1 + $0x28] ss:$16 sps:$4 sm:$0xff]  }
  0x15   : > { %v648_v29 = vld [vmem:[%s805_s1 + $0x4] ss:$16 sps:$4 sm:$0xff]   ;;  %v650_v30 = vld [vmem:[%s805_s1 + $0xc] ss:$16 sps:$4 sm:$0xff]   ;;  %v652_v31 = vld [vmem:[%s805_s1] ss:$16 sps:$4 sm:$0xff]  }
  0x16   : > { %404 = vmatpush1.bf16.msra.mxu0 %v622_v11  ;;  %447 = vmatpush1.bf16.msra.mxu1 %v623_v12  ;;  %v653_v32 = vld [vmem:[%s805_s1 + $0x8] ss:$16 sps:$4 sm:$0xff]   ;;  %v654_v33 = vld [vmem:[%s167_s17] sm:$0xff]   ;;  %v215_v36 = vsub.s32 0, %v214_v35  ;;  %v223_v37 = vsub.s32 2, %v214_v35  ;;  %v219_v39 = vsub.s32 1, %v214_v35 }
  0x17   : > { %405 = vmatprep.subr.bf16.mxu0 %v624_v13  ;;  %448 = vmatprep.subr.bf16.mxu1 %v626_v14  ;;  %v211_v38 = vld [vmem:[%s806_s2] sm:$0xf]  ;;  %v227_v40 = vsub.s32 3, %v214_v35  ;;  %s596_s8 = sshll.u32 %s809_s5, 5 }
  0x18   : > { %v216_v41 = vrot.slane %v211_v38, %v215_v36  ;;  %v224_v42 = vrot.slane %v211_v38, %v223_v37  ;;  %v220_v43 = vrot.slane %v211_v38, %v219_v39  ;;  %s174_s11 = scalar_lea.vmem %s807_s3, %s596_s8 }
  0x19   : > { %v228_v44 = vrot.slane %v211_v38, %v227_v40 }
  0x1a   : > { %406 = vmatpush1.bf16.msra.mxu0 %v628_v15  ;;  %449 = vmatpush1.bf16.msra.mxu1 %v629_v16 }
  0x1b   : > { %407 = vmatprep.subr.bf16.mxu0 %v630_v17  ;;  %450 = vmatprep.subr.bf16.mxu1 %v632_v18 }
  0x1e   : > { %408 = vmatpush1.bf16.msra.mxu0 %v634_v19  ;;  %451 = vmatpush1.bf16.msra.mxu1 %v635_v20 }
  0x1f   : > { %409 = vmatprep.subr.bf16.mxu0 %v636_v21  ;;  %452 = vmatprep.subr.bf16.mxu1 %v638_v22 }
  0x22   : > { %410 = vmatpush1.bf16.msra.mxu0 %v640_v23  ;;  %453 = vmatpush1.bf16.msra.mxu1 %v641_v24 }
  0x23   : > { %411 = vmatprep.subr.bf16.mxu0 %v642_v25  ;;  %454 = vmatprep.subr.bf16.mxu1 %v644_v26 }
  0x26   : > { %412 = vmatpush1.bf16.msra.mxu0 %v646_v27  ;;  %455 = vmatpush1.bf16.msra.mxu1 %v647_v28 }
  0x27   : > { %413 = vmatprep.subr.bf16.mxu0 %v648_v29  ;;  %456 = vmatprep.subr.bf16.mxu1 %v650_v30 }
  0x2a   : > { %414 = vmatpush1.bf16.msra.mxu0 %v652_v31  ;;  %457 = vmatpush1.bf16.msra.mxu1 %v653_v32 }
  0x2d   : > { %432 = vmatmul.mubr.bf16.vlgmr.msra.gmra.mxu0 %v654_v33  ;;  %475 = vmatmul.mubr.bf16.vlgmr.msra.gmra.mxu1 %v654_v33 }
  0xed   : > { %v433_v45 = vpop.f32.mrf.mxu0  ;;  %v476_v46 = vpop.f32.mrf.mxu1 }
  0xee   : > { %v434_v47 = vadd.f32 %v433_v45, %v216_v41  ;;  %v477_v48 = vadd.f32 %v476_v46, %v224_v42 }
  0xef   : > { %v435_v49 = vpop.f32.mrf.mxu0  ;;  %v478_v50 = vpop.f32.mrf.mxu1 }
  0xf0   : > { %485 = vst [vmem:[%s174_s11] sm:$0xff] %v434_v47  ;;  %487 = vst [vmem:[%s174_s11 + $0x10] sm:$0xff] %v477_v48  ;;  %v436_v51 = vadd.f32 %v435_v49, %v220_v43  ;;  %v479_v52 = vadd.f32 %v478_v50, %v228_v44 }
  0xf1   : > { %v437_v53 = vpop.f32.mrf.mxu0  ;;  %v480_v54 = vpop.f32.mrf.mxu1 }
  0xf2   : > { %486 = vst [vmem:[%s174_s11 + $0x8] sm:$0xff] %v436_v51  ;;  %488 = vst [vmem:[%s174_s11 + $0x18] sm:$0xff] %v479_v52  ;;  %v438_v55 = vadd.f32 %v437_v53, %v216_v41  ;;  %v481_v56 = vadd.f32 %v480_v54, %v224_v42 }
  0xf3   : > { %v439_v57 = vpop.f32.mrf.mxu0  ;;  %v482_v58 = vpop.f32.mrf.mxu1 }
  0xf4   : > { %489 = vst [vmem:[%s174_s11 + $0x20] sm:$0xff] %v438_v55  ;;  %491 = vst [vmem:[%s174_s11 + $0x30] sm:$0xff] %v481_v56  ;;  %v440_v59 = vadd.f32 %v439_v57, %v220_v43  ;;  %v483_v60 = vadd.f32 %v482_v58, %v228_v44 }
  0xf6   : > { %490 = vst [vmem:[%s174_s11 + $0x28] sm:$0xff] %v440_v59  ;;  %492 = vst [vmem:[%s174_s11 + $0x38] sm:$0xff] %v483_v60 }
  0xf7 PF: > { %s13_s12 = sadd.s32 1, %s661_s12  }
  0xf8   : > { %p10_p4 = scmp.ge.s32.totalorder %s13_s12, 4  }
  0xfa   :  { %12 = sbr.rel (!%p10_p4) target bundleno = 1 (0x1), region = 62 }

// kernel: depth_pro_scaled.11
= control target key start
LH: loop header
LB: loop body
LE: loop exit
PB: predicated region body
PF: predicated region fallthrough
CT: control target
= control target key end

     0   :  { %s1841_s12 = smov 0   ;;  %s2310_s0 = inlined_call_operand.vmem [shape: bf16[32,1152], index: 0, kind: input, shape index: {}]   ;;  %s2311_s1 = inlined_call_operand.vmem [shape: bf16[1152,256], index: 1, kind: input, shape index: {}]   ;;  %s2312_s2 = inlined_call_operand.vmem [shape: f32[1,256], index: 2, kind: input, shape index: {}]   ;;  %s2313_s3 = inlined_call_operand.vmem [shape: bf16[32,256], index: 3, kind: output, shape index: {}]  }
   0x1 LB: > { %s1403_s13 = sadd.s32 4294967295, %s1818_s12   ;;  %p1407_p0 = scmp.ge.s32.totalorder %s1818_s12, 1  ;;  %s1818_s12 = sphi %s1841_s12, %s13_s12  }
   0x2   : > { %p139_p1 = scmp.lt.s32.totalorder %s1818_s12, 3 }
   0x4   : > { %p140_p2 = pnand %p1407_p0, %p139_p1 }
   0x5   : > { %s1408_s22 = sshll.u32 (!%p140_p2), %s1403_s13, 1 }
   0x6   : > { %143 = sbr.rel (%p140_p2) target bundleno = 378 (0x17a), region = 32  ;;  %p166_p3 = scmp.lt.s32.totalorder (!%p140_p2), %s1408_s22, 3 }
   0xb   : > { %v1583_v0 = vld [vmem:[%s2311_s1 + $0x74] ss:$8 sps:$4 sm:$0xff]   ;;  %v1585_v1 = vld [vmem:[%s2311_s1 + $0x70] ss:$8 sps:$4 sm:$0xff]   ;;  %v1589_v4 = vld [vmem:[%s2311_s1 + $0x64] ss:$8 sps:$4 sm:$0xff]  }
   0xc   : > { %1112 = vmatprep.subr.bf16.mxu0 %v1583_v0  ;;  %v1586_v2 = vld [vmem:[%s2311_s1 + $0x174] ss:$8 sps:$4 sm:$0xff]   ;;  %v1588_v3 = vld [vmem:[%s2311_s1 + $0x170] ss:$8 sps:$4 sm:$0xff]   ;;  %v1591_v5 = vld [vmem:[%s2311_s1 + $0x60] ss:$8 sps:$4 sm:$0xff]  }
   0xd   : > { %1113 = vmatpush1.bf16.msra.mxu0 %v1585_v1  ;;  %1155 = vmatprep.subr.bf16.mxu1 %v1586_v2  ;;  %v1592_v6 = vld [vmem:[%s2311_s1 + $0x164] ss:$8 sps:$4 sm:$0xff]   ;;  %v1594_v7 = vld [vmem:[%s2311_s1 + $0x160] ss:$8 sps:$4 sm:$0xff]   ;;  %v1595_v8 = vld [vmem:[%s2311_s1 + $0x54] ss:$8 sps:$4 sm:$0xff]  }
   0xe   : > { %1156 = vmatpush1.bf16.msra.mxu1 %v1588_v3  ;;  %1114 = vmatprep.subr.bf16.mxu0 %v1589_v4  ;;  %v1597_v9 = vld [vmem:[%s2311_s1 + $0x50] ss:$8 sps:$4 sm:$0xff]   ;;  %v1598_v10 = vld [vmem:[%s2311_s1 + $0x154] ss:$8 sps:$4 sm:$0xff]   ;;  %v1601_v11 = vld [vmem:[%s2311_s1 + $0x44] ss:$8 sps:$4 sm:$0xff]  }
   0xf   : > { %1157 = vmatprep.subr.bf16.mxu1 %v1592_v6  ;;  %v1600_v12 = vld [vmem:[%s2311_s1 + $0x150] ss:$8 sps:$4 sm:$0xff]   ;;  %v1604_v13 = vld [vmem:[%s2311_s1 + $0x144] ss:$8 sps:$4 sm:$0xff]   ;;  %v1603_v14 = vld [vmem:[%s2311_s1 + $0x40] ss:$8 sps:$4 sm:$0xff]  }
  0x10   : > { %v1607_v15 = vld [vmem:[%s2311_s1 + $0x34] ss:$8 sps:$4 sm:$0xff]   ;;  %v1606_v16 = vld [vmem:[%s2311_s1 + $0x140] ss:$8 sps:$4 sm:$0xff]   ;;  %v1609_v18 = vld [vmem:[%s2311_s1 + $0x30] ss:$8 sps:$4 sm:$0xff]  }
  0x11   : > { %1115 = vmatpush1.bf16.msra.mxu0 %v1591_v5  ;;  %v1610_v17 = vld [vmem:[%s2311_s1 + $0x134] ss:$8 sps:$4 sm:$0xff]   ;;  %v1613_v19 = vld [vmem:[%s2311_s1 + $0x24] ss:$8 sps:$4 sm:$0xff]   ;;  %v1612_v20 = vld [vmem:[%s2311_s1 + $0x130] ss:$8 sps:$4 sm:$0xff]  }
  0x12   : > { %1116 = vmatprep.subr.bf16.mxu0 %v1595_v8  ;;  %1158 = vmatpush1.bf16.msra.mxu1 %v1594_v7  ;;  %v1616_v21 = vld [vmem:[%s2311_s1 + $0x124] ss:$8 sps:$4 sm:$0xff]   ;;  %v1615_v22 = vld [vmem:[%s2311_s1 + $0x20] ss:$8 sps:$4 sm:$0xff]   ;;  %v1619_v23 = vld [vmem:[%s2311_s1 + $0x14] ss:$8 sps:$4 sm:$0xff]  }
  0x13   : > { %1159 = vmatprep.subr.bf16.mxu1 %v1598_v10  ;;  %v1618_v24 = vld [vmem:[%s2311_s1 + $0x120] ss:$8 sps:$4 sm:$0xff]   ;;  %v1622_v25 = vld [vmem:[%s2311_s1 + $0x114] ss:$8 sps:$4 sm:$0xff]   ;;  %v1621_v26 = vld [vmem:[%s2311_s1 + $0x10] ss:$8 sps:$4 sm:$0xff]  }
  0x14   : > { %v1625_v27 = vld [vmem:[%s2311_s1 + $0x4] ss:$8 sps:$4 sm:$0xff]   ;;  %v1624_v28 = vld [vmem:[%s2311_s1 + $0x110] ss:$8 sps:$4 sm:$0xff]   ;;  %v1627_v30 = vld [vmem:[%s2311_s1] ss:$8 sps:$4 sm:$0xff]  }
  0x15   : > { %1117 = vmatpush1.bf16.msra.mxu0 %v1597_v9  ;;  %v1628_v29 = vld [vmem:[%s2311_s1 + $0x104] ss:$8 sps:$4 sm:$0xff]   ;;  %v1631_v31 = vld [vmem:[%s2311_s1 + $0xf4] ss:$8 sps:$4 sm:$0xff]   ;;  %v1630_v32 = vld [vmem:[%s2311_s1 + $0x100] ss:$8 sps:$4 sm:$0xff]  }
  0x16   : > { %1118 = vmatprep.subr.bf16.mxu0 %v1601_v11  ;;  %1160 = vmatpush1.bf16.msra.mxu1 %v1600_v12  ;;  %v1634_v33 = vld [vmem:[%s2311_s1 + $0x1f4] ss:$8 sps:$4 sm:$0xff]   ;;  %v1633_v34 = vld [vmem:[%s2311_s1 + $0xf0] ss:$8 sps:$4 sm:$0xff]   ;;  %v1637_v35 = vld [vmem:[%s2311_s1 + $0xe4] ss:$8 sps:$4 sm:$0xff]  }
  0x17   : > { %1161 = vmatprep.subr.bf16.mxu1 %v1604_v13  ;;  %s2315_s22 = smov (!%p166_p3, %s1408_s22), 3  ;;  %v1636_v36 = vld [vmem:[%s2311_s1 + $0x1f0] ss:$8 sps:$4 sm:$0xff]   ;;  %v1640_v37 = vld [vmem:[%s2311_s1 + $0x1e4] ss:$8 sps:$4 sm:$0xff]  }
  0x18   : > { %v1639_v38 = vld [vmem:[%s2311_s1 + $0xe0] ss:$8 sps:$4 sm:$0xff]   ;;  %v1643_v39 = vld [vmem:[%s2311_s1 + $0xd4] ss:$8 sps:$4 sm:$0xff]   ;;  %s1573_s19 = smul.u32 36, %s2315_s22 }
  0x19   : > { %1119 = vmatpush1.bf16.msra.mxu0 %v1603_v14  ;;  %v1642_v40 = vld [vmem:[%s2311_s1 + $0x1e0] ss:$8 sps:$4 sm:$0xff]   ;;  %v1646_v41 = vld [vmem:[%s2311_s1 + $0x1d4] ss:$8 sps:$4 sm:$0xff]   ;;  %v1645_v42 = vld [vmem:[%s2311_s1 + $0xd0] ss:$8 sps:$4 sm:$0xff]  }
  0x1a   : > { %1120 = vmatprep.subr.bf16.mxu0 %v1607_v15  ;;  %1162 = vmatpush1.bf16.msra.mxu1 %v1606_v16  ;;  %v1649_v43 = vld [vmem:[%s2311_s1 + $0xc4] ss:$8 sps:$4 sm:$0xff]   ;;  %s1989_s13 = scalar_lea.vmem %s2310_s0, %s1573_s19  ;;  %v1648_v44 = vld [vmem:[%s2311_s1 + $0x1d0] ss:$8 sps:$4 sm:$0xff]   ;;  %v1651_v46 = vld [vmem:[%s2311_s1 + $0xc0] ss:$8 sps:$4 sm:$0xff]  }
  0x1b   : > { %1163 = vmatprep.subr.bf16.mxu1 %v1610_v17  ;;  %v1652_v45 = vld [vmem:[%s2311_s1 + $0x1c4] ss:$8 sps:$4 sm:$0xff]   ;;  %v1655_v48 = vld [vmem:[%s2311_s1 + $0xb4] ss:$8 sps:$4 sm:$0xff]   ;;  %v1654_v49 = vld [vmem:[%s2311_s1 + $0x1c0] ss:$8 sps:$4 sm:$0xff]  }
  0x1c   : > { %v1680_v47 = vld [vmem:[%s1989_s13 + $0x4] ss:$36 sps:$4 sm:$0xff]   ;;  %v1658_v50 = vld [vmem:[%s2311_s1 + $0x1b4] ss:$8 sps:$4 sm:$0xff]   ;;  %v1687_v51 = vld [vmem:[%s1989_s13 + $0xc] ss:$36 sps:$4 sm:$0xff]  }
  0x1d   : > { %1121 = vmatpush1.bf16.msra.mxu0 %v1609_v18  ;;  %1144 = vmatprep.mubr.bf16.mxu0 %v1680_v47  ;;  %v1657_v52 = vld [vmem:[%s2311_s1 + $0xb0] ss:$8 sps:$4 sm:$0xff]   ;;  %v1661_v53 = vld [vmem:[%s2311_s1 + $0xa4] ss:$8 sps:$4 sm:$0xff]   ;;  %v1663_v56 = vld [vmem:[%s2311_s1 + $0xa0] ss:$8 sps:$4 sm:$0xff]  }
  0x1e   : > { %1122 = vmatprep.subr.bf16.mxu0 %v1613_v19  ;;  %1164 = vmatpush1.bf16.msra.mxu1 %v1612_v20  ;;  %v1660_v54 = vld [vmem:[%s2311_s1 + $0x1b0] ss:$8 sps:$4 sm:$0xff]   ;;  %v1664_v55 = vld [vmem:[%s2311_s1 + $0x1a4] ss:$8 sps:$4 sm:$0xff]   ;;  %v1667_v57 = vld [vmem:[%s2311_s1 + $0x94] ss:$8 sps:$4 sm:$0xff]  }
  0x1f   : > { %1165 = vmatprep.subr.bf16.mxu1 %v1616_v21  ;;  %1187 = vmatprep.mubr.bf16.mxu1 %v1687_v51  ;;  %v1666_v58 = vld [vmem:[%s2311_s1 + $0x1a0] ss:$8 sps:$4 sm:$0xff]   ;;  %v1670_v59 = vld [vmem:[%s2311_s1 + $0x194] ss:$8 sps:$4 sm:$0xff]   ;;  %v1669_v60 = vld [vmem:[%s2311_s1 + $0x90] ss:$8 sps:$4 sm:$0xff]  }
  0x20   : > { %v1673_v61 = vld [vmem:[%s2311_s1 + $0x84] ss:$8 sps:$4 sm:$0xff]   ;;  %v1672_v62 = vld [vmem:[%s2311_s1 + $0x190] ss:$8 sps:$4 sm:$0xff]   ;;  %v1675_v0 = vld [vmem:[%s2311_s1 + $0x80] ss:$8 sps:$4 sm:$0xff]  }
  0x21   : > { %1123 = vmatpush1.bf16.msra.mxu0 %v1615_v22  ;;  %v1676_v63 = vld [vmem:[%s2311_s1 + $0x184] ss:$8 sps:$4 sm:$0xff]   ;;  %v1684_v1 = vld [vmem:[%s2311_s1 + $0x274] ss:$8 sps:$4 sm:$0xff]   ;;  %v1681_v2 = vld [vmem:[%s2311_s1 + $0x180] ss:$8 sps:$4 sm:$0xff]  }
  0x22   : > { %1124 = vmatprep.subr.bf16.mxu0 %v1619_v23  ;;  %1166 = vmatpush1.bf16.msra.mxu1 %v1618_v24  ;;  %v1678_v3 = vld [vmem:[%s1989_s13] ss:$36 sps:$4 sm:$0xff]   ;;  %v1690_v4 = vld [vmem:[%s2311_s1 + $0x374] ss:$8 sps:$4 sm:$0xff]   ;;  %v1682_v5 = vld [vmem:[%s2311_s1 + $0x270] ss:$8 sps:$4 sm:$0xff]  }
  0x23   : > { %1167 = vmatprep.subr.bf16.mxu1 %v1622_v25  ;;  %v1685_v6 = vld [vmem:[%s1989_s13 + $0x8] ss:$36 sps:$4 sm:$0xff]   ;;  %v1688_v8 = vld [vmem:[%s2311_s1 + $0x370] ss:$8 sps:$4 sm:$0xff]   ;;  %v1699_v11 = vld [vmem:[%s2311_s1 + $0x254] ss:$8 sps:$4 sm:$0xff]  }
  0x24   : > { %v1693_v7 = vld [vmem:[%s2311_s1 + $0x264] ss:$8 sps:$4 sm:$0xff]   ;;  %v1691_v10 = vld [vmem:[%s2311_s1 + $0x260] ss:$8 sps:$4 sm:$0xff]   ;;  %v1702_v13 = vld [vmem:[%s2311_s1 + $0x354] ss:$8 sps:$4 sm:$0xff]  }
  0x25   : > { %1125 = vmatpush1.bf16.msra.mxu0 %v1621_v26  ;;  %v1696_v9 = vld [vmem:[%s2311_s1 + $0x364] ss:$8 sps:$4 sm:$0xff]   ;;  %v1694_v12 = vld [vmem:[%s2311_s1 + $0x360] ss:$8 sps:$4 sm:$0xff]   ;;  %v1697_v14 = vld [vmem:[%s2311_s1 + $0x250] ss:$8 sps:$4 sm:$0xff]  }
  0x26   : > { %1126 = vmatprep.subr.bf16.mxu0 %v1625_v27  ;;  %1168 = vmatpush1.bf16.msra.mxu1 %v1624_v28  ;;  %v1705_v15 = vld [vmem:[%s2311_s1 + $0x244] ss:$8 sps:$4 sm:$0xff]   ;;  %v1700_v16 = vld [vmem:[%s2311_s1 + $0x350] ss:$8 sps:$4 sm:$0xff]   ;;  %v1703_v18 = vld [vmem:[%s2311_s1 + $0x240] ss:$8 sps:$4 sm:$0xff]  }
  0x27   : > { %1169 = vmatprep.subr.bf16.mxu1 %v1628_v29  ;;  %v1708_v17 = vld [vmem:[%s2311_s1 + $0x344] ss:$8 sps:$4 sm:$0xff]   ;;  %v1711_v19 = vld [vmem:[%s2311_s1 + $0x234] ss:$8 sps:$4 sm:$0xff]   ;;  %v1706_v20 = vld [vmem:[%s2311_s1 + $0x340] ss:$8 sps:$4 sm:$0xff]  }
  0x28   : > { %v1714_v21 = vld [vmem:[%s2311_s1 + $0x334] ss:$8 sps:$4 sm:$0xff]   ;;  %v1709_v22 = vld [vmem:[%s2311_s1 + $0x230] ss:$8 sps:$4 sm:$0xff]   ;;  %v1717_v23 = vld [vmem:[%s2311_s1 + $0x224] ss:$8 sps:$4 sm:$0xff]  }
  0x29   : > { %1127 = vmatpush1.bf16.msra.mxu0 %v1627_v30  ;;  %v1712_v24 = vld [vmem:[%s2311_s1 + $0x330] ss:$8 sps:$4 sm:$0xff]   ;;  %v1720_v25 = vld [vmem:[%s2311_s1 + $0x324] ss:$8 sps:$4 sm:$0xff]   ;;  %v1715_v26 = vld [vmem:[%s2311_s1 + $0x220] ss:$8 sps:$4 sm:$0xff]  }
  0x2a   : > { %1128 = vmatprep.subr.bf16.mxu0 %v1631_v31  ;;  %1170 = vmatpush1.bf16.msra.mxu1 %v1630_v32  ;;  %v1723_v27 = vld [vmem:[%s2311_s1 + $0x214] ss:$8 sps:$4 sm:$0xff]   ;;  %v1718_v28 = vld [vmem:[%s2311_s1 + $0x320] ss:$8 sps:$4 sm:$0xff]   ;;  %v1721_v30 = vld [vmem:[%s2311_s1 + $0x210] ss:$8 sps:$4 sm:$0xff]  }
  0x2b   : > { %1171 = vmatprep.subr.bf16.mxu1 %v1634_v33  ;;  %v1726_v29 = vld [vmem:[%s2311_s1 + $0x314] ss:$8 sps:$4 sm:$0xff]   ;;  %v1724_v31 = vld [vmem:[%s2311_s1 + $0x310] ss:$8 sps:$4 sm:$0xff]   ;;  %v1729_v32 = vld [vmem:[%s2311_s1 + $0x204] ss:$8 sps:$4 sm:$0xff]  }
  0x2c   : > { %v1783_v33 = vld [vmem:[%s1989_s13 + $0x14] ss:$36 sps:$4 sm:$0xff]   ;;  %v1756_v51 = vld [vmem:[%s2311_s1 + $0x3c4] ss:$8 sps:$4 sm:$0xff]  }
  0x2d   : > { %1129 = vmatpush2.bf16.msra.mxu0 %v1633_v34  ;;  %v1732_v34 = vld [vmem:[%s2311_s1 + $0x304] ss:$8 sps:$4 sm:$0xff]   ;;  %v1750_v47 = vld [vmem:[%s2311_s1 + $0x3d4] ss:$8 sps:$4 sm:$0xff]  }
  0x2e   : > { %1130 = vmatprep.subr.bf16.mxu0 %v1637_v35  ;;  %1172 = vmatpush2.bf16.msra.mxu1 %v1636_v36  ;;  %v1727_v35 = vld [vmem:[%s2311_s1 + $0x200] ss:$8 sps:$4 sm:$0xff]  }
  0x2f   : > { %1173 = vmatprep.subr.bf16.mxu1 %v1640_v37  ;;  %v1789_v36 = vld [vmem:[%s1989_s13 + $0x1c] ss:$36 sps:$4 sm:$0xff]  }
  0x30   : > { %v1735_v37 = vld [vmem:[%s2311_s1 + $0x2f4] ss:$8 sps:$4 sm:$0xff]  }
  0x31   : > { %1131 = vmatpush2.bf16.msra.mxu0 %v1639_v38  ;;  %v1730_v38 = vld [vmem:[%s2311_s1 + $0x300] ss:$8 sps:$4 sm:$0xff]  }
  0x32   : > { %1132 = vmatprep.subr.bf16.mxu0 %v1643_v39  ;;  %1174 = vmatpush2.bf16.msra.mxu1 %v1642_v40  ;;  %v1738_v39 = vld [vmem:[%s2311_s1 + $0x3f4] ss:$8 sps:$4 sm:$0xff]   ;;  %v1733_v40 = vld [vmem:[%s2311_s1 + $0x2f0] ss:$8 sps:$4 sm:$0xff]  }
  0x33   : > { %1175 = vmatprep.subr.bf16.mxu1 %v1646_v41  ;;  %v1741_v41 = vld [vmem:[%s2311_s1 + $0x2e4] ss:$8 sps:$4 sm:$0xff]  }
  0x35   : > { %1133 = vmatpush2.bf16.msra.mxu0 %v1645_v42  ;;  %v1736_v42 = vld [vmem:[%s2311_s1 + $0x3f0] ss:$8 sps:$4 sm:$0xff]  }
  0x36   : > { %1134 = vmatprep.subr.bf16.mxu0 %v1649_v43  ;;  %1176 = vmatpush2.bf16.msra.mxu1 %v1648_v44  ;;  %v1744_v43 = vld [vmem:[%s2311_s1 + $0x3e4] ss:$8 sps:$4 sm:$0xff]   ;;  %v1739_v44 = vld [vmem:[%s2311_s1 + $0x2e0] ss:$8 sps:$4 sm:$0xff]  }
  0x37   : > { %1177 = vmatprep.subr.bf16.mxu1 %v1652_v45  ;;  %v1747_v45 = vld [vmem:[%s2311_s1 + $0x2d4] ss:$8 sps:$4 sm:$0xff]  }
  0x39   : > { %1135 = vmatpush2.bf16.msra.mxu0 %v1651_v46  ;;  %v1742_v46 = vld [vmem:[%s2311_s1 + $0x3e0] ss:$8 sps:$4 sm:$0xff]  }
  0x3a   : > { %1136 = vmatprep.subr.bf16.mxu0 %v1655_v48  ;;  %1178 = vmatpush2.bf16.msra.mxu1 %v1654_v49  ;;  %v1745_v48 = vld [vmem:[%s2311_s1 + $0x2d0] ss:$8 sps:$4 sm:$0xff]   ;;  %v1753_v49 = vld [vmem:[%s2311_s1 + $0x2c4] ss:$8 sps:$4 sm:$0xff]  }
  0x3b   : > { %1179 = vmatprep.subr.bf16.mxu1 %v1658_v50  ;;  %v1748_v50 = vld [vmem:[%s2311_s1 + $0x3d0] ss:$8 sps:$4 sm:$0xff]  }
  0x3d   : > { %1137 = vmatpush2.bf16.msra.mxu0 %v1657_v52  ;;  %v1751_v52 = vld [vmem:[%s2311_s1 + $0x2c0] ss:$8 sps:$4 sm:$0xff]  }
  0x3e   : > { %1138 = vmatprep.subr.bf16.mxu0 %v1661_v53  ;;  %1180 = vmatpush2.bf16.msra.mxu1 %v1660_v54  ;;  %v1759_v53 = vld [vmem:[%s2311_s1 + $0x2b4] ss:$8 sps:$4 sm:$0xff]   ;;  %v1754_v54 = vld [vmem:[%s2311_s1 + $0x3c0] ss:$8 sps:$4 sm:$0xff]  }
  0x3f   : > { %1181 = vmatprep.subr.bf16.mxu1 %v1664_v55  ;;  %v1762_v55 = vld [vmem:[%s2311_s1 + $0x3b4] ss:$8 sps:$4 sm:$0xff]  }
  0x41   : > { %1139 = vmatpush2.bf16.msra.mxu0 %v1663_v56  ;;  %v1757_v56 = vld [vmem:[%s2311_s1 + $0x2b0] ss:$8 sps:$4 sm:$0xff]  }
  0x42   : > { %1140 = vmatprep.subr.bf16.mxu0 %v1667_v57  ;;  %1182 = vmatpush2.bf16.msra.mxu1 %v1666_v58  ;;  %v1765_v57 = vld [vmem:[%s2311_s1 + $0x2a4] ss:$8 sps:$4 sm:$0xff]   ;;  %v1760_v58 = vld [vmem:[%s2311_s1 + $0x3b0] ss:$8 sps:$4 sm:$0xff]  }
  0x43   : > { %1183 = vmatprep.subr.bf16.mxu1 %v1670_v59  ;;  %v1768_v59 = vld [vmem:[%s2311_s1 + $0x3a4] ss:$8 sps:$4 sm:$0xff]  }
  0x45   : > { %1141 = vmatpush2.bf16.msra.mxu0 %v1669_v60  ;;  %v1763_v60 = vld [vmem:[%s2311_s1 + $0x2a0] ss:$8 sps:$4 sm:$0xff]  }
  0x46   : > { %1142 = vmatprep.subr.bf16.mxu0 %v1673_v61  ;;  %1184 = vmatpush2.bf16.msra.mxu1 %v1672_v62  ;;  %v1771_v61 = vld [vmem:[%s2311_s1 + $0x294] ss:$8 sps:$4 sm:$0xff]   ;;  %v1766_v62 = vld [vmem:[%s2311_s1 + $0x3a0] ss:$8 sps:$4 sm:$0xff]  }
  0x47   : > { %1185 = vmatprep.subr.bf16.mxu1 %v1676_v63  ;;  %v1774_v63 = vld [vmem:[%s2311_s1 + $0x394] ss:$8 sps:$4 sm:$0xff]  }
  0x49   : > { %1143 = vmatpush2.bf16.msra.mxu0 %v1675_v0  ;;  %v1769_v0 = vld [vmem:[%s2311_s1 + $0x290] ss:$8 sps:$4 sm:$0xff]  }
  0x4a   : > { %1198 = vmatprep.subr.bf16.mxu0 %v1684_v1  ;;  %1186 = vmatpush2.bf16.msra.mxu1 %v1681_v2  ;;  %v1777_v1 = vld [vmem:[%s2311_s1 + $0x284] ss:$8 sps:$4 sm:$0xff]   ;;  %v1772_v2 = vld [vmem:[%s2311_s1 + $0x390] ss:$8 sps:$4 sm:$0xff]  }
  0x4b   : > { %1241 = vmatprep.subr.bf16.mxu1 %v1690_v4  ;;  %v1775_v4 = vld [vmem:[%s2311_s1 + $0x280] ss:$8 sps:$4 sm:$0xff]  }
  0x4c   : > { %1145 = vmatmul.mubr.bf16.vlgmr.msra.gmra.mxu0 %v1678_v3  ;;  %v1780_v3 = vld [vmem:[%s2311_s1 + $0x384] ss:$8 sps:$4 sm:$0xff]  }
  0x4d   : > { %1199 = vmatpush1.bf16.msra.mxu0 %v1682_v5  ;;  %1188 = vmatmul.mubr.bf16.vlgmr.msra.gmra.mxu1 %v1685_v6  ;;  %v1786_v5 = vld [vmem:[%s2311_s1 + $0x474] ss:$8 sps:$4 sm:$0xff]   ;;  %v1778_v6 = vld [vmem:[%s2311_s1 + $0x380] ss:$8 sps:$4 sm:$0xff]  }
  0x4e   : > { %1200 = vmatprep.subr.bf16.mxu0 %v1693_v7  ;;  %1242 = vmatpush1.bf16.msra.mxu1 %v1688_v8  ;;  %v1781_v7 = vld [vmem:[%s1989_s13 + $0x10] ss:$36 sps:$4 sm:$0xff]  }
  0x4f   : > { %1243 = vmatprep.subr.bf16.mxu1 %v1696_v9  ;;  %1230 = vmatprep.mubr.bf16.mxu0 %v1783_v33  ;;  %v1784_v8 = vld [vmem:[%s2311_s1 + $0x470] ss:$8 sps:$4 sm:$0xff]  }
  0x50   : > { %1273 = vmatprep.mubr.bf16.mxu1 %v1789_v36  ;;  %v1787_v9 = vld [vmem:[%s1989_s13 + $0x18] ss:$36 sps:$4 sm:$0xff]  }
  0x51   : > { %1201 = vmatpush1.bf16.msra.mxu0 %v1691_v10  ;;  %v1792_v10 = vld [vmem:[%s2311_s1 + $0x464] ss:$8 sps:$4 sm:$0xff]  }
  0x52   : > { %1202 = vmatprep.subr.bf16.mxu0 %v1699_v11  ;;  %1244 = vmatpush1.bf16.msra.mxu1 %v1694_v12  ;;  %v1790_v11 = vld [vmem:[%s2311_s1 + $0x460] ss:$8 sps:$4 sm:$0xff]   ;;  %v1820_v12 = vmov 0  }
  0x53   : > { %1245 = vmatprep.subr.bf16.mxu1 %v1702_v13  ;;  %v1795_v13 = vld [vmem:[%s2311_s1 + $0x454] ss:$8 sps:$4 sm:$0xff]  }
  0x55   : > { %1203 = vmatpush1.bf16.msra.mxu0 %v1697_v14  ;;  %v1793_v14 = vld [vmem:[%s2311_s1 + $0x450] ss:$8 sps:$4 sm:$0xff]  }
  0x56   : > { %1204 = vmatprep.subr.bf16.mxu0 %v1705_v15  ;;  %1246 = vmatpush1.bf16.msra.mxu1 %v1700_v16  ;;  %v1798_v15 = vld [vmem:[%s2311_s1 + $0x444] ss:$8 sps:$4 sm:$0xff]   ;;  %v1796_v16 = vld [vmem:[%s2311_s1 + $0x440] ss:$8 sps:$4 sm:$0xff]  }
  0x57   : > { %1247 = vmatprep.subr.bf16.mxu1 %v1708_v17  ;;  %v1801_v17 = vld [vmem:[%s2311_s1 + $0x434] ss:$8 sps:$4 sm:$0xff]  }
  0x59   : > { %1205 = vmatpush1.bf16.msra.mxu0 %v1703_v18  ;;  %v1799_v18 = vld [vmem:[%s2311_s1 + $0x430] ss:$8 sps:$4 sm:$0xff]  }
  0x5a   : > { %1206 = vmatprep.subr.bf16.mxu0 %v1711_v19  ;;  %1248 = vmatpush1.bf16.msra.mxu1 %v1706_v20  ;;  %v1804_v19 = vld [vmem:[%s2311_s1 + $0x424] ss:$8 sps:$4 sm:$0xff]   ;;  %v1802_v20 = vld [vmem:[%s2311_s1 + $0x420] ss:$8 sps:$4 sm:$0xff]  }
  0x5b   : > { %1249 = vmatprep.subr.bf16.mxu1 %v1714_v21  ;;  %v1807_v21 = vld [vmem:[%s2311_s1 + $0x414] ss:$8 sps:$4 sm:$0xff]  }
  0x5d   : > { %1207 = vmatpush1.bf16.msra.mxu0 %v1709_v22  ;;  %v1805_v22 = vld [vmem:[%s2311_s1 + $0x410] ss:$8 sps:$4 sm:$0xff]  }
  0x5e   : > { %1208 = vmatprep.subr.bf16.mxu0 %v1717_v23  ;;  %1250 = vmatpush1.bf16.msra.mxu1 %v1712_v24  ;;  %v1810_v23 = vld [vmem:[%s2311_s1 + $0x404] ss:$8 sps:$4 sm:$0xff]   ;;  %v1808_v24 = vld [vmem:[%s2311_s1 + $0x400] ss:$8 sps:$4 sm:$0xff]  }
  0x5f   : > { %1251 = vmatprep.subr.bf16.mxu1 %v1720_v25  ;;  %v1811_v25 = vld [vmem:[%s1989_s13 + $0x20] ss:$36 sps:$4 sm:$0xff]   ;;  %s1570_s13 = sshll.u32 %s2315_s22, 3 }
  0x60   : > { %s177_s18 = scalar_lea.vmem %s2313_s3, %s1570_s13 }
  0x61   : > { %1209 = vmatpush1.bf16.msra.mxu0 %v1715_v26 }
  0x62   : > { %1210 = vmatprep.subr.bf16.mxu0 %v1723_v27  ;;  %1252 = vmatpush1.bf16.msra.mxu1 %v1718_v28  ;;  %v336_v27 = vlaneseq }
  0x63   : > { %1253 = vmatprep.subr.bf16.mxu1 %v1726_v29 }
  0x65   : > { %1211 = vmatpush1.bf16.msra.mxu0 %v1721_v30  ;;  %v337_v30 = vshrl.u32 %v336_v27, 7 }
  0x66   : > { %1212 = vmatprep.subr.bf16.mxu0 %v1729_v32  ;;  %1254 = vmatpush1.bf16.msra.mxu1 %v1724_v31 }
  0x67   : > { %1255 = vmatprep.subr.bf16.mxu1 %v1732_v34  ;;  %v338_v33 = vsub.s32 0, %v337_v30  ;;  %v334_v34 = vld [vmem:[%s2312_s2] sm:$0x3] }
  0x69   : > { %1213 = vmatpush1.bf16.msra.mxu0 %v1727_v35  ;;  %v342_v35 = vsub.s32 1, %v337_v30 }
  0x6a   : > { %1214 = vmatprep.subr.bf16.mxu0 %v1735_v37  ;;  %1256 = vmatpush1.bf16.msra.mxu1 %v1730_v38  ;;  %v339_v38 = vrot.slane %v334_v34, %v338_v33 }
  0x6b   : > { %1257 = vmatprep.subr.bf16.mxu1 %v1738_v39 }
  0x6d   : > { %1215 = vmatpush2.bf16.msra.mxu0 %v1733_v40  ;;  %v343_v40 = vrot.slane %v334_v34, %v342_v35 }
  0x6e   : > { %1216 = vmatprep.subr.bf16.mxu0 %v1741_v41  ;;  %1258 = vmatpush2.bf16.msra.mxu1 %v1736_v42 }
  0x6f   : > { %1259 = vmatprep.subr.bf16.mxu1 %v1744_v43 }
  0x71   : > { %1217 = vmatpush2.bf16.msra.mxu0 %v1739_v44 }
  0x72   : > { %1218 = vmatprep.subr.bf16.mxu0 %v1747_v45  ;;  %1260 = vmatpush2.bf16.msra.mxu1 %v1742_v46 }
  0x73   : > { %1261 = vmatprep.subr.bf16.mxu1 %v1750_v47 }
  0x75   : > { %1219 = vmatpush2.bf16.msra.mxu0 %v1745_v48 }
  0x76   : > { %1220 = vmatprep.subr.bf16.mxu0 %v1753_v49  ;;  %1262 = vmatpush2.bf16.msra.mxu1 %v1748_v50 }
  0x77   : > { %1263 = vmatprep.subr.bf16.mxu1 %v1756_v51 }
  0x79   : > { %1221 = vmatpush2.bf16.msra.mxu0 %v1751_v52 }
  0x7a   : > { %1222 = vmatprep.subr.bf16.mxu0 %v1759_v53  ;;  %1264 = vmatpush2.bf16.msra.mxu1 %v1754_v54 }
  0x7b   : > { %1265 = vmatprep.subr.bf16.mxu1 %v1762_v55 }
  0x7d   : > { %1223 = vmatpush2.bf16.msra.mxu0 %v1757_v56 }
  0x7e   : > { %1224 = vmatprep.subr.bf16.mxu0 %v1765_v57  ;;  %1266 = vmatpush2.bf16.msra.mxu1 %v1760_v58 }
  0x7f   : > { %1267 = vmatprep.subr.bf16.mxu1 %v1768_v59 }
  0x81   : > { %1225 = vmatpush2.bf16.msra.mxu0 %v1763_v60 }
  0x82   : > { %1226 = vmatprep.subr.bf16.mxu0 %v1771_v61  ;;  %1268 = vmatpush2.bf16.msra.mxu1 %v1766_v62 }
  0x83   : > { %1269 = vmatprep.subr.bf16.mxu1 %v1774_v63 }
  0x85   : > { %1227 = vmatpush2.bf16.msra.mxu0 %v1769_v0 }
  0x86   : > { %1228 = vmatprep.subr.bf16.mxu0 %v1777_v1  ;;  %1270 = vmatpush2.bf16.msra.mxu1 %v1772_v2 }
  0x87   : > { %1271 = vmatprep.subr.bf16.mxu1 %v1780_v3 }
  0x89   : > { %1229 = vmatpush2.bf16.msra.mxu0 %v1775_v4 }
  0x8a   : > { %1284 = vmatprep.subr.bf16.mxu0 %v1786_v5  ;;  %1272 = vmatpush2.bf16.msra.mxu1 %v1778_v6 }
  0x8c   : > { %1231 = vmatmul.mubr.bf16.vlgmr.msra.gmra.mxu0 %v1781_v7 }
  0x8d   : > { %1285 = vmatpush1.bf16.msra.mxu0 %v1784_v8  ;;  %1316 = vmatprep.mubr.bf16.mxu0 %v1820_v12 }
  0x8e   : > { %1274 = vmatmul.mubr.bf16.vlgmr.msra.gmra.mxu1 %v1787_v9  ;;  %1286 = vmatprep.subr.bf16.mxu0 %v1792_v10 }
  0x91   : > { %1287 = vmatpush1.bf16.msra.mxu0 %v1790_v11 }
  0x92   : > { %1288 = vmatprep.subr.bf16.mxu0 %v1795_v13 }
  0x95   : > { %1289 = vmatpush1.bf16.msra.mxu0 %v1793_v14 }
  0x96   : > { %1290 = vmatprep.subr.bf16.mxu0 %v1798_v15 }
  0x99   : > { %1291 = vmatpush1.bf16.msra.mxu0 %v1796_v16 }
  0x9a   : > { %1292 = vmatprep.subr.bf16.mxu0 %v1801_v17 }
  0x9d   : > { %1293 = vmatpush1.bf16.msra.mxu0 %v1799_v18 }
  0x9e   : > { %1294 = vmatprep.subr.bf16.mxu0 %v1804_v19 }
  0xa1   : > { %1295 = vmatpush1.bf16.msra.mxu0 %v1802_v20 }
  0xa2   : > { %1296 = vmatprep.subr.bf16.mxu0 %v1807_v21 }
  0xa5   : > { %1297 = vmatpush1.bf16.msra.mxu0 %v1805_v22 }
  0xa6   : > { %1298 = vmatprep.subr.bf16.mxu0 %v1810_v23 }
  0xa9   : > { %1299 = vmatpush1.bf16.msra.mxu0 %v1808_v24 }
  0xac   : > { %1317 = vmatmul.mubr.bf16.vlgmr.msra.gmra.mxu0 %v1811_v25 }
 0x10c   : > { %v1146_v26 = vpop.f32.mrf.mxu0 }
 0x10d   : > { %v1189_v29 = vpop.f32.mrf.mxu1  ;;  %v1147_v42 = vadd.f32 %v1146_v26, %v339_v38 }
 0x10e   : > { %v1148_v28 = vpop.f32.mrf.mxu0 }
 0x10f   : > { %v1191_v32 = vpop.f32.mrf.mxu1  ;;  %v1149_v45 = vadd.f32 %v1148_v28, %v343_v40  ;;  %v1190_v46 = vadd.f32 %v1189_v29, %v1147_v42 }
 0x110   : > { %v1150_v31 = vpop.f32.mrf.mxu0 }
 0x111   : > { %v1193_v37 = vpop.f32.mrf.mxu1  ;;  %v1151_v47 = vadd.f32 %v1150_v31, %v339_v38  ;;  %v1192_v50 = vadd.f32 %v1191_v32, %v1149_v45 }
 0x112   : > { %v1152_v36 = vpop.f32.mrf.mxu0 }
 0x113   : > { %v1195_v41 = vpop.f32.mrf.mxu1  ;;  %v1153_v51 = vadd.f32 %v1152_v36, %v343_v40  ;;  %v1194_v53 = vadd.f32 %v1193_v37, %v1151_v47 }
 0x115   : > { %v1196_v57 = vadd.f32 %v1195_v41, %v1153_v51 }
 0x14c   : > { %v1232_v39 = vpop.f32.mrf.mxu0 }
 0x14d   : > { %v1233_v52 = vadd.f32 %v1232_v39, %v1190_v46 }
 0x14e   : > { %v1234_v43 = vpop.f32.mrf.mxu0  ;;  %v1275_v44 = vpop.f32.mrf.mxu1 }
 0x14f   : > { %v1235_v54 = vadd.f32 %v1234_v43, %v1192_v50  ;;  %v1276_v58 = vadd.f32 %v1275_v44, %v1233_v52 }
 0x150   : > { %v1236_v48 = vpop.f32.mrf.mxu0  ;;  %v1277_v49 = vpop.f32.mrf.mxu1 }
 0x151   : > { %v1237_v59 = vadd.f32 %v1236_v48, %v1194_v53  ;;  %v1278_v61 = vadd.f32 %v1277_v49, %v1235_v54 }
 0x152   : > { %v1238_v55 = vpop.f32.mrf.mxu0  ;;  %v1279_v56 = vpop.f32.mrf.mxu1 }
 0x153   : > { %v1239_v62 = vadd.f32 %v1238_v55, %v1196_v57  ;;  %v1280_v2 = vadd.f32 %v1279_v56, %v1237_v59 }
 0x154   : > { %v1281_v0 = vpop.f32.mrf.mxu1 }
 0x155   : > { %v1282_v5 = vadd.f32 %v1281_v0, %v1239_v62 }
 0x16c   : > { %v1318_v60 = vpop.f32.mrf.mxu0 }
 0x16d   : > { %v1319_v63 = vadd.f32 %v1318_v60, %v1276_v58 }
 0x16e   : > { %v1320_v1 = vpop.f32.mrf.mxu0 }
 0x16f   : > { %v1321_v3 = vadd.f32 %v1320_v1, %v1278_v61  ;;  %v1327_v6 = vmax.f32 %v1319_v63, 0.0 }
 0x170   : > { %v1322_v4 = vpop.f32.mrf.mxu0 }
 0x171   : > { %v1328_v7 = vmax.f32 %v1321_v3, 0.0  ;;  %v1323_v8 = vadd.f32 %v1322_v4, %v1280_v2 }
 0x172   : > { %v1324_v9 = vpop.f32.mrf.mxu0 }
 0x173   : > { %v1571_v10 = vpack.c.bf16 %v1328_v7, %v1327_v6  ;;  %v1325_v11 = vadd.f32 %v1324_v9, %v1282_v5  ;;  %v1329_v12 = vmax.f32 %v1323_v8, 0.0 }
 0x175   : > { %1343 = vst [vmem:[%s177_s18] sm:$0xff] %v1571_v10  ;;  %v1330_v13 = vmax.f32 %v1325_v11, 0.0 }
 0x177   : > { %v1572_v14 = vpack.c.bf16 %v1330_v13, %v1329_v12 }
 0x179   : > { %1344 = vst [vmem:[%s177_s18 + $0x8] sm:$0xff] %v1572_v14 }
 0x17a PF: > { %s13_s12 = sadd.s32 1, %s1818_s12  }
 0x17b   : > { %p10_p4 = scmp.ge.s32.totalorder %s13_s12, 4  }
 0x17d   :  { %12 = sbr.rel (!%p10_p4) target bundleno = 1 (0x1), region = 62 }

// kernel: depth_pro_scaled.14
= control target key start
LH: loop header
LB: loop body
LE: loop exit
PB: predicated region body
PF: predicated region fallthrough
CT: control target
= control target key end

     0   :  { %s686_s15 = smov 0   ;;  %s747_s0 = inlined_call_operand.vmem [shape: bf16[128,128], index: 0, kind: input, shape index: {}]   ;;  %s748_s1 = inlined_call_operand.vmem [shape: bf16[128,128], index: 1, kind: input, shape index: {}]   ;;  %s749_s2 = inlined_call_operand.vmem [shape: f32[1,128], index: 2, kind: input, shape index: {}]   ;;  %s750_s3 = inlined_call_operand.vmem [shape: f32[128,128], index: 3, kind: input, shape index: {}]   ;;  %s751_s4 = inlined_call_operand.vmem [shape: bf16[128,128], index: 4, kind: output, shape index: {}]  }
   0x1 LB: > { %s516_s16 = sadd.s32 4294967295, %s659_s15   ;;  %p520_p0 = scmp.ge.s32.totalorder %s659_s15, 1  ;;  %s659_s15 = sphi %s686_s15, %s14_s15  }
   0x2   : > { %p174_p1 = scmp.lt.s32.totalorder %s659_s15, 3 }
   0x4   : > { %p175_p2 = pnand %p520_p0, %p174_p1 }
   0x5   : > { %s521_s19 = sshll.u32 (!%p175_p2), %s516_s16, 3 }
   0x6   : > { %178 = sbr.rel (%p175_p2) target bundleno = 250 (0xfa), region = 36  ;;  %p206_p3 = scmp.lt.s32.totalorder (!%p175_p2), %s521_s19, 15 }
   0xb   : > { %v641_v0 = vld [vmem:[%s748_s1 + $0x38] sm:$0xff]   ;;  %v642_v1 = vld [vmem:[%s748_s1 + $0x30] sm:$0xff]   ;;  %s753_s19 = smov (!%p206_p3, %s521_s19), 15  ;;  %v643_v2 = vld [vmem:[%s748_s1 + $0x28] sm:$0xff]  }
   0xc   : > { %593 = vmatprep.subr.bf16.mxu0 %v641_v0  ;;  %617 = vmatprep.subr.bf16.mxu1 %v641_v0  ;;  %s522_s24 = sshll.u32 %s753_s19, 2  ;;  %v644_v3 = vld [vmem:[%s748_s1 + $0x20] sm:$0xff]   ;;  %v645_v6 = vld [vmem:[%s748_s1 + $0x18] sm:$0xff]   ;;  %v646_v7 = vld [vmem:[%s748_s1 + $0x10] sm:$0xff]   ;;  %s524_s12 = sshll.u32 %s753_s19, 3 }
   0xd   : > { %594 = vmatpush3.bf16.msra.mxu0 %v641_v0  ;;  %625 = vmatpush3.bf16.msra.mxu1 %v641_v0  ;;  %s711_s27 = scalar_lea.vmem %s747_s0, %s522_s24  ;;  %v647_v8 = vld [vmem:[%s748_s1 + $0x8] sm:$0xff]   ;;  %v648_v9 = vld [vmem:[%s748_s1] sm:$0xff]   ;;  %s215_s18 = scalar_lea.vmem %s750_s3, %s524_s12 }
   0xe   : > { %595 = vmatprep.subr.bf16.mxu0 %v642_v1  ;;  %618 = vmatprep.subr.bf16.mxu1 %v642_v1  ;;  %v649_v4 = vld [vmem:[%s711_s27] sm:$0xff]   ;;  %v650_v5 = vld [vmem:[%s711_s27 + $0x10] sm:$0xff]   ;;  %v651_v10 = vld [vmem:[%s711_s27 + $0x8] sm:$0xff]   ;;  %s221_s22 = scalar_lea.vmem %s751_s4, %s522_s24 }
   0xf   : > { %609 = vmatprep.mubr.bf16.mxu0 %v649_v4  ;;  %613 = vmatprep.mubr.bf16.mxu1 %v650_v5  ;;  %v652_v11 = vld [vmem:[%s711_s27 + $0x18] sm:$0xff]   ;;  %v527_v12 = vld [vmem:[%s749_s2] ss:$0 sm:$0xff]  ;;  %v394_v19 = vld [vmem:[%s215_s18 + $0x10] sm:$0xff] }
  0x10   : > { %v398_v20 = vld [vmem:[%s215_s18 + $0x30] sm:$0xff]  ;;  %v395_v24 = vld [vmem:[%s215_s18 + $0x18] sm:$0xff]  ;;  %v392_v27 = vld [vmem:[%s215_s18] sm:$0xff] }
  0x11   : > { %596 = vmatpush3.bf16.msra.mxu0 %v642_v1  ;;  %626 = vmatpush3.bf16.msra.mxu1 %v642_v1  ;;  %v399_v26 = vld [vmem:[%s215_s18 + $0x38] sm:$0xff]  ;;  %v396_v28 = vld [vmem:[%s215_s18 + $0x20] sm:$0xff]  ;;  %v393_v34 = vld [vmem:[%s215_s18 + $0x8] sm:$0xff] }
  0x12   : > { %597 = vmatprep.subr.bf16.mxu0 %v643_v2  ;;  %619 = vmatprep.subr.bf16.mxu1 %v643_v2  ;;  %v397_v36 = vld [vmem:[%s215_s18 + $0x28] sm:$0xff] }
  0x15   : > { %598 = vmatpush3.bf16.msra.mxu0 %v643_v2  ;;  %627 = vmatpush3.bf16.msra.mxu1 %v643_v2 }
  0x16   : > { %599 = vmatprep.subr.bf16.mxu0 %v644_v3  ;;  %620 = vmatprep.subr.bf16.mxu1 %v644_v3 }
  0x19   : > { %600 = vmatpush3.bf16.msra.mxu0 %v644_v3  ;;  %628 = vmatpush3.bf16.msra.mxu1 %v644_v3 }
  0x1a   : > { %601 = vmatprep.subr.bf16.mxu0 %v645_v6  ;;  %621 = vmatprep.subr.bf16.mxu1 %v645_v6 }
  0x1d   : > { %602 = vmatpush3.bf16.msra.mxu0 %v645_v6  ;;  %629 = vmatpush3.bf16.msra.mxu1 %v645_v6 }
  0x1e   : > { %603 = vmatprep.subr.bf16.mxu0 %v646_v7  ;;  %622 = vmatprep.subr.bf16.mxu1 %v646_v7 }
  0x21   : > { %604 = vmatpush3.bf16.msra.mxu0 %v646_v7  ;;  %630 = vmatpush3.bf16.msra.mxu1 %v646_v7 }
  0x22   : > { %605 = vmatprep.subr.bf16.mxu0 %v647_v8  ;;  %623 = vmatprep.subr.bf16.mxu1 %v647_v8 }
  0x25   : > { %606 = vmatpush3.bf16.msra.mxu0 %v647_v8  ;;  %631 = vmatpush3.bf16.msra.mxu1 %v647_v8 }
  0x26   : > { %607 = vmatprep.subr.bf16.mxu0 %v648_v9  ;;  %624 = vmatprep.subr.bf16.mxu1 %v648_v9 }
  0x29   : > { %608 = vmatpush3.bf16.msra.mxu0 %v648_v9  ;;  %632 = vmatpush3.bf16.msra.mxu1 %v648_v9 }
  0x2c   : > { %610 = vmatmul.mubr.bf16.vlgmr.msra.gmra.mxu0 %v651_v10  ;;  %614 = vmatmul.mubr.bf16.vlgmr.msra.gmra.mxu1 %v652_v11 }
  0xec   : > { %v611_v13 = vpop.f32.mrf.mxu0  ;;  %v615_v14 = vpop.f32.mrf.mxu1 }
  0xed   : > { %v370_v15 = vadd.f32 %v611_v13, %v527_v12  ;;  %v386_v16 = vadd.f32 %v615_v14, %v527_v12 }
  0xee   : > { %v361_v17 = vpop.f32.mrf.mxu0  ;;  %v377_v18 = vpop.f32.mrf.mxu1 }
  0xef   : > { %v362_v21 = vadd.f32 %v527_v12, %v361_v17  ;;  %v378_v22 = vadd.f32 %v527_v12, %v377_v18  ;;  %v402_v31 = vadd.f32 %v394_v19, %v370_v15  ;;  %v406_v32 = vadd.f32 %v398_v20, %v386_v16 }
  0xf0   : > { %v612_v23 = vpop.f32.mrf.mxu0  ;;  %v616_v25 = vpop.f32.mrf.mxu1 }
  0xf1   : > { %v373_v29 = vadd.f32 %v612_v23, %v527_v12  ;;  %v389_v30 = vadd.f32 %v616_v25, %v527_v12  ;;  %v400_v41 = vadd.f32 %v392_v27, %v362_v21  ;;  %v404_v42 = vadd.f32 %v396_v28, %v378_v22 }
  0xf2   : > { %v364_v33 = vpop.f32.mrf.mxu0  ;;  %v380_v35 = vpop.f32.mrf.mxu1 }
  0xf3   : > { %v403_v37 = vadd.f32 %v395_v24, %v373_v29  ;;  %v407_v38 = vadd.f32 %v399_v26, %v389_v30  ;;  %v365_v39 = vadd.f32 %v527_v12, %v364_v33  ;;  %v381_v40 = vadd.f32 %v527_v12, %v380_v35 }
  0xf5   : > { %v566_v43 = vpack.c.bf16 %v403_v37, %v402_v31  ;;  %v576_v44 = vpack.c.bf16 %v407_v38, %v406_v32  ;;  %v401_v45 = vadd.f32 %v393_v34, %v365_v39  ;;  %v405_v46 = vadd.f32 %v397_v36, %v381_v40 }
  0xf7   : > { %578 = vst [vmem:[%s221_s22 + $0x8] sm:$0xff] %v566_v43   ;;  %580 = vst [vmem:[%s221_s22 + $0x18] sm:$0xff] %v576_v44   ;;  %v561_v47 = vpack.c.bf16 %v401_v45, %v400_v41  ;;  %v571_v48 = vpack.c.bf16 %v405_v46, %v404_v42 }
  0xf9   : > { %562 = vst [vmem:[%s221_s22] sm:$0xff] %v561_v47   ;;  %579 = vst [vmem:[%s221_s22 + $0x10] sm:$0xff] %v571_v48  }
  0xfa PF: > { %s14_s15 = sadd.s32 1, %s659_s15  }
  0xfb   : > { %p11_p4 = scmp.ge.s32.totalorder %s14_s15, 4  }
  0xfd   :  { %13 = sbr.rel (!%p11_p4) target bundleno = 1 (0x1), region = 69 }

// kernel: depth_pro_scaled.18
= control target key start
LH: loop header
LB: loop body
LE: loop exit
PB: predicated region body
PF: predicated region fallthrough
CT: control target
= control target key end

     0   :  { %s910_s12 = smov 0   ;;  %s1102_s0 = inlined_call_operand.vmem [shape: bf16[128,128], index: 0, kind: input, shape index: {}]   ;;  %s1103_s1 = inlined_call_operand.vmem [shape: bf16[128,512], index: 1, kind: input, shape index: {}]   ;;  %s1104_s2 = inlined_call_operand.vmem [shape: f32[1,512], index: 2, kind: input, shape index: {}]   ;;  %s1105_s3 = inlined_call_operand.vmem [shape: bf16[128,512], index: 3, kind: output, shape index: {}]  }
   0x1 LB: > { %s739_s13 = sadd.s32 4294967295, %s887_s12   ;;  %p743_p0 = scmp.ge.s32.totalorder %s887_s12, 1  ;;  %s887_s12 = sphi %s910_s12, %s13_s12  }
   0x2   : > { %p138_p1 = scmp.lt.s32.totalorder %s887_s12, 3 }
   0x4   : > { %p139_p2 = pnand %p743_p0, %p138_p1 }
   0x5   : > { %s744_s5 = sshll.u32 (!%p139_p2), %s739_s13, 3 }
   0x6   : > { %142 = sbr.rel (%p139_p2) target bundleno = 273 (0x111), region = 32  ;;  %p164_p3 = scmp.lt.s32.totalorder (!%p139_p2), %s744_s5, 15 }
   0xb   : > { %v829_v0 = vld [vmem:[%s1103_s1 + $0xe4] ss:$16 sps:$4 sm:$0xff]   ;;  %v831_v1 = vld [vmem:[%s1103_s1 + $0xec] ss:$16 sps:$4 sm:$0xff]   ;;  %v889_v2 = vmov 0   ;;  %s1107_s5 = smov (!%p164_p3, %s744_s5), 15  ;;  %v219_v37 = vlaneseq }
   0xc   : > { %455 = vmatprep.mubr.bf16.mxu0 %v889_v2  ;;  %528 = vmatprep.mubr.bf16.mxu1 %v889_v2  ;;  %v833_v3 = vld [vmem:[%s1103_s1 + $0xe0] ss:$16 sps:$4 sm:$0xff]   ;;  %v834_v4 = vld [vmem:[%s1103_s1 + $0xe8] ss:$16 sps:$4 sm:$0xff]   ;;  %v835_v5 = vld [vmem:[%s1103_s1 + $0xc4] ss:$16 sps:$4 sm:$0xff]  }
   0xd   : > { %423 = vmatprep.subr.bf16.mxu0 %v829_v0  ;;  %496 = vmatprep.subr.bf16.mxu1 %v831_v1  ;;  %v837_v6 = vld [vmem:[%s1103_s1 + $0xcc] ss:$16 sps:$4 sm:$0xff]   ;;  %v839_v7 = vld [vmem:[%s1103_s1 + $0xc0] ss:$16 sps:$4 sm:$0xff]   ;;  %v840_v8 = vld [vmem:[%s1103_s1 + $0xc8] ss:$16 sps:$4 sm:$0xff]  }
   0xe   : > { %424 = vmatpush1.bf16.msra.mxu0 %v833_v3  ;;  %497 = vmatpush1.bf16.msra.mxu1 %v834_v4  ;;  %v841_v9 = vld [vmem:[%s1103_s1 + $0xa4] ss:$16 sps:$4 sm:$0xff]   ;;  %v843_v10 = vld [vmem:[%s1103_s1 + $0xac] ss:$16 sps:$4 sm:$0xff]   ;;  %v845_v11 = vld [vmem:[%s1103_s1 + $0xa0] ss:$16 sps:$4 sm:$0xff]  }
   0xf   : > { %425 = vmatprep.subr.bf16.mxu0 %v835_v5  ;;  %498 = vmatprep.subr.bf16.mxu1 %v837_v6  ;;  %v846_v12 = vld [vmem:[%s1103_s1 + $0xa8] ss:$16 sps:$4 sm:$0xff]   ;;  %v847_v13 = vld [vmem:[%s1103_s1 + $0x84] ss:$16 sps:$4 sm:$0xff]   ;;  %v849_v14 = vld [vmem:[%s1103_s1 + $0x8c] ss:$16 sps:$4 sm:$0xff]  }
  0x10   : > { %v851_v15 = vld [vmem:[%s1103_s1 + $0x80] ss:$16 sps:$4 sm:$0xff]   ;;  %v852_v16 = vld [vmem:[%s1103_s1 + $0x88] ss:$16 sps:$4 sm:$0xff]   ;;  %v853_v17 = vld [vmem:[%s1103_s1 + $0x64] ss:$16 sps:$4 sm:$0xff]  }
  0x11   : > { %v855_v18 = vld [vmem:[%s1103_s1 + $0x6c] ss:$16 sps:$4 sm:$0xff]   ;;  %v857_v19 = vld [vmem:[%s1103_s1 + $0x60] ss:$16 sps:$4 sm:$0xff]   ;;  %v858_v20 = vld [vmem:[%s1103_s1 + $0x68] ss:$16 sps:$4 sm:$0xff]  }
  0x12   : > { %426 = vmatpush1.bf16.msra.mxu0 %v839_v7  ;;  %499 = vmatpush1.bf16.msra.mxu1 %v840_v8  ;;  %v859_v21 = vld [vmem:[%s1103_s1 + $0x44] ss:$16 sps:$4 sm:$0xff]   ;;  %v861_v22 = vld [vmem:[%s1103_s1 + $0x4c] ss:$16 sps:$4 sm:$0xff]   ;;  %s745_s7 = sshll.u32 %s1107_s5, 2  ;;  %v220_v38 = vshrl.u32 %v219_v37, 7 }
  0x13   : > { %427 = vmatprep.subr.bf16.mxu0 %v841_v9  ;;  %500 = vmatprep.subr.bf16.mxu1 %v843_v10  ;;  %v863_v23 = vld [vmem:[%s1103_s1 + $0x40] ss:$16 sps:$4 sm:$0xff]   ;;  %v864_v24 = vld [vmem:[%s1103_s1 + $0x48] ss:$16 sps:$4 sm:$0xff]   ;;  %v865_v25 = vld [vmem:[%s1103_s1 + $0x24] ss:$16 sps:$4 sm:$0xff]   ;;  %s1001_s17 = scalar_lea.vmem %s1102_s0, %s745_s7 }
  0x14   : > { %v867_v26 = vld [vmem:[%s1103_s1 + $0x2c] ss:$16 sps:$4 sm:$0xff]   ;;  %v869_v27 = vld [vmem:[%s1103_s1 + $0x20] ss:$16 sps:$4 sm:$0xff]   ;;  %v870_v28 = vld [vmem:[%s1103_s1 + $0x28] ss:$16 sps:$4 sm:$0xff]  }
  0x15   : > { %v871_v29 = vld [vmem:[%s1103_s1 + $0x4] ss:$16 sps:$4 sm:$0xff]   ;;  %v873_v30 = vld [vmem:[%s1103_s1 + $0xc] ss:$16 sps:$4 sm:$0xff]   ;;  %v875_v31 = vld [vmem:[%s1103_s1] ss:$16 sps:$4 sm:$0xff]  }
  0x16   : > { %428 = vmatpush1.bf16.msra.mxu0 %v845_v11  ;;  %501 = vmatpush1.bf16.msra.mxu1 %v846_v12  ;;  %v876_v32 = vld [vmem:[%s1103_s1 + $0x8] ss:$16 sps:$4 sm:$0xff]   ;;  %v877_v33 = vld [vmem:[%s1001_s17] sm:$0xff]   ;;  %v879_v35 = vld [vmem:[%s1001_s17 + $0x10] sm:$0xff]   ;;  %v221_v39 = vsub.s32 0, %v220_v38  ;;  %v229_v40 = vsub.s32 2, %v220_v38 }
  0x17   : > { %429 = vmatprep.subr.bf16.mxu0 %v847_v13  ;;  %502 = vmatprep.subr.bf16.mxu1 %v849_v14  ;;  %v878_v34 = vld [vmem:[%s1001_s17 + $0x8] sm:$0xff]   ;;  %v880_v36 = vld [vmem:[%s1001_s17 + $0x18] sm:$0xff]   ;;  %v225_v41 = vsub.s32 1, %v220_v38  ;;  %v233_v42 = vsub.s32 3, %v220_v38  ;;  %v217_v43 = vld [vmem:[%s1104_s2] sm:$0xf] }
  0x18   : > { %v1037_v44 = vrot.slane %v217_v43, %v221_v39  ;;  %v1039_v45 = vrot.slane %v217_v43, %v229_v40  ;;  %s803_s8 = sshll.u32 %s1107_s5, 4 }
  0x19   : > { %v1041_v46 = vrot.slane %v217_v43, %v225_v41  ;;  %v1043_v47 = vrot.slane %v217_v43, %v233_v42  ;;  %s1053_s11 = scalar_lea.vmem %s1105_s3, %s803_s8 }
  0x1a   : > { %430 = vmatpush1.bf16.msra.mxu0 %v851_v15  ;;  %503 = vmatpush1.bf16.msra.mxu1 %v852_v16 }
  0x1b   : > { %431 = vmatprep.subr.bf16.mxu0 %v853_v17  ;;  %504 = vmatprep.subr.bf16.mxu1 %v855_v18 }
  0x1e   : > { %432 = vmatpush1.bf16.msra.mxu0 %v857_v19  ;;  %505 = vmatpush1.bf16.msra.mxu1 %v858_v20 }
  0x1f   : > { %433 = vmatprep.subr.bf16.mxu0 %v859_v21  ;;  %506 = vmatprep.subr.bf16.mxu1 %v861_v22 }
  0x22   : > { %434 = vmatpush1.bf16.msra.mxu0 %v863_v23  ;;  %507 = vmatpush1.bf16.msra.mxu1 %v864_v24 }
  0x23   : > { %435 = vmatprep.subr.bf16.mxu0 %v865_v25  ;;  %508 = vmatprep.subr.bf16.mxu1 %v867_v26 }
  0x26   : > { %436 = vmatpush1.bf16.msra.mxu0 %v869_v27  ;;  %509 = vmatpush1.bf16.msra.mxu1 %v870_v28 }
  0x27   : > { %437 = vmatprep.subr.bf16.mxu0 %v871_v29  ;;  %510 = vmatprep.subr.bf16.mxu1 %v873_v30 }
  0x2a   : > { %438 = vmatpush1.bf16.msra.mxu0 %v875_v31  ;;  %511 = vmatpush1.bf16.msra.mxu1 %v876_v32 }
  0x2d   : > { %456 = vmatmul.mubr.bf16.vlgmr.msra.gmra.mxu0 %v877_v33  ;;  %529 = vmatmul.mubr.bf16.vlgmr.msra.gmra.mxu1 %v877_v33 }
  0x2e   : > { %465 = vmatprep.mubr.bf16.mxu0 %v889_v2  ;;  %538 = vmatprep.mubr.bf16.mxu1 %v889_v2 }
  0x35   : > { %466 = vmatmul.mubr.bf16.gmra.mxu0 %v878_v34  ;;  %539 = vmatmul.mubr.bf16.gmra.mxu1 %v878_v34 }
  0x36   : > { %475 = vmatprep.mubr.bf16.mxu0 %v889_v2  ;;  %548 = vmatprep.mubr.bf16.mxu1 %v889_v2 }
  0x3d   : > { %476 = vmatmul.mubr.bf16.gmra.mxu0 %v879_v35  ;;  %549 = vmatmul.mubr.bf16.gmra.mxu1 %v879_v35 }
  0x3e   : > { %485 = vmatprep.mubr.bf16.mxu0 %v889_v2  ;;  %558 = vmatprep.mubr.bf16.mxu1 %v889_v2 }
  0x45   : > { %486 = vmatmul.mubr.bf16.gmra.mxu0 %v880_v36  ;;  %559 = vmatmul.mubr.bf16.gmra.mxu1 %v880_v36 }
  0xed   : > { %v457_v48 = vpop.f32.mrf.mxu0  ;;  %v530_v49 = vpop.f32.mrf.mxu1 }
  0xee   : > { %v458_v52 = vadd.f32 %v457_v48, %v1037_v44  ;;  %v531_v53 = vadd.f32 %v530_v49, %v1039_v45 }
  0xef   : > { %v459_v50 = vpop.f32.mrf.mxu0  ;;  %v532_v51 = vpop.f32.mrf.mxu1 }
  0xf0   : > { %v460_v54 = vadd.f32 %v459_v50, %v1041_v46  ;;  %v533_v55 = vadd.f32 %v532_v51, %v1043_v47 }
  0xf1   : > { %v461_v56 = vpop.f32.mrf.mxu0  ;;  %v534_v57 = vpop.f32.mrf.mxu1 }
  0xf2   : > { %v804_v58 = vpack.c.bf16 %v460_v54, %v458_v52  ;;  %v805_v59 = vpack.c.bf16 %v533_v55, %v531_v53  ;;  %v462_v62 = vadd.f32 %v461_v56, %v1037_v44  ;;  %v535_v63 = vadd.f32 %v534_v57, %v1039_v45 }
  0xf3   : > { %v463_v60 = vpop.f32.mrf.mxu0  ;;  %v536_v61 = vpop.f32.mrf.mxu1 }
  0xf4   : > { %665 = vst [vmem:[%s1053_s11] sm:$0xff] %v804_v58  ;;  %666 = vst [vmem:[%s1053_s11 + $0x8] sm:$0xff] %v805_v59  ;;  %v464_v0 = vadd.f32 %v463_v60, %v1041_v46  ;;  %v537_v1 = vadd.f32 %v536_v61, %v1043_v47 }
  0xf5   : > { %v467_v2 = vpop.f32.mrf.mxu0  ;;  %v540_v3 = vpop.f32.mrf.mxu1 }
  0xf6   : > { %v806_v4 = vpack.c.bf16 %v464_v0, %v462_v62  ;;  %v807_v5 = vpack.c.bf16 %v537_v1, %v535_v63  ;;  %v468_v8 = vadd.f32 %v467_v2, %v1037_v44  ;;  %v541_v9 = vadd.f32 %v540_v3, %v1039_v45 }
  0xf7   : > { %v469_v6 = vpop.f32.mrf.mxu0  ;;  %v542_v7 = vpop.f32.mrf.mxu1 }
  0xf8   : > { %667 = vst [vmem:[%s1053_s11 + $0x10] sm:$0xff] %v806_v4  ;;  %668 = vst [vmem:[%s1053_s11 + $0x18] sm:$0xff] %v807_v5  ;;  %v470_v10 = vadd.f32 %v469_v6, %v1041_v46  ;;  %v543_v11 = vadd.f32 %v542_v7, %v1043_v47 }
  0xf9   : > { %v471_v12 = vpop.f32.mrf.mxu0  ;;  %v544_v13 = vpop.f32.mrf.mxu1 }
  0xfa   : > { %v808_v14 = vpack.c.bf16 %v470_v10, %v468_v8  ;;  %v809_v15 = vpack.c.bf16 %v543_v11, %v541_v9  ;;  %v472_v18 = vadd.f32 %v471_v12, %v1037_v44  ;;  %v545_v19 = vadd.f32 %v544_v13, %v1039_v45 }
  0xfb   : > { %v473_v16 = vpop.f32.mrf.mxu0  ;;  %v546_v17 = vpop.f32.mrf.mxu1 }
  0xfc   : > { %669 = vst [vmem:[%s1053_s11 + $0x20] sm:$0xff] %v808_v14  ;;  %670 = vst [vmem:[%s1053_s11 + $0x28] sm:$0xff] %v809_v15  ;;  %v474_v20 = vadd.f32 %v473_v16, %v1041_v46  ;;  %v547_v21 = vadd.f32 %v546_v17, %v1043_v47 }
  0xfd   : > { %v477_v22 = vpop.f32.mrf.mxu0  ;;  %v550_v23 = vpop.f32.mrf.mxu1 }
  0xfe   : > { %v810_v24 = vpack.c.bf16 %v474_v20, %v472_v18  ;;  %v811_v25 = vpack.c.bf16 %v547_v21, %v545_v19  ;;  %v478_v28 = vadd.f32 %v477_v22, %v1037_v44  ;;  %v551_v29 = vadd.f32 %v550_v23, %v1039_v45 }
  0xff   : > { %v479_v26 = vpop.f32.mrf.mxu0  ;;  %v552_v27 = vpop.f32.mrf.mxu1 }
 0x100   : > { %671 = vst [vmem:[%s1053_s11 + $0x30] sm:$0xff] %v810_v24  ;;  %672 = vst [vmem:[%s1053_s11 + $0x38] sm:$0xff] %v811_v25  ;;  %v480_v30 = vadd.f32 %v479_v26, %v1041_v46  ;;  %v553_v31 = vadd.f32 %v552_v27, %v1043_v47 }
 0x101   : > { %v481_v32 = vpop.f32.mrf.mxu0  ;;  %v554_v33 = vpop.f32.mrf.mxu1 }
 0x102   : > { %v812_v34 = vpack.c.bf16 %v480_v30, %v478_v28  ;;  %v813_v35 = vpack.c.bf16 %v553_v31, %v551_v29  ;;  %v482_v38 = vadd.f32 %v481_v32, %v1037_v44  ;;  %v555_v39 = vadd.f32 %v554_v33, %v1039_v45 }
 0x103   : > { %v483_v36 = vpop.f32.mrf.mxu0  ;;  %v556_v37 = vpop.f32.mrf.mxu1 }
 0x104   : > { %673 = vst [vmem:[%s1053_s11 + $0x40] sm:$0xff] %v812_v34  ;;  %674 = vst [vmem:[%s1053_s11 + $0x48] sm:$0xff] %v813_v35  ;;  %v484_v40 = vadd.f32 %v483_v36, %v1041_v46  ;;  %v557_v41 = vadd.f32 %v556_v37, %v1043_v47 }
 0x105   : > { %v487_v42 = vpop.f32.mrf.mxu0  ;;  %v560_v43 = vpop.f32.mrf.mxu1 }
 0x106   : > { %v814_v48 = vpack.c.bf16 %v484_v40, %v482_v38  ;;  %v815_v49 = vpack.c.bf16 %v557_v41, %v555_v39  ;;  %v488_v52 = vadd.f32 %v487_v42, %v1037_v44  ;;  %v561_v53 = vadd.f32 %v560_v43, %v1039_v45 }
 0x107   : > { %v489_v50 = vpop.f32.mrf.mxu0  ;;  %v562_v51 = vpop.f32.mrf.mxu1 }
 0x108   : > { %675 = vst [vmem:[%s1053_s11 + $0x50] sm:$0xff] %v814_v48  ;;  %676 = vst [vmem:[%s1053_s11 + $0x58] sm:$0xff] %v815_v49  ;;  %v490_v54 = vadd.f32 %v489_v50, %v1041_v46  ;;  %v563_v55 = vadd.f32 %v562_v51, %v1043_v47 }
 0x109   : > { %v491_v56 = vpop.f32.mrf.mxu0  ;;  %v564_v57 = vpop.f32.mrf.mxu1 }
 0x10a   : > { %v816_v58 = vpack.c.bf16 %v490_v54, %v488_v52  ;;  %v817_v59 = vpack.c.bf16 %v563_v55, %v561_v53  ;;  %v492_v62 = vadd.f32 %v491_v56, %v1037_v44  ;;  %v565_v63 = vadd.f32 %v564_v57, %v1039_v45 }
 0x10b   : > { %v493_v60 = vpop.f32.mrf.mxu0  ;;  %v566_v61 = vpop.f32.mrf.mxu1 }
 0x10c   : > { %677 = vst [vmem:[%s1053_s11 + $0x60] sm:$0xff] %v816_v58  ;;  %678 = vst [vmem:[%s1053_s11 + $0x68] sm:$0xff] %v817_v59  ;;  %v494_v0 = vadd.f32 %v493_v60, %v1041_v46  ;;  %v567_v1 = vadd.f32 %v566_v61, %v1043_v47 }
 0x10e   : > { %v818_v2 = vpack.c.bf16 %v494_v0, %v492_v62  ;;  %v819_v3 = vpack.c.bf16 %v567_v1, %v565_v63 }
 0x110   : > { %679 = vst [vmem:[%s1053_s11 + $0x70] sm:$0xff] %v818_v2  ;;  %680 = vst [vmem:[%s1053_s11 + $0x78] sm:$0xff] %v819_v3 }
 0x111 PF: > { %s13_s12 = sadd.s32 1, %s887_s12  }
 0x112   : > { %p10_p4 = scmp.ge.s32.totalorder %s13_s12, 4  }
 0x114   :  { %12 = sbr.rel (!%p10_p4) target bundleno = 1 (0x1), region = 62 }

// kernel: depth_pro_scaled.17
= control target key start
LH: loop header
LB: loop body
LE: loop exit
PB: predicated region body
PF: predicated region fallthrough
CT: control target
= control target key end

     0   :  { %s2019_s18 = smov 0   ;;  %s2021_s19 = smov 0   ;;  %s2415_s0 = inlined_call_operand.vmem [shape: bf16[2,10,10,128], index: 0, kind: input, shape index: {}, may-alias: {0,1,2}]   ;;  %s2416_s1 = inlined_call_operand.vmem [shape: bf16[2,10,10,128], index: 1, kind: input, shape index: {}, may-alias: {0,1,2}]   ;;  %s2417_s2 = inlined_call_operand.vmem [shape: bf16[2,10,10,128], index: 2, kind: input, shape index: {}, may-alias: {0,1,2}]   ;;  %s2418_s3 = inlined_call_operand.vmem [shape: bf16[1152,128], index: 3, kind: input, shape index: {}]   ;;  %s2419_s4 = inlined_call_operand.vmem [shape: f32[1,128], index: 4, kind: input, shape index: {}]   ;;  %s2420_s5 = inlined_call_operand.vmem [shape: bf16[2,8,8,128], index: 5, kind: output, shape index: {}]  }
   0x1   :  { %s2023_s20 = smov 0   ;;  %s2025_s21 = smov 0  }
   0x2   :  { %s2027_s22 = smov 0  }
   0x3 LB: > { %s24_s23 = sadd.s32 1, %s1977_s20  ;;  %s27_s24 = sadd.s32 1, %s1981_s21  ;;  %s1985_s22 = sphi %s2027_s22, %s15_s22   ;;  %s1981_s21 = sphi %s2025_s21, %s2424_s21   ;;  %s1977_s20 = sphi %s2023_s20, %s2423_s20   ;;  %s1973_s19 = sphi %s2021_s19, %s2422_s19   ;;  %s1969_s18 = sphi %s2019_s18, %s2421_s18  }
   0x4   : > { %p25_p0 = scmp.ge.s32.totalorder %s24_s23, 8  ;;  %p1481_p1 = scmp.ge.s32.totalorder %s1985_s22, 1 }
   0x5   : > { %p247_p2 = scmp.lt.s32.totalorder %s1985_s22, 17 }
   0x6   : > { %s2426_s23 = smov (%p25_p0, %s24_s23), 0  ;;  %s2428_s24 = smov (!%p25_p0, %s27_s24), %s1981_s21 }
   0x7   : > { %p248_p3 = pnand %p1481_p1, %p247_p2  ;;  %p29_p4 = scmp.ge.s32.totalorder %s2428_s24, 2 }
   0x8   : > { %p302_p5 = scmp.lt.s32.totalorder (!%p248_p3), %s1973_s19, 1  ;;  %p304_p6 = scmp.lt.s32.totalorder (!%p248_p3), %s1969_s18, 9 }
   0x9   : > { %s2430_s24 = smov (%p29_p4, %s2428_s24), 0  ;;  %251 = sbr.rel (%p248_p3) target bundleno = 375 (0x177), region = 40 }
   0xa   : > { %s322_s29 = sadd.s32 (!%p248_p3), 2, %s1969_s18  ;;  %p335_p9 = scmp.lt.s32.totalorder (!%p248_p3), %s1969_s18, 7 }
   0xb   : > { %p325_p8 = scmp.lt.s32.totalorder (!%p248_p3), %s322_s29, 9 }
   0xe   : > { %v1872_v0 = vld [vmem:[%s2418_s3 + $0x78] sm:$0xff]   ;;  %v1987_v1 = vmov 0.0   ;;  %v1874_v3 = vld [vmem:[%s2418_s3 + $0x70] sm:$0xff]   ;;  %vm1988_vm0 = vmmov 0   ;;  %s2432_s19 = smov (!%p302_p5, %s1973_s19), 1  ;;  %v1876_v5 = vld [vmem:[%s2418_s3 + $0x68] sm:$0xff]  }
   0xf   : > { %1649 = vmatprep.subr.bf16.mxu0 %v1987_v1  ;;  %1669 = vmatprep.subr.bf16.mxu1 %v1987_v1  ;;  %v1873_v2 = vld [vmem:[%s2418_s3 + $0x38] sm:$0xff]   ;;  %v1875_v4 = vld [vmem:[%s2418_s3 + $0x30] sm:$0xff]   ;;  %s305_s8 = scalar_select %p304_p6, %s1969_s18, 9  ;;  %v1877_v6 = vld [vmem:[%s2418_s3 + $0x28] sm:$0xff]  }
  0x10   : > { %1650 = vmatpush3.bf16.msra.mxu0 %v1872_v0  ;;  %1665 = vmatprep.mubr.msk.bf16.mxu0 %vm1988_vm0, %v1987_v1  ;;  %s2083_s11 = smul.u32 20, %s2432_s19  ;;  %v1878_v7 = vld [vmem:[%s2418_s3 + $0x60] sm:$0xff]   ;;  %v1880_v9 = vld [vmem:[%s2418_s3 + $0x58] sm:$0xff]   ;;  %v1882_v14 = vld [vmem:[%s2418_s3 + $0x50] sm:$0xff]   ;;  %s2436_s29 = smov (!%p325_p8, %s322_s29), 9 }
  0x11   : > { %1670 = vmatpush3.bf16.msra.mxu1 %v1873_v2  ;;  %1651 = vmatprep.subr.bf16.mxu0 %v1987_v1  ;;  %s1482_s14 = sshll.u32 %s305_s8, 1  ;;  %v1879_v8 = vld [vmem:[%s2418_s3 + $0x20] sm:$0xff]   ;;  %v1881_v10 = vld [vmem:[%s2418_s3 + $0x18] sm:$0xff]   ;;  %v1883_v15 = vld [vmem:[%s2418_s3 + $0x10] sm:$0xff]   ;;  %s1486_s26 = sshll.u32 %s2436_s29, 1 }
  0x12   : > { %1671 = vmatprep.subr.bf16.mxu1 %v1987_v1  ;;  %1685 = vmatprep.mubr.msk.bf16.mxu1 %vm1988_vm0, %v1987_v1  ;;  %s308_s15 = sadd.s32 %s2083_s11, %s1482_s14  ;;  %v1884_v17 = vld [vmem:[%s2418_s3 + $0x48] sm:$0xff]   ;;  %v1886_v21 = vld [vmem:[%s2418_s3 + $0x40] sm:$0xff]   ;;  %v1889_v24 = vld [vmem:[%s2418_s3 + $0xb8] sm:$0xff]   ;;  %s329_s28 = sadd.s32 %s2083_s11, %s1486_s26 }
  0x13   : > { %s1483_s25 = sshll.u32 %s308_s15, 2  ;;  %v1885_v18 = vld [vmem:[%s2418_s3 + $0x8] sm:$0xff]   ;;  %v1887_v22 = vld [vmem:[%s2418_s3] sm:$0xff]   ;;  %v1890_v25 = vld [vmem:[%s2418_s3 + $0xf8] sm:$0xff]   ;;  %s1487_s29 = sshll.u32 %s329_s28, 2 }
  0x14   : > { %1652 = vmatpush3.bf16.msra.mxu0 %v1874_v3  ;;  %s310_s30 = scalar_lea.vmem %s2415_s0, %s1483_s25  ;;  %v1891_v26 = vld [vmem:[%s2418_s3 + $0xb0] sm:$0xff]   ;;  %v1893_v28 = vld [vmem:[%s2418_s3 + $0xa8] sm:$0xff]   ;;  %s311_s25 = sadd.s32 1, %s1969_s18  ;;  %v1895_v30 = vld [vmem:[%s2418_s3 + $0xa0] sm:$0xff]  }
  0x15   : > { %1672 = vmatpush3.bf16.msra.mxu1 %v1875_v4  ;;  %1653 = vmatprep.subr.bf16.mxu0 %v1987_v1  ;;  %v342_v11 = vld [vmem:[%s310_s30] sm:$0xf]  ;;  %v343_v12 = vld [vmem:[%s310_s30 + $0x4] sm:$0x1]  ;;  %v1892_v27 = vld [vmem:[%s2418_s3 + $0xf0] sm:$0xff]   ;;  %p314_p7 = scmp.lt.s32.totalorder %s311_s25, 9  ;;  %s331_s14 = scalar_lea.vmem %s2417_s2, %s1487_s29 }
  0x16   : > { %1673 = vmatprep.subr.bf16.mxu1 %v1987_v1  ;;  %v2110_v13 = vcombine.low %v342_v11, %v343_v12  ;;  %v1894_v29 = vld [vmem:[%s2418_s3 + $0xe8] sm:$0xff]   ;;  %v1896_v31 = vld [vmem:[%s2418_s3 + $0xe0] sm:$0xff]   ;;  %v1897_v32 = vld [vmem:[%s2418_s3 + $0x98] sm:$0xff]   ;;  %s2438_s18 = smov (!%p335_p9, %s1969_s18), 7 }
  0x17   : > { %s2434_s25 = smov (!%p314_p7, %s311_s25), 9  ;;  %v1898_v33 = vld [vmem:[%s2418_s3 + $0xd8] sm:$0xff]   ;;  %v1899_v34 = vld [vmem:[%s2418_s3 + $0x90] sm:$0xff]   ;;  %v1901_v36 = vld [vmem:[%s2418_s3 + $0x88] sm:$0xff]  }
  0x18   : > { %1654 = vmatpush3.bf16.msra.mxu0 %v1876_v5  ;;  %v388_v16 = vshll.u32 %v2110_v13, 16  ;;  %v386_v19 = vshrl.u32 %v2110_v13, 16  ;;  %s1484_s12 = sshll.u32 %s2434_s25, 1  ;;  %v1900_v35 = vld [vmem:[%s2418_s3 + $0xd0] sm:$0xff]   ;;  %v1902_v37 = vld [vmem:[%s2418_s3 + $0xc8] sm:$0xff]   ;;  %v1903_v38 = vld [vmem:[%s2418_s3 + $0x80] sm:$0xff]  }
  0x19   : > { %1674 = vmatpush3.bf16.msra.mxu1 %v1877_v6  ;;  %1655 = vmatprep.subr.bf16.mxu0 %v1987_v1  ;;  %s318_s15 = sadd.s32 %s2083_s11, %s1484_s12  ;;  %v1904_v39 = vld [vmem:[%s2418_s3 + $0xc0] sm:$0xff]   ;;  %v585_v40 = vrot.slane %v2110_v13, 1  ;;  %v1905_v41 = vld [vmem:[%s2418_s3 + $0x138] sm:$0xff]   ;;  %v1908_v44 = vld [vmem:[%s2418_s3 + $0x130] sm:$0xff]   ;;  %s1488_s11 = sshll.u32 %s2432_s19, 3 }
  0x1a   : > { %1675 = vmatprep.subr.bf16.mxu1 %v1987_v1  ;;  %v390_v20 = vrot.slane %v388_v16, 1  ;;  %s1485_s27 = sshll.u32 %s318_s15, 2  ;;  %v1907_v43 = vld [vmem:[%s2418_s3 + $0x178] sm:$0xff]   ;;  %v1909_v45 = vld [vmem:[%s2418_s3 + $0x170] sm:$0xff]   ;;  %v1910_v46 = vld [vmem:[%s2418_s3 + $0x128] sm:$0xff]   ;;  %s338_s12 = sadd.s32 %s1488_s11, %s2438_s18 }
  0x1b   : > { %s2210_s9 = scalar_lea.vmem %s2416_s1, %s1485_s27  ;;  %v1911_v47 = vld [vmem:[%s2418_s3 + $0x168] sm:$0xff]   ;;  %v1912_v48 = vld [vmem:[%s2418_s3 + $0x120] sm:$0xff]   ;;  %v1914_v51 = vld [vmem:[%s2418_s3 + $0x118] sm:$0xff]   ;;  %s1489_s15 = sshll.u32 %s338_s12, 2 }
  0x1c   : > { %1656 = vmatpush3.bf16.msra.mxu0 %v1878_v7  ;;  %v391_v23 = vor.u32 %v390_v20, %v386_v19  ;;  %v344_v42 = vld [vmem:[%s2210_s9] sm:$0xf]  ;;  %v345_v50 = vld [vmem:[%s2210_s9 + $0x4] sm:$0x1]  ;;  %v1915_v52 = vld [vmem:[%s2418_s3 + $0x158] sm:$0xff]   ;;  %s340_s17 = scalar_lea.vmem %s2420_s5, %s1489_s15 }
  0x1d   : > { %1676 = vmatpush3.bf16.msra.mxu1 %v1879_v8  ;;  %1657 = vmatprep.subr.bf16.mxu0 %v1987_v1  ;;  %v1913_v49 = vld [vmem:[%s2418_s3 + $0x160] sm:$0xff]   ;;  %v1523_v53 = vcombine.low %v344_v42, %v345_v50  ;;  %v1916_v54 = vld [vmem:[%s2418_s3 + $0x110] sm:$0xff]   ;;  %v1918_v57 = vld [vmem:[%s2418_s3 + $0x108] sm:$0xff]  }
  0x1e   : > { %1677 = vmatprep.subr.bf16.mxu1 %v1987_v1  ;;  %v1917_v55 = vld [vmem:[%s2418_s3 + $0x150] sm:$0xff]   ;;  %v1919_v58 = vld [vmem:[%s2418_s3 + $0x148] sm:$0xff]   ;;  %v1920_v61 = vld [vmem:[%s2418_s3 + $0x100] sm:$0xff]  }
  0x1f   : > { %v805_v56 = vshll.u32 %v1523_v53, 16  ;;  %v803_v59 = vshrl.u32 %v1523_v53, 16  ;;  %v1921_v62 = vld [vmem:[%s2418_s3 + $0x140] sm:$0xff]   ;;  %v1922_v0 = vld [vmem:[%s2418_s3 + $0x1b8] sm:$0xff]   ;;  %v915_v2 = vrot.slane %v1523_v53, 1  ;;  %v1924_v4 = vld [vmem:[%s2418_s3 + $0x1b0] sm:$0xff]  }
  0x20   : > { %1658 = vmatpush3.bf16.msra.mxu0 %v1880_v9  ;;  %v1923_v3 = vld [vmem:[%s2418_s3 + $0x1f8] sm:$0xff]   ;;  %v1925_v5 = vld [vmem:[%s2418_s3 + $0x1f0] sm:$0xff]   ;;  %v1926_v6 = vld [vmem:[%s2418_s3 + $0x1a8] sm:$0xff]  }
  0x21   : > { %1678 = vmatpush3.bf16.msra.mxu1 %v1881_v10  ;;  %1659 = vmatprep.subr.bf16.mxu0 %v1987_v1  ;;  %v807_v60 = vrot.slane %v805_v56, 1  ;;  %v1927_v7 = vld [vmem:[%s2418_s3 + $0x1e8] sm:$0xff]   ;;  %v1928_v8 = vld [vmem:[%s2418_s3 + $0x1a0] sm:$0xff]   ;;  %v1930_v10 = vld [vmem:[%s2418_s3 + $0x198] sm:$0xff]  }
  0x22   : > { %1679 = vmatprep.subr.bf16.mxu1 %v1987_v1  ;;  %v1929_v9 = vld [vmem:[%s2418_s3 + $0x1e0] sm:$0xff]   ;;  %v1933_v16 = vld [vmem:[%s2418_s3 + $0x1d0] sm:$0xff]   ;;  %v1935_v19 = vld [vmem:[%s2418_s3 + $0x1c8] sm:$0xff]  }
  0x23   : > { %v808_v63 = vor.u32 %v807_v60, %v803_v59  ;;  %v346_v12 = vld [vmem:[%s331_s14] sm:$0xf]  ;;  %v347_v13 = vld [vmem:[%s331_s14 + $0x4] sm:$0x1] }
  0x24   : > { %1660 = vmatpush3.bf16.msra.mxu0 %v1882_v14  ;;  %v1932_v14 = vld [vmem:[%s2418_s3 + $0x190] sm:$0xff]   ;;  %v1936_v20 = vld [vmem:[%s2418_s3 + $0x180] sm:$0xff]  }
  0x25   : > { %1680 = vmatpush3.bf16.msra.mxu1 %v1883_v15  ;;  %1661 = vmatprep.subr.bf16.mxu0 %v1987_v1  ;;  %v1548_v15 = vcombine.low %v346_v12, %v347_v13 }
  0x26   : > { %1681 = vmatprep.subr.bf16.mxu1 %v1987_v1 }
  0x28   : > { %1662 = vmatpush3.bf16.msra.mxu0 %v1884_v17  ;;  %v1934_v17 = vld [vmem:[%s2418_s3 + $0x188] sm:$0xff]  }
  0x29   : > { %1682 = vmatpush3.bf16.msra.mxu1 %v1885_v18  ;;  %1663 = vmatprep.subr.bf16.mxu0 %v1987_v1  ;;  %v1135_v18 = vshll.u32 %v1548_v15, 16 }
  0x2a   : > { %1683 = vmatprep.subr.bf16.mxu1 %v1987_v1 }
  0x2c   : > { %1664 = vmatpush3.bf16.msra.mxu0 %v1886_v21  ;;  %v1133_v21 = vshrl.u32 %v1548_v15, 16 }
  0x2d   : > { %1684 = vmatpush3.bf16.msra.mxu1 %v1887_v22  ;;  %1689 = vmatprep.subr.bf16.mxu0 %v1987_v1  ;;  %v1137_v22 = vrot.slane %v1135_v18, 1 }
  0x2e   : > { %1709 = vmatprep.subr.bf16.mxu1 %v1987_v1 }
  0x2f   : > { %1666 = vmatmul.mubr.bf16.vlgmr.msra.gmra.mxu0 %v391_v23  ;;  %v1937_v23 = vld [vmem:[%s2418_s3 + $0x1c0] sm:$0xff]  }
  0x30   : > { %1686 = vmatmul.mubr.bf16.vlgmr.msra.gmra.mxu1 %v342_v11  ;;  %1690 = vmatpush3.bf16.msra.mxu0 %v1889_v24  ;;  %v1931_v11 = vld [vmem:[%s2418_s3 + $0x1d8] sm:$0xff]  }
  0x31   : > { %1710 = vmatpush3.bf16.msra.mxu1 %v1890_v25  ;;  %1691 = vmatprep.subr.bf16.mxu0 %v1987_v1  ;;  %v1939_v24 = vld [vmem:[%s2418_s3 + $0x238] sm:$0xff]   ;;  %v1138_v25 = vor.u32 %v1137_v22, %v1133_v21 }
  0x32   : > { %1711 = vmatprep.subr.bf16.mxu1 %v1987_v1  ;;  %1705 = vmatprep.mubr.msk.bf16.mxu0 %vm1988_vm0, %v1987_v1 }
  0x33   : > { %1725 = vmatprep.mubr.msk.bf16.mxu1 %vm1988_vm0, %v1987_v1 }
  0x34   : > { %1692 = vmatpush3.bf16.msra.mxu0 %v1891_v26  ;;  %v1940_v26 = vld [vmem:[%s2418_s3 + $0x230] sm:$0xff]  }
  0x35   : > { %1712 = vmatpush3.bf16.msra.mxu1 %v1892_v27  ;;  %1693 = vmatprep.subr.bf16.mxu0 %v1987_v1  ;;  %v1941_v27 = vld [vmem:[%s2418_s3 + $0x228] sm:$0xff]  }
  0x36   : > { %1713 = vmatprep.subr.bf16.mxu1 %v1987_v1 }
  0x38   : > { %1694 = vmatpush3.bf16.msra.mxu0 %v1893_v28  ;;  %v1942_v28 = vld [vmem:[%s2418_s3 + $0x220] sm:$0xff]  }
  0x39   : > { %1714 = vmatpush3.bf16.msra.mxu1 %v1894_v29  ;;  %1695 = vmatprep.subr.bf16.mxu0 %v1987_v1  ;;  %v1943_v29 = vld [vmem:[%s2418_s3 + $0x218] sm:$0xff]  }
  0x3a   : > { %1715 = vmatprep.subr.bf16.mxu1 %v1987_v1 }
  0x3c   : > { %1696 = vmatpush3.bf16.msra.mxu0 %v1895_v30  ;;  %v1944_v30 = vld [vmem:[%s2418_s3 + $0x210] sm:$0xff]  }
  0x3d   : > { %1716 = vmatpush3.bf16.msra.mxu1 %v1896_v31  ;;  %1697 = vmatprep.subr.bf16.mxu0 %v1987_v1  ;;  %v1945_v31 = vld [vmem:[%s2418_s3 + $0x208] sm:$0xff]  }
  0x3e   : > { %1717 = vmatprep.subr.bf16.mxu1 %v1987_v1 }
  0x40   : > { %1698 = vmatpush3.bf16.msra.mxu0 %v1897_v32  ;;  %v1946_v32 = vld [vmem:[%s2418_s3 + $0x200] sm:$0xff]  }
  0x41   : > { %1718 = vmatpush3.bf16.msra.mxu1 %v1898_v33  ;;  %1699 = vmatprep.subr.bf16.mxu0 %v1987_v1  ;;  %v1245_v33 = vrot.slane %v1548_v15, 1 }
  0x42   : > { %1719 = vmatprep.subr.bf16.mxu1 %v1987_v1 }
  0x44   : > { %1700 = vmatpush3.bf16.msra.mxu0 %v1899_v34 }
  0x45   : > { %1720 = vmatpush3.bf16.msra.mxu1 %v1900_v35  ;;  %1701 = vmatprep.subr.bf16.mxu0 %v1987_v1 }
  0x46   : > { %1721 = vmatprep.subr.bf16.mxu1 %v1987_v1 }
  0x48   : > { %1702 = vmatpush3.bf16.msra.mxu0 %v1901_v36 }
  0x49   : > { %1722 = vmatpush3.bf16.msra.mxu1 %v1902_v37  ;;  %1703 = vmatprep.subr.bf16.mxu0 %v1987_v1 }
  0x4a   : > { %1723 = vmatprep.subr.bf16.mxu1 %v1987_v1 }
  0x4c   : > { %1704 = vmatpush3.bf16.msra.mxu0 %v1903_v38 }
  0x4d   : > { %1724 = vmatpush3.bf16.msra.mxu1 %v1904_v39  ;;  %1729 = vmatprep.subr.bf16.mxu0 %v1987_v1 }
  0x4e   : > { %1749 = vmatprep.subr.bf16.mxu1 %v1987_v1 }
  0x4f   : > { %1706 = vmatmul.mubr.bf16.vlgmr.msra.gmra.mxu0 %v585_v40 }
  0x50   : > { %1730 = vmatpush3.bf16.msra.mxu0 %v1905_v41  ;;  %1726 = vmatmul.mubr.bf16.vlgmr.msra.gmra.mxu1 %v344_v42 }
  0x51   : > { %1750 = vmatpush3.bf16.msra.mxu1 %v1907_v43  ;;  %1731 = vmatprep.subr.bf16.mxu0 %v1987_v1 }
  0x52   : > { %1751 = vmatprep.subr.bf16.mxu1 %v1987_v1  ;;  %1745 = vmatprep.mubr.msk.bf16.mxu0 %vm1988_vm0, %v1987_v1 }
  0x53   : > { %1765 = vmatprep.mubr.msk.bf16.mxu1 %vm1988_vm0, %v1987_v1 }
  0x54   : > { %1732 = vmatpush3.bf16.msra.mxu0 %v1908_v44 }
  0x55   : > { %1752 = vmatpush3.bf16.msra.mxu1 %v1909_v45  ;;  %1733 = vmatprep.subr.bf16.mxu0 %v1987_v1 }
  0x56   : > { %1753 = vmatprep.subr.bf16.mxu1 %v1987_v1 }
  0x58   : > { %1734 = vmatpush3.bf16.msra.mxu0 %v1910_v46 }
  0x59   : > { %1754 = vmatpush3.bf16.msra.mxu1 %v1911_v47  ;;  %1735 = vmatprep.subr.bf16.mxu0 %v1987_v1 }
  0x5a   : > { %1755 = vmatprep.subr.bf16.mxu1 %v1987_v1 }
  0x5c   : > { %1736 = vmatpush3.bf16.msra.mxu0 %v1912_v48 }
  0x5d   : > { %1756 = vmatpush3.bf16.msra.mxu1 %v1913_v49  ;;  %1737 = vmatprep.subr.bf16.mxu0 %v1987_v1 }
  0x5e   : > { %1757 = vmatprep.subr.bf16.mxu1 %v1987_v1 }
  0x60   : > { %1738 = vmatpush3.bf16.msra.mxu0 %v1914_v51 }
  0x61   : > { %1758 = vmatpush3.bf16.msra.mxu1 %v1915_v52  ;;  %1739 = vmatprep.subr.bf16.mxu0 %v1987_v1 }
  0x62   : > { %1759 = vmatprep.subr.bf16.mxu1 %v1987_v1 }
  0x64   : > { %1740 = vmatpush3.bf16.msra.mxu0 %v1916_v54 }
  0x65   : > { %1760 = vmatpush3.bf16.msra.mxu1 %v1917_v55  ;;  %1741 = vmatprep.subr.bf16.mxu0 %v1987_v1 }
  0x66   : > { %1761 = vmatprep.subr.bf16.mxu1 %v1987_v1 }
  0x68   : > { %1742 = vmatpush3.bf16.msra.mxu0 %v1918_v57 }
  0x69   : > { %1762 = vmatpush3.bf16.msra.mxu1 %v1919_v58  ;;  %1743 = vmatprep.subr.bf16.mxu0 %v1987_v1 }
  0x6a   : > { %1763 = vmatprep.subr.bf16.mxu1 %v1987_v1 }
  0x6c   : > { %1744 = vmatpush3.bf16.msra.mxu0 %v1920_v61 }
  0x6d   : > { %1764 = vmatpush3.bf16.msra.mxu1 %v1921_v62  ;;  %1769 = vmatprep.subr.bf16.mxu0 %v1987_v1 }
  0x6e   : > { %1789 = vmatprep.subr.bf16.mxu1 %v1987_v1 }
  0x6f   : > { %1746 = vmatmul.mubr.bf16.vlgmr.msra.gmra.mxu0 %v808_v63 }
  0x70   : > { %1770 = vmatpush3.bf16.msra.mxu0 %v1922_v0  ;;  %1766 = vmatmul.mubr.bf16.vlgmr.msra.gmra.mxu1 %v915_v2 }
  0x71   : > { %1790 = vmatpush3.bf16.msra.mxu1 %v1923_v3  ;;  %1771 = vmatprep.subr.bf16.mxu0 %v1987_v1 }
  0x72   : > { %1791 = vmatprep.subr.bf16.mxu1 %v1987_v1  ;;  %1785 = vmatprep.mubr.msk.bf16.mxu0 %vm1988_vm0, %v1987_v1 }
  0x73   : > { %1805 = vmatprep.mubr.msk.bf16.mxu1 %vm1988_vm0, %v1987_v1 }
  0x74   : > { %1772 = vmatpush3.bf16.msra.mxu0 %v1924_v4 }
  0x75   : > { %1792 = vmatpush3.bf16.msra.mxu1 %v1925_v5  ;;  %1773 = vmatprep.subr.bf16.mxu0 %v1987_v1 }
  0x76   : > { %1793 = vmatprep.subr.bf16.mxu1 %v1987_v1 }
  0x78   : > { %1774 = vmatpush3.bf16.msra.mxu0 %v1926_v6 }
  0x79   : > { %1794 = vmatpush3.bf16.msra.mxu1 %v1927_v7  ;;  %1775 = vmatprep.subr.bf16.mxu0 %v1987_v1 }
  0x7a   : > { %1795 = vmatprep.subr.bf16.mxu1 %v1987_v1 }
  0x7c   : > { %1776 = vmatpush3.bf16.msra.mxu0 %v1928_v8 }
  0x7d   : > { %1796 = vmatpush3.bf16.msra.mxu1 %v1929_v9  ;;  %1777 = vmatprep.subr.bf16.mxu0 %v1987_v1 }
  0x7e   : > { %1797 = vmatprep.subr.bf16.mxu1 %v1987_v1 }
  0x80   : > { %1778 = vmatpush3.bf16.msra.mxu0 %v1930_v10  ;;  %v1565_v10 = vld [vmem:[%s2419_s4] ss:$0 sm:$0xff] }
  0x81   : > { %1798 = vmatpush3.bf16.msra.mxu1 %v1931_v11  ;;  %1779 = vmatprep.subr.bf16.mxu0 %v1987_v1 }
  0x82   : > { %1799 = vmatprep.subr.bf16.mxu1 %v1987_v1 }
  0x84   : > { %1780 = vmatpush3.bf16.msra.mxu0 %v1932_v14 }
  0x85   : > { %1800 = vmatpush3.bf16.msra.mxu1 %v1933_v16  ;;  %1781 = vmatprep.subr.bf16.mxu0 %v1987_v1 }
  0x86   : > { %1801 = vmatprep.subr.bf16.mxu1 %v1987_v1 }
  0x88   : > { %1782 = vmatpush3.bf16.msra.mxu0 %v1934_v17 }
  0x89   : > { %1802 = vmatpush3.bf16.msra.mxu1 %v1935_v19  ;;  %1783 = vmatprep.subr.bf16.mxu0 %v1987_v1 }
  0x8a   : > { %1803 = vmatprep.subr.bf16.mxu1 %v1987_v1 }
  0x8c   : > { %1784 = vmatpush3.bf16.msra.mxu0 %v1936_v20 }
  0x8d   : > { %1804 = vmatpush3.bf16.msra.mxu1 %v1937_v23  ;;  %1809 = vmatprep.subr.bf16.mxu0 %v1987_v1 }
  0x8f   : > { %1786 = vmatmul.mubr.bf16.vlgmr.msra.gmra.mxu0 %v346_v12 }
  0x90   : > { %1810 = vmatpush3.bf16.msra.mxu0 %v1939_v24  ;;  %1806 = vmatmul.mubr.bf16.vlgmr.msra.gmra.mxu1 %v1138_v25 }
  0x91   : > { %1811 = vmatprep.subr.bf16.mxu0 %v1987_v1  ;;  %1825 = vmatprep.mubr.msk.bf16.mxu0 %vm1988_vm0, %v1987_v1 }
  0x94   : > { %1812 = vmatpush3.bf16.msra.mxu0 %v1940_v26 }
  0x95   : > { %1813 = vmatprep.subr.bf16.mxu0 %v1987_v1 }
  0x98   : > { %1814 = vmatpush3.bf16.msra.mxu0 %v1941_v27 }
  0x99   : > { %1815 = vmatprep.subr.bf16.mxu0 %v1987_v1 }
  0x9c   : > { %1816 = vmatpush3.bf16.msra.mxu0 %v1942_v28 }
  0x9d   : > { %1817 = vmatprep.subr.bf16.mxu0 %v1987_v1 }
  0xa0   : > { %1818 = vmatpush3.bf16.msra.mxu0 %v1943_v29 }
  0xa1   : > { %1819 = vmatprep.subr.bf16.mxu0 %v1987_v1 }
  0xa4   : > { %1820 = vmatpush3.bf16.msra.mxu0 %v1944_v30 }
  0xa5   : > { %1821 = vmatprep.subr.bf16.mxu0 %v1987_v1 }
  0xa8   : > { %1822 = vmatpush3.bf16.msra.mxu0 %v1945_v31 }
  0xa9   : > { %1823 = vmatprep.subr.bf16.mxu0 %v1987_v1 }
  0xac   : > { %1824 = vmatpush3.bf16.msra.mxu0 %v1946_v32 }
  0xaf   : > { %1826 = vmatmul.mubr.bf16.vlgmr.msra.gmra.mxu0 %v1245_v33 }
  0xef   : > { %v475_v34 = vpop.f32.mrf.mxu0 }
  0xf0   : > { %v563_v35 = vpop.f32.mrf.mxu1 }
  0xf1   : > { %v564_v36 = vadd.f32 %v563_v35, %v475_v34  ;;  %v1667_v37 = vpop.f32.mrf.mxu0 }
  0xf2   : > { %v1687_v38 = vpop.f32.mrf.mxu1 }
  0xf3   : > { %v478_v39 = vpop.f32.mrf.mxu0 }
  0xf4   : > { %v566_v40 = vpop.f32.mrf.mxu1 }
  0xf5   : > { %v1668_v41 = vpop.f32.mrf.mxu0 }
  0xf6   : > { %v1688_v42 = vpop.f32.mrf.mxu1 }
 0x10f   : > { %v669_v43 = vpop.f32.mrf.mxu0 }
 0x110   : > { %v675_v44 = vadd.f32 %v669_v43, %v564_v36  ;;  %v774_v45 = vpop.f32.mrf.mxu1 }
 0x111   : > { %v1707_v46 = vpop.f32.mrf.mxu0 }
 0x112   : > { %v780_v47 = vadd.f32 %v774_v45, %v675_v44  ;;  %v1727_v48 = vpop.f32.mrf.mxu1 }
 0x113   : > { %v672_v49 = vpop.f32.mrf.mxu0 }
 0x114   : > { %v777_v1 = vpop.f32.mrf.mxu1 }
 0x115   : > { %v1708_v50 = vpop.f32.mrf.mxu0 }
 0x116   : > { %v1728_v51 = vpop.f32.mrf.mxu1 }
 0x12f   : > { %v892_v52 = vpop.f32.mrf.mxu0 }
 0x130   : > { %v999_v53 = vpop.f32.mrf.mxu1  ;;  %v898_v5 = vadd.f32 %v892_v52, %v780_v47 }
 0x131   : > { %v1747_v54 = vpop.f32.mrf.mxu0 }
 0x132   : > { %v1767_v55 = vpop.f32.mrf.mxu1  ;;  %v1005_v6 = vadd.f32 %v999_v53, %v898_v5 }
 0x133   : > { %v895_v56 = vpop.f32.mrf.mxu0 }
 0x134   : > { %v1002_v57 = vpop.f32.mrf.mxu1 }
 0x135   : > { %v1748_v58 = vpop.f32.mrf.mxu0 }
 0x136   : > { %v1768_v59 = vpop.f32.mrf.mxu1 }
 0x14f   : > { %v1104_v60 = vpop.f32.mrf.mxu0 }
 0x150   : > { %v1222_v61 = vpop.f32.mrf.mxu1  ;;  %v1110_v7 = vadd.f32 %v1104_v60, %v1005_v6 }
 0x151   : > { %v1787_v62 = vpop.f32.mrf.mxu0 }
 0x152   : > { %v1807_v63 = vpop.f32.mrf.mxu1  ;;  %v1228_v8 = vadd.f32 %v1222_v61, %v1110_v7 }
 0x153   : > { %v1107_v0 = vpop.f32.mrf.mxu0 }
 0x154   : > { %v1225_v2 = vpop.f32.mrf.mxu1 }
 0x155   : > { %v1788_v3 = vpop.f32.mrf.mxu0 }
 0x156   : > { %v1808_v4 = vpop.f32.mrf.mxu1 }
 0x16f   : > { %v1329_v9 = vpop.f32.mrf.mxu0 }
 0x170   : > { %v1335_v11 = vadd.f32 %v1329_v9, %v1228_v8 }
 0x171   : > { %v1827_v12 = vpop.f32.mrf.mxu0 }
 0x172   : > { %v1343_v13 = vadd.f32 %v1565_v10, %v1335_v11 }
 0x173   : > { %v1332_v14 = vpop.f32.mrf.mxu0 }
 0x174   : > { %v1344_v15 = vpack.c.bf16 %v1343_v13, %v1343_v13 }
 0x175   : > { %v1828_v16 = vpop.f32.mrf.mxu0 }
 0x176   : > { %1345 = vst [vmem:[%s340_s17] sm:$0xf] %v1344_v15 }
 0x177 PF: > { %s15_s22 = sadd.s32 1, %s1985_s22   ;;  %s2421_s18 = smov %s1977_s20 }
 0x178   : > { %p12_p10 = scmp.ge.s32.totalorder %s15_s22, 18   ;;  %s2422_s19 = smov %s1981_s21 }
 0x179   : > { %s2423_s20 = smov %s2426_s23  ;;  %s2424_s21 = smov %s2430_s24 }
 0x17a   :  { %14 = sbr.rel (!%p12_p10) target bundleno = 3 (0x3), region = 76 }

// kernel: depth_pro_scaled.15
= control target key start
LH: loop header
LB: loop body
LE: loop exit
PB: predicated region body
PF: predicated region fallthrough
CT: control target
= control target key end

     0   :  { %s2020_s18 = smov 0   ;;  %s2022_s19 = smov 0   ;;  %s2416_s0 = inlined_call_operand.vmem [shape: bf16[2,10,10,128], index: 0, kind: input, shape index: {}, may-alias: {0,1,2}]   ;;  %s2417_s1 = inlined_call_operand.vmem [shape: bf16[2,10,10,128], index: 1, kind: input, shape index: {}, may-alias: {0,1,2}]   ;;  %s2418_s2 = inlined_call_operand.vmem [shape: bf16[2,10,10,128], index: 2, kind: input, shape index: {}, may-alias: {0,1,2}]   ;;  %s2419_s3 = inlined_call_operand.vmem [shape: bf16[1152,128], index: 3, kind: input, shape index: {}]   ;;  %s2420_s4 = inlined_call_operand.vmem [shape: f32[1,128], index: 4, kind: input, shape index: {}]   ;;  %s2421_s5 = inlined_call_operand.vmem [shape: bf16[2,8,8,128], index: 5, kind: output, shape index: {}]  }
   0x1   :  { %s2024_s20 = smov 0   ;;  %s2026_s21 = smov 0  }
   0x2   :  { %s2028_s22 = smov 0  }
   0x3 LB: > { %s24_s23 = sadd.s32 1, %s1978_s20  ;;  %s27_s24 = sadd.s32 1, %s1982_s21  ;;  %s1986_s22 = sphi %s2028_s22, %s15_s22   ;;  %s1982_s21 = sphi %s2026_s21, %s2425_s21   ;;  %s1978_s20 = sphi %s2024_s20, %s2424_s20   ;;  %s1974_s19 = sphi %s2022_s19, %s2423_s19   ;;  %s1970_s18 = sphi %s2020_s18, %s2422_s18  }
   0x4   : > { %p25_p0 = scmp.ge.s32.totalorder %s24_s23, 8  ;;  %p1482_p1 = scmp.ge.s32.totalorder %s1986_s22, 1 }
   0x5   : > { %p247_p2 = scmp.lt.s32.totalorder %s1986_s22, 17 }
   0x6   : > { %s2427_s23 = smov (%p25_p0, %s24_s23), 0  ;;  %s2429_s24 = smov (!%p25_p0, %s27_s24), %s1982_s21 }
   0x7   : > { %p248_p3 = pnand %p1482_p1, %p247_p2  ;;  %p29_p4 = scmp.ge.s32.totalorder %s2429_s24, 2 }
   0x8   : > { %p302_p5 = scmp.lt.s32.totalorder (!%p248_p3), %s1974_s19, 1  ;;  %p304_p6 = scmp.lt.s32.totalorder (!%p248_p3), %s1970_s18, 9 }
   0x9   : > { %s2431_s24 = smov (%p29_p4, %s2429_s24), 0  ;;  %251 = sbr.rel (%p248_p3) target bundleno = 377 (0x179), region = 40 }
   0xa   : > { %s322_s29 = sadd.s32 (!%p248_p3), 2, %s1970_s18  ;;  %p335_p9 = scmp.lt.s32.totalorder (!%p248_p3), %s1970_s18, 7 }
   0xb   : > { %p325_p8 = scmp.lt.s32.totalorder (!%p248_p3), %s322_s29, 9 }
   0xe   : > { %v1873_v0 = vld [vmem:[%s2419_s3 + $0x78] sm:$0xff]   ;;  %v1988_v1 = vmov 0.0   ;;  %v1875_v3 = vld [vmem:[%s2419_s3 + $0x70] sm:$0xff]   ;;  %vm1989_vm0 = vmmov 0   ;;  %s2433_s19 = smov (!%p302_p5, %s1974_s19), 1  ;;  %v1877_v5 = vld [vmem:[%s2419_s3 + $0x68] sm:$0xff]  }
   0xf   : > { %1650 = vmatprep.subr.bf16.mxu0 %v1988_v1  ;;  %1670 = vmatprep.subr.bf16.mxu1 %v1988_v1  ;;  %v1874_v2 = vld [vmem:[%s2419_s3 + $0x38] sm:$0xff]   ;;  %v1876_v4 = vld [vmem:[%s2419_s3 + $0x30] sm:$0xff]   ;;  %s305_s8 = scalar_select %p304_p6, %s1970_s18, 9  ;;  %v1878_v6 = vld [vmem:[%s2419_s3 + $0x28] sm:$0xff]  }
  0x10   : > { %1651 = vmatpush3.bf16.msra.mxu0 %v1873_v0  ;;  %1666 = vmatprep.mubr.msk.bf16.mxu0 %vm1989_vm0, %v1988_v1  ;;  %s2084_s11 = smul.u32 20, %s2433_s19  ;;  %v1879_v7 = vld [vmem:[%s2419_s3 + $0x60] sm:$0xff]   ;;  %v1881_v9 = vld [vmem:[%s2419_s3 + $0x58] sm:$0xff]   ;;  %v1883_v14 = vld [vmem:[%s2419_s3 + $0x50] sm:$0xff]   ;;  %s2437_s29 = smov (!%p325_p8, %s322_s29), 9 }
  0x11   : > { %1671 = vmatpush3.bf16.msra.mxu1 %v1874_v2  ;;  %1652 = vmatprep.subr.bf16.mxu0 %v1988_v1  ;;  %s1483_s14 = sshll.u32 %s305_s8, 1  ;;  %v1880_v8 = vld [vmem:[%s2419_s3 + $0x20] sm:$0xff]   ;;  %v1882_v10 = vld [vmem:[%s2419_s3 + $0x18] sm:$0xff]   ;;  %v1884_v15 = vld [vmem:[%s2419_s3 + $0x10] sm:$0xff]   ;;  %s1487_s26 = sshll.u32 %s2437_s29, 1 }
  0x12   : > { %1672 = vmatprep.subr.bf16.mxu1 %v1988_v1  ;;  %1686 = vmatprep.mubr.msk.bf16.mxu1 %vm1989_vm0, %v1988_v1  ;;  %s308_s15 = sadd.s32 %s2084_s11, %s1483_s14  ;;  %v1885_v17 = vld [vmem:[%s2419_s3 + $0x48] sm:$0xff]   ;;  %v1887_v21 = vld [vmem:[%s2419_s3 + $0x40] sm:$0xff]   ;;  %v1890_v24 = vld [vmem:[%s2419_s3 + $0xb8] sm:$0xff]   ;;  %s329_s28 = sadd.s32 %s2084_s11, %s1487_s26 }
  0x13   : > { %s1484_s25 = sshll.u32 %s308_s15, 2  ;;  %v1886_v18 = vld [vmem:[%s2419_s3 + $0x8] sm:$0xff]   ;;  %v1888_v22 = vld [vmem:[%s2419_s3] sm:$0xff]   ;;  %v1891_v25 = vld [vmem:[%s2419_s3 + $0xf8] sm:$0xff]   ;;  %s1488_s29 = sshll.u32 %s329_s28, 2 }
  0x14   : > { %1653 = vmatpush3.bf16.msra.mxu0 %v1875_v3  ;;  %s310_s30 = scalar_lea.vmem %s2416_s0, %s1484_s25  ;;  %v1892_v26 = vld [vmem:[%s2419_s3 + $0xb0] sm:$0xff]   ;;  %v1894_v28 = vld [vmem:[%s2419_s3 + $0xa8] sm:$0xff]   ;;  %s311_s25 = sadd.s32 1, %s1970_s18  ;;  %v1896_v30 = vld [vmem:[%s2419_s3 + $0xa0] sm:$0xff]  }
  0x15   : > { %1673 = vmatpush3.bf16.msra.mxu1 %v1876_v4  ;;  %1654 = vmatprep.subr.bf16.mxu0 %v1988_v1  ;;  %v342_v11 = vld [vmem:[%s310_s30] sm:$0xf]  ;;  %v343_v12 = vld [vmem:[%s310_s30 + $0x4] sm:$0x1]  ;;  %v1893_v27 = vld [vmem:[%s2419_s3 + $0xf0] sm:$0xff]   ;;  %p314_p7 = scmp.lt.s32.totalorder %s311_s25, 9  ;;  %s331_s14 = scalar_lea.vmem %s2418_s2, %s1488_s29 }
  0x16   : > { %1674 = vmatprep.subr.bf16.mxu1 %v1988_v1  ;;  %v2111_v13 = vcombine.low %v342_v11, %v343_v12  ;;  %v1895_v29 = vld [vmem:[%s2419_s3 + $0xe8] sm:$0xff]   ;;  %v1897_v31 = vld [vmem:[%s2419_s3 + $0xe0] sm:$0xff]   ;;  %v1898_v32 = vld [vmem:[%s2419_s3 + $0x98] sm:$0xff]   ;;  %s2439_s18 = smov (!%p335_p9, %s1970_s18), 7 }
  0x17   : > { %s2435_s25 = smov (!%p314_p7, %s311_s25), 9  ;;  %v1899_v33 = vld [vmem:[%s2419_s3 + $0xd8] sm:$0xff]   ;;  %v1900_v34 = vld [vmem:[%s2419_s3 + $0x90] sm:$0xff]   ;;  %v1902_v36 = vld [vmem:[%s2419_s3 + $0x88] sm:$0xff]  }
  0x18   : > { %1655 = vmatpush3.bf16.msra.mxu0 %v1877_v5  ;;  %v388_v16 = vshll.u32 %v2111_v13, 16  ;;  %v386_v19 = vshrl.u32 %v2111_v13, 16  ;;  %s1485_s12 = sshll.u32 %s2435_s25, 1  ;;  %v1901_v35 = vld [vmem:[%s2419_s3 + $0xd0] sm:$0xff]   ;;  %v1903_v37 = vld [vmem:[%s2419_s3 + $0xc8] sm:$0xff]   ;;  %v1904_v38 = vld [vmem:[%s2419_s3 + $0x80] sm:$0xff]  }
  0x19   : > { %1675 = vmatpush3.bf16.msra.mxu1 %v1878_v6  ;;  %1656 = vmatprep.subr.bf16.mxu0 %v1988_v1  ;;  %s318_s15 = sadd.s32 %s2084_s11, %s1485_s12  ;;  %v1905_v39 = vld [vmem:[%s2419_s3 + $0xc0] sm:$0xff]   ;;  %v585_v40 = vrot.slane %v2111_v13, 1  ;;  %v1906_v41 = vld [vmem:[%s2419_s3 + $0x138] sm:$0xff]   ;;  %v1909_v44 = vld [vmem:[%s2419_s3 + $0x130] sm:$0xff]   ;;  %s1489_s11 = sshll.u32 %s2433_s19, 3 }
  0x1a   : > { %1676 = vmatprep.subr.bf16.mxu1 %v1988_v1  ;;  %v390_v20 = vrot.slane %v388_v16, 1  ;;  %s1486_s27 = sshll.u32 %s318_s15, 2  ;;  %v1908_v43 = vld [vmem:[%s2419_s3 + $0x178] sm:$0xff]   ;;  %v1910_v45 = vld [vmem:[%s2419_s3 + $0x170] sm:$0xff]   ;;  %v1911_v46 = vld [vmem:[%s2419_s3 + $0x128] sm:$0xff]   ;;  %s338_s12 = sadd.s32 %s1489_s11, %s2439_s18 }
  0x1b   : > { %s2211_s9 = scalar_lea.vmem %s2417_s1, %s1486_s27  ;;  %v1912_v47 = vld [vmem:[%s2419_s3 + $0x168] sm:$0xff]   ;;  %v1913_v48 = vld [vmem:[%s2419_s3 + $0x120] sm:$0xff]   ;;  %v1915_v51 = vld [vmem:[%s2419_s3 + $0x118] sm:$0xff]   ;;  %s1490_s15 = sshll.u32 %s338_s12, 2 }
  0x1c   : > { %1657 = vmatpush3.bf16.msra.mxu0 %v1879_v7  ;;  %v391_v23 = vor.u32 %v390_v20, %v386_v19  ;;  %v344_v42 = vld [vmem:[%s2211_s9] sm:$0xf]  ;;  %v345_v50 = vld [vmem:[%s2211_s9 + $0x4] sm:$0x1]  ;;  %v1916_v52 = vld [vmem:[%s2419_s3 + $0x158] sm:$0xff]   ;;  %s340_s17 = scalar_lea.vmem %s2421_s5, %s1490_s15 }
  0x1d   : > { %1677 = vmatpush3.bf16.msra.mxu1 %v1880_v8  ;;  %1658 = vmatprep.subr.bf16.mxu0 %v1988_v1  ;;  %v1914_v49 = vld [vmem:[%s2419_s3 + $0x160] sm:$0xff]   ;;  %v1524_v53 = vcombine.low %v344_v42, %v345_v50  ;;  %v1917_v54 = vld [vmem:[%s2419_s3 + $0x110] sm:$0xff]   ;;  %v1919_v57 = vld [vmem:[%s2419_s3 + $0x108] sm:$0xff]  }
  0x1e   : > { %1678 = vmatprep.subr.bf16.mxu1 %v1988_v1  ;;  %v1918_v55 = vld [vmem:[%s2419_s3 + $0x150] sm:$0xff]   ;;  %v1920_v58 = vld [vmem:[%s2419_s3 + $0x148] sm:$0xff]   ;;  %v1921_v61 = vld [vmem:[%s2419_s3 + $0x100] sm:$0xff]  }
  0x1f   : > { %v805_v56 = vshll.u32 %v1524_v53, 16  ;;  %v803_v59 = vshrl.u32 %v1524_v53, 16  ;;  %v1922_v62 = vld [vmem:[%s2419_s3 + $0x140] sm:$0xff]   ;;  %v1923_v0 = vld [vmem:[%s2419_s3 + $0x1b8] sm:$0xff]   ;;  %v915_v2 = vrot.slane %v1524_v53, 1  ;;  %v1925_v4 = vld [vmem:[%s2419_s3 + $0x1b0] sm:$0xff]  }
  0x20   : > { %1659 = vmatpush3.bf16.msra.mxu0 %v1881_v9  ;;  %v1924_v3 = vld [vmem:[%s2419_s3 + $0x1f8] sm:$0xff]   ;;  %v1926_v5 = vld [vmem:[%s2419_s3 + $0x1f0] sm:$0xff]   ;;  %v1927_v6 = vld [vmem:[%s2419_s3 + $0x1a8] sm:$0xff]  }
  0x21   : > { %1679 = vmatpush3.bf16.msra.mxu1 %v1882_v10  ;;  %1660 = vmatprep.subr.bf16.mxu0 %v1988_v1  ;;  %v807_v60 = vrot.slane %v805_v56, 1  ;;  %v1928_v7 = vld [vmem:[%s2419_s3 + $0x1e8] sm:$0xff]   ;;  %v1929_v8 = vld [vmem:[%s2419_s3 + $0x1a0] sm:$0xff]   ;;  %v1931_v10 = vld [vmem:[%s2419_s3 + $0x198] sm:$0xff]  }
  0x22   : > { %1680 = vmatprep.subr.bf16.mxu1 %v1988_v1  ;;  %v1930_v9 = vld [vmem:[%s2419_s3 + $0x1e0] sm:$0xff]   ;;  %v1934_v16 = vld [vmem:[%s2419_s3 + $0x1d0] sm:$0xff]   ;;  %v1936_v19 = vld [vmem:[%s2419_s3 + $0x1c8] sm:$0xff]  }
  0x23   : > { %v808_v63 = vor.u32 %v807_v60, %v803_v59  ;;  %v346_v12 = vld [vmem:[%s331_s14] sm:$0xf]  ;;  %v347_v13 = vld [vmem:[%s331_s14 + $0x4] sm:$0x1] }
  0x24   : > { %1661 = vmatpush3.bf16.msra.mxu0 %v1883_v14  ;;  %v1933_v14 = vld [vmem:[%s2419_s3 + $0x190] sm:$0xff]   ;;  %v1937_v20 = vld [vmem:[%s2419_s3 + $0x180] sm:$0xff]  }
  0x25   : > { %1681 = vmatpush3.bf16.msra.mxu1 %v1884_v15  ;;  %1662 = vmatprep.subr.bf16.mxu0 %v1988_v1  ;;  %v1549_v15 = vcombine.low %v346_v12, %v347_v13 }
  0x26   : > { %1682 = vmatprep.subr.bf16.mxu1 %v1988_v1 }
  0x28   : > { %1663 = vmatpush3.bf16.msra.mxu0 %v1885_v17  ;;  %v1935_v17 = vld [vmem:[%s2419_s3 + $0x188] sm:$0xff]  }
  0x29   : > { %1683 = vmatpush3.bf16.msra.mxu1 %v1886_v18  ;;  %1664 = vmatprep.subr.bf16.mxu0 %v1988_v1  ;;  %v1135_v18 = vshll.u32 %v1549_v15, 16 }
  0x2a   : > { %1684 = vmatprep.subr.bf16.mxu1 %v1988_v1 }
  0x2c   : > { %1665 = vmatpush3.bf16.msra.mxu0 %v1887_v21  ;;  %v1133_v21 = vshrl.u32 %v1549_v15, 16 }
  0x2d   : > { %1685 = vmatpush3.bf16.msra.mxu1 %v1888_v22  ;;  %1690 = vmatprep.subr.bf16.mxu0 %v1988_v1  ;;  %v1137_v22 = vrot.slane %v1135_v18, 1 }
  0x2e   : > { %1710 = vmatprep.subr.bf16.mxu1 %v1988_v1 }
  0x2f   : > { %1667 = vmatmul.mubr.bf16.vlgmr.msra.gmra.mxu0 %v391_v23  ;;  %v1938_v23 = vld [vmem:[%s2419_s3 + $0x1c0] sm:$0xff]  }
  0x30   : > { %1687 = vmatmul.mubr.bf16.vlgmr.msra.gmra.mxu1 %v342_v11  ;;  %1691 = vmatpush3.bf16.msra.mxu0 %v1890_v24  ;;  %v1932_v11 = vld [vmem:[%s2419_s3 + $0x1d8] sm:$0xff]  }
  0x31   : > { %1711 = vmatpush3.bf16.msra.mxu1 %v1891_v25  ;;  %1692 = vmatprep.subr.bf16.mxu0 %v1988_v1  ;;  %v1940_v24 = vld [vmem:[%s2419_s3 + $0x238] sm:$0xff]   ;;  %v1138_v25 = vor.u32 %v1137_v22, %v1133_v21 }
  0x32   : > { %1712 = vmatprep.subr.bf16.mxu1 %v1988_v1  ;;  %1706 = vmatprep.mubr.msk.bf16.mxu0 %vm1989_vm0, %v1988_v1 }
  0x33   : > { %1726 = vmatprep.mubr.msk.bf16.mxu1 %vm1989_vm0, %v1988_v1 }
  0x34   : > { %1693 = vmatpush3.bf16.msra.mxu0 %v1892_v26  ;;  %v1941_v26 = vld [vmem:[%s2419_s3 + $0x230] sm:$0xff]  }
  0x35   : > { %1713 = vmatpush3.bf16.msra.mxu1 %v1893_v27  ;;  %1694 = vmatprep.subr.bf16.mxu0 %v1988_v1  ;;  %v1942_v27 = vld [vmem:[%s2419_s3 + $0x228] sm:$0xff]  }
  0x36   : > { %1714 = vmatprep.subr.bf16.mxu1 %v1988_v1 }
  0x38   : > { %1695 = vmatpush3.bf16.msra.mxu0 %v1894_v28  ;;  %v1943_v28 = vld [vmem:[%s2419_s3 + $0x220] sm:$0xff]  }
  0x39   : > { %1715 = vmatpush3.bf16.msra.mxu1 %v1895_v29  ;;  %1696 = vmatprep.subr.bf16.mxu0 %v1988_v1  ;;  %v1944_v29 = vld [vmem:[%s2419_s3 + $0x218] sm:$0xff]  }
  0x3a   : > { %1716 = vmatprep.subr.bf16.mxu1 %v1988_v1 }
  0x3c   : > { %1697 = vmatpush3.bf16.msra.mxu0 %v1896_v30  ;;  %v1945_v30 = vld [vmem:[%s2419_s3 + $0x210] sm:$0xff]  }
  0x3d   : > { %1717 = vmatpush3.bf16.msra.mxu1 %v1897_v31  ;;  %1698 = vmatprep.subr.bf16.mxu0 %v1988_v1  ;;  %v1946_v31 = vld [vmem:[%s2419_s3 + $0x208] sm:$0xff]  }
  0x3e   : > { %1718 = vmatprep.subr.bf16.mxu1 %v1988_v1 }
  0x40   : > { %1699 = vmatpush3.bf16.msra.mxu0 %v1898_v32  ;;  %v1947_v32 = vld [vmem:[%s2419_s3 + $0x200] sm:$0xff]  }
  0x41   : > { %1719 = vmatpush3.bf16.msra.mxu1 %v1899_v33  ;;  %1700 = vmatprep.subr.bf16.mxu0 %v1988_v1  ;;  %v1245_v33 = vrot.slane %v1549_v15, 1 }
  0x42   : > { %1720 = vmatprep.subr.bf16.mxu1 %v1988_v1 }
  0x44   : > { %1701 = vmatpush3.bf16.msra.mxu0 %v1900_v34 }
  0x45   : > { %1721 = vmatpush3.bf16.msra.mxu1 %v1901_v35  ;;  %1702 = vmatprep.subr.bf16.mxu0 %v1988_v1 }
  0x46   : > { %1722 = vmatprep.subr.bf16.mxu1 %v1988_v1 }
  0x48   : > { %1703 = vmatpush3.bf16.msra.mxu0 %v1902_v36 }
  0x49   : > { %1723 = vmatpush3.bf16.msra.mxu1 %v1903_v37  ;;  %1704 = vmatprep.subr.bf16.mxu0 %v1988_v1 }
  0x4a   : > { %1724 = vmatprep.subr.bf16.mxu1 %v1988_v1 }
  0x4c   : > { %1705 = vmatpush3.bf16.msra.mxu0 %v1904_v38 }
  0x4d   : > { %1725 = vmatpush3.bf16.msra.mxu1 %v1905_v39  ;;  %1730 = vmatprep.subr.bf16.mxu0 %v1988_v1 }
  0x4e   : > { %1750 = vmatprep.subr.bf16.mxu1 %v1988_v1 }
  0x4f   : > { %1707 = vmatmul.mubr.bf16.vlgmr.msra.gmra.mxu0 %v585_v40 }
  0x50   : > { %1731 = vmatpush3.bf16.msra.mxu0 %v1906_v41  ;;  %1727 = vmatmul.mubr.bf16.vlgmr.msra.gmra.mxu1 %v344_v42 }
  0x51   : > { %1751 = vmatpush3.bf16.msra.mxu1 %v1908_v43  ;;  %1732 = vmatprep.subr.bf16.mxu0 %v1988_v1 }
  0x52   : > { %1752 = vmatprep.subr.bf16.mxu1 %v1988_v1  ;;  %1746 = vmatprep.mubr.msk.bf16.mxu0 %vm1989_vm0, %v1988_v1 }
  0x53   : > { %1766 = vmatprep.mubr.msk.bf16.mxu1 %vm1989_vm0, %v1988_v1 }
  0x54   : > { %1733 = vmatpush3.bf16.msra.mxu0 %v1909_v44 }
  0x55   : > { %1753 = vmatpush3.bf16.msra.mxu1 %v1910_v45  ;;  %1734 = vmatprep.subr.bf16.mxu0 %v1988_v1 }
  0x56   : > { %1754 = vmatprep.subr.bf16.mxu1 %v1988_v1 }
  0x58   : > { %1735 = vmatpush3.bf16.msra.mxu0 %v1911_v46 }
  0x59   : > { %1755 = vmatpush3.bf16.msra.mxu1 %v1912_v47  ;;  %1736 = vmatprep.subr.bf16.mxu0 %v1988_v1 }
  0x5a   : > { %1756 = vmatprep.subr.bf16.mxu1 %v1988_v1 }
  0x5c   : > { %1737 = vmatpush3.bf16.msra.mxu0 %v1913_v48 }
  0x5d   : > { %1757 = vmatpush3.bf16.msra.mxu1 %v1914_v49  ;;  %1738 = vmatprep.subr.bf16.mxu0 %v1988_v1 }
  0x5e   : > { %1758 = vmatprep.subr.bf16.mxu1 %v1988_v1 }
  0x60   : > { %1739 = vmatpush3.bf16.msra.mxu0 %v1915_v51 }
  0x61   : > { %1759 = vmatpush3.bf16.msra.mxu1 %v1916_v52  ;;  %1740 = vmatprep.subr.bf16.mxu0 %v1988_v1 }
  0x62   : > { %1760 = vmatprep.subr.bf16.mxu1 %v1988_v1 }
  0x64   : > { %1741 = vmatpush3.bf16.msra.mxu0 %v1917_v54 }
  0x65   : > { %1761 = vmatpush3.bf16.msra.mxu1 %v1918_v55  ;;  %1742 = vmatprep.subr.bf16.mxu0 %v1988_v1 }
  0x66   : > { %1762 = vmatprep.subr.bf16.mxu1 %v1988_v1 }
  0x68   : > { %1743 = vmatpush3.bf16.msra.mxu0 %v1919_v57 }
  0x69   : > { %1763 = vmatpush3.bf16.msra.mxu1 %v1920_v58  ;;  %1744 = vmatprep.subr.bf16.mxu0 %v1988_v1 }
  0x6a   : > { %1764 = vmatprep.subr.bf16.mxu1 %v1988_v1 }
  0x6c   : > { %1745 = vmatpush3.bf16.msra.mxu0 %v1921_v61 }
  0x6d   : > { %1765 = vmatpush3.bf16.msra.mxu1 %v1922_v62  ;;  %1770 = vmatprep.subr.bf16.mxu0 %v1988_v1 }
  0x6e   : > { %1790 = vmatprep.subr.bf16.mxu1 %v1988_v1 }
  0x6f   : > { %1747 = vmatmul.mubr.bf16.vlgmr.msra.gmra.mxu0 %v808_v63 }
  0x70   : > { %1771 = vmatpush3.bf16.msra.mxu0 %v1923_v0  ;;  %1767 = vmatmul.mubr.bf16.vlgmr.msra.gmra.mxu1 %v915_v2 }
  0x71   : > { %1791 = vmatpush3.bf16.msra.mxu1 %v1924_v3  ;;  %1772 = vmatprep.subr.bf16.mxu0 %v1988_v1 }
  0x72   : > { %1792 = vmatprep.subr.bf16.mxu1 %v1988_v1  ;;  %1786 = vmatprep.mubr.msk.bf16.mxu0 %vm1989_vm0, %v1988_v1 }
  0x73   : > { %1806 = vmatprep.mubr.msk.bf16.mxu1 %vm1989_vm0, %v1988_v1 }
  0x74   : > { %1773 = vmatpush3.bf16.msra.mxu0 %v1925_v4 }
  0x75   : > { %1793 = vmatpush3.bf16.msra.mxu1 %v1926_v5  ;;  %1774 = vmatprep.subr.bf16.mxu0 %v1988_v1 }
  0x76   : > { %1794 = vmatprep.subr.bf16.mxu1 %v1988_v1 }
  0x78   : > { %1775 = vmatpush3.bf16.msra.mxu0 %v1927_v6 }
  0x79   : > { %1795 = vmatpush3.bf16.msra.mxu1 %v1928_v7  ;;  %1776 = vmatprep.subr.bf16.mxu0 %v1988_v1 }
  0x7a   : > { %1796 = vmatprep.subr.bf16.mxu1 %v1988_v1 }
  0x7c   : > { %1777 = vmatpush3.bf16.msra.mxu0 %v1929_v8 }
  0x7d   : > { %1797 = vmatpush3.bf16.msra.mxu1 %v1930_v9  ;;  %1778 = vmatprep.subr.bf16.mxu0 %v1988_v1 }
  0x7e   : > { %1798 = vmatprep.subr.bf16.mxu1 %v1988_v1 }
  0x80   : > { %1779 = vmatpush3.bf16.msra.mxu0 %v1931_v10  ;;  %v1566_v10 = vld [vmem:[%s2420_s4] ss:$0 sm:$0xff] }
  0x81   : > { %1799 = vmatpush3.bf16.msra.mxu1 %v1932_v11  ;;  %1780 = vmatprep.subr.bf16.mxu0 %v1988_v1 }
  0x82   : > { %1800 = vmatprep.subr.bf16.mxu1 %v1988_v1 }
  0x84   : > { %1781 = vmatpush3.bf16.msra.mxu0 %v1933_v14 }
  0x85   : > { %1801 = vmatpush3.bf16.msra.mxu1 %v1934_v16  ;;  %1782 = vmatprep.subr.bf16.mxu0 %v1988_v1 }
  0x86   : > { %1802 = vmatprep.subr.bf16.mxu1 %v1988_v1 }
  0x88   : > { %1783 = vmatpush3.bf16.msra.mxu0 %v1935_v17 }
  0x89   : > { %1803 = vmatpush3.bf16.msra.mxu1 %v1936_v19  ;;  %1784 = vmatprep.subr.bf16.mxu0 %v1988_v1 }
  0x8a   : > { %1804 = vmatprep.subr.bf16.mxu1 %v1988_v1 }
  0x8c   : > { %1785 = vmatpush3.bf16.msra.mxu0 %v1937_v20 }
  0x8d   : > { %1805 = vmatpush3.bf16.msra.mxu1 %v1938_v23  ;;  %1810 = vmatprep.subr.bf16.mxu0 %v1988_v1 }
  0x8f   : > { %1787 = vmatmul.mubr.bf16.vlgmr.msra.gmra.mxu0 %v346_v12 }
  0x90   : > { %1811 = vmatpush3.bf16.msra.mxu0 %v1940_v24  ;;  %1807 = vmatmul.mubr.bf16.vlgmr.msra.gmra.mxu1 %v1138_v25 }
  0x91   : > { %1812 = vmatprep.subr.bf16.mxu0 %v1988_v1  ;;  %1826 = vmatprep.mubr.msk.bf16.mxu0 %vm1989_vm0, %v1988_v1 }
  0x94   : > { %1813 = vmatpush3.bf16.msra.mxu0 %v1941_v26 }
  0x95   : > { %1814 = vmatprep.subr.bf16.mxu0 %v1988_v1 }
  0x98   : > { %1815 = vmatpush3.bf16.msra.mxu0 %v1942_v27 }
  0x99   : > { %1816 = vmatprep.subr.bf16.mxu0 %v1988_v1 }
  0x9c   : > { %1817 = vmatpush3.bf16.msra.mxu0 %v1943_v28 }
  0x9d   : > { %1818 = vmatprep.subr.bf16.mxu0 %v1988_v1 }
  0xa0   : > { %1819 = vmatpush3.bf16.msra.mxu0 %v1944_v29 }
  0xa1   : > { %1820 = vmatprep.subr.bf16.mxu0 %v1988_v1 }
  0xa4   : > { %1821 = vmatpush3.bf16.msra.mxu0 %v1945_v30 }
  0xa5   : > { %1822 = vmatprep.subr.bf16.mxu0 %v1988_v1 }
  0xa8   : > { %1823 = vmatpush3.bf16.msra.mxu0 %v1946_v31 }
  0xa9   : > { %1824 = vmatprep.subr.bf16.mxu0 %v1988_v1 }
  0xac   : > { %1825 = vmatpush3.bf16.msra.mxu0 %v1947_v32 }
  0xaf   : > { %1827 = vmatmul.mubr.bf16.vlgmr.msra.gmra.mxu0 %v1245_v33 }
  0xef   : > { %v475_v34 = vpop.f32.mrf.mxu0 }
  0xf0   : > { %v563_v35 = vpop.f32.mrf.mxu1 }
  0xf1   : > { %v564_v36 = vadd.f32 %v563_v35, %v475_v34  ;;  %v1668_v37 = vpop.f32.mrf.mxu0 }
  0xf2   : > { %v1688_v38 = vpop.f32.mrf.mxu1 }
  0xf3   : > { %v478_v39 = vpop.f32.mrf.mxu0 }
  0xf4   : > { %v566_v40 = vpop.f32.mrf.mxu1 }
  0xf5   : > { %v1669_v41 = vpop.f32.mrf.mxu0 }
  0xf6   : > { %v1689_v42 = vpop.f32.mrf.mxu1 }
 0x10f   : > { %v669_v43 = vpop.f32.mrf.mxu0 }
 0x110   : > { %v675_v44 = vadd.f32 %v669_v43, %v564_v36  ;;  %v774_v45 = vpop.f32.mrf.mxu1 }
 0x111   : > { %v1708_v46 = vpop.f32.mrf.mxu0 }
 0x112   : > { %v780_v47 = vadd.f32 %v774_v45, %v675_v44  ;;  %v1728_v48 = vpop.f32.mrf.mxu1 }
 0x113   : > { %v672_v49 = vpop.f32.mrf.mxu0 }
 0x114   : > { %v777_v1 = vpop.f32.mrf.mxu1 }
 0x115   : > { %v1709_v50 = vpop.f32.mrf.mxu0 }
 0x116   : > { %v1729_v51 = vpop.f32.mrf.mxu1 }
 0x12f   : > { %v892_v52 = vpop.f32.mrf.mxu0 }
 0x130   : > { %v999_v53 = vpop.f32.mrf.mxu1  ;;  %v898_v5 = vadd.f32 %v892_v52, %v780_v47 }
 0x131   : > { %v1748_v54 = vpop.f32.mrf.mxu0 }
 0x132   : > { %v1768_v55 = vpop.f32.mrf.mxu1  ;;  %v1005_v6 = vadd.f32 %v999_v53, %v898_v5 }
 0x133   : > { %v895_v56 = vpop.f32.mrf.mxu0 }
 0x134   : > { %v1002_v57 = vpop.f32.mrf.mxu1 }
 0x135   : > { %v1749_v58 = vpop.f32.mrf.mxu0 }
 0x136   : > { %v1769_v59 = vpop.f32.mrf.mxu1 }
 0x14f   : > { %v1104_v60 = vpop.f32.mrf.mxu0 }
 0x150   : > { %v1222_v61 = vpop.f32.mrf.mxu1  ;;  %v1110_v7 = vadd.f32 %v1104_v60, %v1005_v6 }
 0x151   : > { %v1788_v62 = vpop.f32.mrf.mxu0 }
 0x152   : > { %v1808_v63 = vpop.f32.mrf.mxu1  ;;  %v1228_v8 = vadd.f32 %v1222_v61, %v1110_v7 }
 0x153   : > { %v1107_v0 = vpop.f32.mrf.mxu0 }
 0x154   : > { %v1225_v2 = vpop.f32.mrf.mxu1 }
 0x155   : > { %v1789_v3 = vpop.f32.mrf.mxu0 }
 0x156   : > { %v1809_v4 = vpop.f32.mrf.mxu1 }
 0x16f   : > { %v1329_v9 = vpop.f32.mrf.mxu0 }
 0x170   : > { %v1335_v11 = vadd.f32 %v1329_v9, %v1228_v8 }
 0x171   : > { %v1828_v12 = vpop.f32.mrf.mxu0 }
 0x172   : > { %v1343_v13 = vadd.f32 %v1566_v10, %v1335_v11 }
 0x173   : > { %v1332_v14 = vpop.f32.mrf.mxu0 }
 0x174   : > { %v1344_v15 = vmax.f32 %v1343_v13, 0.0 }
 0x175   : > { %v1829_v16 = vpop.f32.mrf.mxu0 }
 0x176   : > { %v1345_v17 = vpack.c.bf16 %v1344_v15, %v1344_v15 }
 0x178   : > { %1346 = vst [vmem:[%s340_s17] sm:$0xf] %v1345_v17 }
 0x179 PF: > { %s15_s22 = sadd.s32 1, %s1986_s22   ;;  %s2422_s18 = smov %s1978_s20 }
 0x17a   : > { %p12_p10 = scmp.ge.s32.totalorder %s15_s22, 18   ;;  %s2423_s19 = smov %s1982_s21 }
 0x17b   : > { %s2424_s20 = smov %s2427_s23  ;;  %s2425_s21 = smov %s2431_s24 }
 0x17c   :  { %14 = sbr.rel (!%p12_p10) target bundleno = 3 (0x3), region = 76 }

// kernel: depth_pro_scaled.16
= control target key start
LH: loop header
LB: loop body
LE: loop exit
PB: predicated region body
PF: predicated region fallthrough
CT: control target
= control target key end

     0   :  { %vm1125_vm0 = vmmov 0   ;;  %s1383_s1 = inlined_call_operand.vmem [shape: bf16[1152,128], index: 1, kind: input, shape index: {}]   ;;  %s1384_s0 = inlined_call_operand.vmem [shape: bf16[8,1152], index: 0, kind: input, shape index: {}]   ;;  %s1385_s2 = inlined_call_operand.vmem [shape: f32[1,128], index: 2, kind: input, shape index: {}]   ;;  %s1386_s3 = inlined_call_operand.vmem [shape: bf16[8,128], index: 3, kind: output, shape index: {}]  }
   0x1   :  { %v1043_v0 = vld [vmem:[%s1383_s1 + $0x78] sm:$0xff]   ;;  %v1047_v4 = vld [vmem:[%s1383_s1 + $0x70] sm:$0xff]   ;;  %v1051_v8 = vld [vmem:[%s1383_s1 + $0x68] sm:$0xff]  }
   0x2   :  { %v1044_v1 = vld [vmem:[%s1383_s1 + $0x38] sm:$0xff]   ;;  %924 = vmatprep.subr.bf16.mxu0 %v1043_v0  ;;  %v1048_v5 = vld [vmem:[%s1383_s1 + $0x30] sm:$0xff]   ;;  %v1052_v9 = vld [vmem:[%s1383_s1 + $0x28] sm:$0xff]  }
   0x3   :  { %v1045_v2 = vld [vmem:[%s1383_s1 + $0xf8] sm:$0xff]   ;;  %925 = vmatpush3.bf16.msra.mxu0 %v1044_v1  ;;  %v1049_v6 = vld [vmem:[%s1383_s1 + $0xf0] sm:$0xff]   ;;  %v1053_v10 = vld [vmem:[%s1383_s1 + $0xe8] sm:$0xff]  }
   0x4   :  { %v1046_v3 = vld [vmem:[%s1383_s1 + $0xb8] sm:$0xff]   ;;  %946 = vmatprep.subr.bf16.mxu1 %v1045_v2  ;;  %926 = vmatprep.subr.bf16.mxu0 %v1047_v4  ;;  %v1050_v7 = vld [vmem:[%s1383_s1 + $0xb0] sm:$0xff]   ;;  %v1054_v11 = vld [vmem:[%s1383_s1 + $0xa8] sm:$0xff]  }
   0x5   :  { %947 = vmatpush3.bf16.msra.mxu1 %v1046_v3  ;;  %v1055_v12 = vld [vmem:[%s1383_s1 + $0x60] sm:$0xff]   ;;  %v1059_v16 = vld [vmem:[%s1383_s1 + $0x58] sm:$0xff]   ;;  %v1063_v20 = vld [vmem:[%s1383_s1 + $0x50] sm:$0xff]  }
   0x6   :  { %948 = vmatprep.subr.bf16.mxu1 %v1049_v6  ;;  %v1056_v13 = vld [vmem:[%s1383_s1 + $0x20] sm:$0xff]   ;;  %v1060_v17 = vld [vmem:[%s1383_s1 + $0x18] sm:$0xff]   ;;  %v1064_v21 = vld [vmem:[%s1383_s1 + $0x10] sm:$0xff]  }
   0x7   :  { %927 = vmatpush3.bf16.msra.mxu0 %v1048_v5  ;;  %v1057_v14 = vld [vmem:[%s1383_s1 + $0xe0] sm:$0xff]   ;;  %v1061_v18 = vld [vmem:[%s1383_s1 + $0xd8] sm:$0xff]   ;;  %v1065_v22 = vld [vmem:[%s1383_s1 + $0xd0] sm:$0xff]  }
   0x8   :  { %928 = vmatprep.subr.bf16.mxu0 %v1051_v8  ;;  %v1058_v15 = vld [vmem:[%s1383_s1 + $0xa0] sm:$0xff]   ;;  %v1062_v19 = vld [vmem:[%s1383_s1 + $0x98] sm:$0xff]   ;;  %v1066_v23 = vld [vmem:[%s1383_s1 + $0x90] sm:$0xff]  }
   0x9   :  { %949 = vmatpush3.bf16.msra.mxu1 %v1050_v7  ;;  %v1067_v24 = vld [vmem:[%s1383_s1 + $0x48] sm:$0xff]   ;;  %v1071_v28 = vld [vmem:[%s1383_s1 + $0x40] sm:$0xff]   ;;  %v1077_v35 = vld [vmem:[%s1383_s1 + $0x178] sm:$0xff]  }
   0xa   :  { %950 = vmatprep.subr.bf16.mxu1 %v1053_v10  ;;  %v1068_v25 = vld [vmem:[%s1383_s1 + $0x8] sm:$0xff]   ;;  %v1072_v29 = vld [vmem:[%s1383_s1] sm:$0xff]   ;;  %v1080_v39 = vld [vmem:[%s1383_s1 + $0x138] sm:$0xff]  }
   0xb   :  { %929 = vmatpush3.bf16.msra.mxu0 %v1052_v9  ;;  %v1069_v26 = vld [vmem:[%s1383_s1 + $0xc8] sm:$0xff]   ;;  %v1073_v30 = vld [vmem:[%s1383_s1 + $0xc0] sm:$0xff]   ;;  %v1081_v40 = vld [vmem:[%s1383_s1 + $0x1f8] sm:$0xff]   ;;  %v1124_v9 = vmov 0.0  }
   0xc   :  { %930 = vmatprep.subr.bf16.mxu0 %v1055_v12  ;;  %v1070_v27 = vld [vmem:[%s1383_s1 + $0x88] sm:$0xff]   ;;  %v15_v31 = vld [vmem:[%s1384_s0] sm:$0xff]  ;;  %v1082_v41 = vld [vmem:[%s1383_s1 + $0x1b8] sm:$0xff]  }
   0xd   :  { %951 = vmatpush3.bf16.msra.mxu1 %v1054_v11  ;;  %v843_v32 = vcombine.low %v15_v31, %v15_v31  ;;  %v844_v33 = vcombine.high %v15_v31, %v15_v31  ;;  %v1076_v34 = vld [vmem:[%s1383_s1 + $0x80] sm:$0xff]   ;;  %v16_v36 = vld [vmem:[%s1384_s0 + $0x8] sm:$0xff]  ;;  %v1083_v42 = vld [vmem:[%s1383_s1 + $0x170] sm:$0xff]  }
   0xe   :  { %952 = vmatprep.subr.bf16.mxu1 %v1057_v14  ;;  %v845_v37 = vcombine.low %v16_v36, %v16_v36  ;;  %v846_v38 = vcombine.high %v16_v36, %v16_v36  ;;  %v1084_v43 = vld [vmem:[%s1383_s1 + $0x130] sm:$0xff]   ;;  %v1087_v46 = vld [vmem:[%s1383_s1 + $0x168] sm:$0xff]   ;;  %v1091_v50 = vld [vmem:[%s1383_s1 + $0x160] sm:$0xff]  }
   0xf   :  { %931 = vmatpush3.bf16.msra.mxu0 %v1056_v13  ;;  %667 = vmatprep.mubr.bf16.mxu0 %v844_v33  ;;  %v1085_v44 = vld [vmem:[%s1383_s1 + $0x1f0] sm:$0xff]   ;;  %v1088_v47 = vld [vmem:[%s1383_s1 + $0x128] sm:$0xff]   ;;  %v1092_v51 = vld [vmem:[%s1383_s1 + $0x120] sm:$0xff]  }
  0x10   :  { %932 = vmatprep.subr.bf16.mxu0 %v1059_v16  ;;  %707 = vmatprep.mubr.bf16.mxu1 %v846_v38  ;;  %v1086_v45 = vld [vmem:[%s1383_s1 + $0x1b0] sm:$0xff]   ;;  %v1089_v48 = vld [vmem:[%s1383_s1 + $0x1e8] sm:$0xff]   ;;  %v1093_v52 = vld [vmem:[%s1383_s1 + $0x1e0] sm:$0xff]  }
  0x11   :  { %953 = vmatpush3.bf16.msra.mxu1 %v1058_v15  ;;  %v1090_v49 = vld [vmem:[%s1383_s1 + $0x1a8] sm:$0xff]   ;;  %v1094_v53 = vld [vmem:[%s1383_s1 + $0x1a0] sm:$0xff]   ;;  %v1095_v54 = vld [vmem:[%s1383_s1 + $0x158] sm:$0xff]  }
  0x12   :  { %954 = vmatprep.subr.bf16.mxu1 %v1061_v18  ;;  %v1096_v55 = vld [vmem:[%s1383_s1 + $0x118] sm:$0xff]   ;;  %v1099_v58 = vld [vmem:[%s1383_s1 + $0x150] sm:$0xff]   ;;  %v1103_v62 = vld [vmem:[%s1383_s1 + $0x148] sm:$0xff]  }
  0x13   :  { %933 = vmatpush3.bf16.msra.mxu0 %v1060_v17  ;;  %v1097_v56 = vld [vmem:[%s1383_s1 + $0x1d8] sm:$0xff]   ;;  %v1100_v59 = vld [vmem:[%s1383_s1 + $0x110] sm:$0xff]   ;;  %v1104_v63 = vld [vmem:[%s1383_s1 + $0x108] sm:$0xff]  }
  0x14   :  { %934 = vmatprep.subr.bf16.mxu0 %v1063_v20  ;;  %v1098_v57 = vld [vmem:[%s1383_s1 + $0x198] sm:$0xff]   ;;  %v1101_v60 = vld [vmem:[%s1383_s1 + $0x1d0] sm:$0xff]   ;;  %v1105_v0 = vld [vmem:[%s1383_s1 + $0x1c8] sm:$0xff]  }
  0x15   :  { %955 = vmatpush3.bf16.msra.mxu1 %v1062_v19  ;;  %v1102_v61 = vld [vmem:[%s1383_s1 + $0x190] sm:$0xff]   ;;  %v1106_v1 = vld [vmem:[%s1383_s1 + $0x188] sm:$0xff]   ;;  %v1107_v2 = vld [vmem:[%s1383_s1 + $0x140] sm:$0xff]  }
  0x16   :  { %956 = vmatprep.subr.bf16.mxu1 %v1065_v22  ;;  %v1108_v3 = vld [vmem:[%s1383_s1 + $0x100] sm:$0xff]   ;;  %v17_v5 = vld [vmem:[%s1384_s0 + $0x10] sm:$0xff]  ;;  %v18_v10 = vld [vmem:[%s1384_s0 + $0x18] sm:$0xff] }
  0x17   :  { %935 = vmatpush3.bf16.msra.mxu0 %v1064_v21  ;;  %v1109_v4 = vld [vmem:[%s1383_s1 + $0x1c0] sm:$0xff]   ;;  %v847_v6 = vcombine.low %v17_v5, %v17_v5  ;;  %v848_v7 = vcombine.high %v17_v5, %v17_v5  ;;  %v849_v11 = vcombine.low %v18_v10, %v18_v10  ;;  %v850_v12 = vcombine.high %v18_v10, %v18_v10  ;;  %v1115_v13 = vld [vmem:[%s1383_s1 + $0x238] sm:$0xff]   ;;  %v1116_v14 = vld [vmem:[%s1383_s1 + $0x230] sm:$0xff]  }
  0x18   :  { %936 = vmatprep.subr.bf16.mxu0 %v1067_v24  ;;  %v1112_v8 = vld [vmem:[%s1383_s1 + $0x180] sm:$0xff]   ;;  %v1117_v15 = vld [vmem:[%s1383_s1 + $0x228] sm:$0xff]   ;;  %v1119_v17 = vld [vmem:[%s1383_s1 + $0x218] sm:$0xff]  }
  0x19   :  { %957 = vmatpush3.bf16.msra.mxu1 %v1066_v23  ;;  %v1118_v16 = vld [vmem:[%s1383_s1 + $0x220] sm:$0xff]   ;;  %v1120_v18 = vld [vmem:[%s1383_s1 + $0x210] sm:$0xff]   ;;  %v1121_v19 = vld [vmem:[%s1383_s1 + $0x208] sm:$0xff]  }
  0x1a   :  { %958 = vmatprep.subr.bf16.mxu1 %v1069_v26  ;;  %v1122_v20 = vld [vmem:[%s1383_s1 + $0x200] sm:$0xff]  }
  0x1b   :  { %937 = vmatpush3.bf16.msra.mxu0 %v1068_v25  ;;  %v1123_v21 = vld [vmem:[%s1384_s0 + $0x20] ss:$0 sps:$4 sm:$0xff]  }
  0x1c   :  { %938 = vmatprep.subr.bf16.mxu0 %v1071_v28 }
  0x1d   :  { %959 = vmatpush3.bf16.msra.mxu1 %v1070_v27 }
  0x1e   :  { %960 = vmatprep.subr.bf16.mxu1 %v1073_v30 }
  0x1f   :  { %939 = vmatpush3.bf16.msra.mxu0 %v1072_v29 }
  0x20   :  { %968 = vmatprep.subr.bf16.mxu0 %v1077_v35 }
  0x21   :  { %961 = vmatpush3.bf16.msra.mxu1 %v1076_v34 }
  0x22   :  { %668 = vmatmul.mubr.bf16.vlgmr.msra.gmra.mxu0 %v843_v32  ;;  %990 = vmatprep.subr.bf16.mxu1 %v1081_v40 }
  0x23   :  { %969 = vmatpush3.bf16.msra.mxu0 %v1080_v39  ;;  %747 = vmatprep.mubr.bf16.mxu0 %v848_v7  ;;  %v842_v39 = vld [vmem:[%s1385_s2] ss:$0 sm:$0xff] }
  0x24   :  { %708 = vmatmul.mubr.bf16.vlgmr.msra.gmra.mxu1 %v845_v37  ;;  %970 = vmatprep.subr.bf16.mxu0 %v1083_v42 }
  0x25   :  { %991 = vmatpush3.bf16.msra.mxu1 %v1082_v41  ;;  %787 = vmatprep.mubr.bf16.mxu1 %v850_v12 }
  0x26   :  { %992 = vmatprep.subr.bf16.mxu1 %v1085_v44 }
  0x27   :  { %971 = vmatpush3.bf16.msra.mxu0 %v1084_v43 }
  0x28   :  { %972 = vmatprep.subr.bf16.mxu0 %v1087_v46 }
  0x29   :  { %993 = vmatpush3.bf16.msra.mxu1 %v1086_v45 }
  0x2a   :  { %994 = vmatprep.subr.bf16.mxu1 %v1089_v48 }
  0x2b   :  { %973 = vmatpush3.bf16.msra.mxu0 %v1088_v47 }
  0x2c   :  { %974 = vmatprep.subr.bf16.mxu0 %v1091_v50 }
  0x2d   :  { %995 = vmatpush3.bf16.msra.mxu1 %v1090_v49 }
  0x2e   :  { %996 = vmatprep.subr.bf16.mxu1 %v1093_v52 }
  0x2f   :  { %975 = vmatpush3.bf16.msra.mxu0 %v1092_v51 }
  0x30   :  { %976 = vmatprep.subr.bf16.mxu0 %v1095_v54 }
  0x31   :  { %997 = vmatpush3.bf16.msra.mxu1 %v1094_v53 }
  0x32   :  { %998 = vmatprep.subr.bf16.mxu1 %v1097_v56 }
  0x33   :  { %977 = vmatpush3.bf16.msra.mxu0 %v1096_v55 }
  0x34   :  { %978 = vmatprep.subr.bf16.mxu0 %v1099_v58 }
  0x35   :  { %999 = vmatpush3.bf16.msra.mxu1 %v1098_v57 }
  0x36   :  { %1000 = vmatprep.subr.bf16.mxu1 %v1101_v60 }
  0x37   :  { %979 = vmatpush3.bf16.msra.mxu0 %v1100_v59 }
  0x38   :  { %980 = vmatprep.subr.bf16.mxu0 %v1103_v62 }
  0x39   :  { %1001 = vmatpush3.bf16.msra.mxu1 %v1102_v61 }
  0x3a   :  { %1002 = vmatprep.subr.bf16.mxu1 %v1105_v0 }
  0x3b   :  { %981 = vmatpush3.bf16.msra.mxu0 %v1104_v63 }
  0x3c   :  { %982 = vmatprep.subr.bf16.mxu0 %v1107_v2 }
  0x3d   :  { %1003 = vmatpush3.bf16.msra.mxu1 %v1106_v1 }
  0x3e   :  { %1004 = vmatprep.subr.bf16.mxu1 %v1109_v4 }
  0x3f   :  { %983 = vmatpush3.bf16.msra.mxu0 %v1108_v3 }
  0x40   :  { %1021 = vmatprep.subr.bf16.mxu0 %v1124_v9 }
  0x41   :  { %1005 = vmatpush3.bf16.msra.mxu1 %v1112_v8 }
  0x42   :  { %748 = vmatmul.mubr.bf16.vlgmr.msra.gmra.mxu0 %v847_v6 }
  0x43   :  { %1022 = vmatpush3.bf16.msra.mxu0 %v1115_v13  ;;  %1037 = vmatprep.mubr.msk.bf16.mxu0 %vm1125_vm0, %v1124_v9 }
  0x44   :  { %788 = vmatmul.mubr.bf16.vlgmr.msra.gmra.mxu1 %v849_v11  ;;  %1023 = vmatprep.subr.bf16.mxu0 %v1124_v9 }
  0x47   :  { %1024 = vmatpush3.bf16.msra.mxu0 %v1116_v14 }
  0x48   :  { %1025 = vmatprep.subr.bf16.mxu0 %v1124_v9 }
  0x4b   :  { %1026 = vmatpush3.bf16.msra.mxu0 %v1117_v15 }
  0x4c   :  { %1027 = vmatprep.subr.bf16.mxu0 %v1124_v9 }
  0x4f   :  { %1028 = vmatpush3.bf16.msra.mxu0 %v1118_v16 }
  0x50   :  { %1029 = vmatprep.subr.bf16.mxu0 %v1124_v9 }
  0x53   :  { %1030 = vmatpush3.bf16.msra.mxu0 %v1119_v17 }
  0x54   :  { %1031 = vmatprep.subr.bf16.mxu0 %v1124_v9 }
  0x57   :  { %1032 = vmatpush3.bf16.msra.mxu0 %v1120_v18 }
  0x58   :  { %1033 = vmatprep.subr.bf16.mxu0 %v1124_v9 }
  0x5b   :  { %1034 = vmatpush3.bf16.msra.mxu0 %v1121_v19 }
  0x5c   :  { %1035 = vmatprep.subr.bf16.mxu0 %v1124_v9 }
  0x5f   :  { %1036 = vmatpush3.bf16.msra.mxu0 %v1122_v20 }
  0x62   :  { %1038 = vmatmul.mubr.bf16.vlgmr.msra.gmra.mxu0 %v1123_v21 }
  0xe2   :  { %v940_v22 = vpop.f32.mrf.mxu0 }
  0xe4   :  { %v941_v23 = vpop.f32.mrf.mxu0  ;;  %v962_v24 = vpop.f32.mrf.mxu1 }
  0xe5   :  { %v942_v38 = vadd.f32 %v941_v23, %v940_v22 }
  0xe6   :  { %v943_v25 = vpop.f32.mrf.mxu0  ;;  %v963_v26 = vpop.f32.mrf.mxu1 }
  0xe7   :  { %v670_v40 = vadd.f32 %v942_v38, %v842_v39  ;;  %v964_v41 = vadd.f32 %v963_v26, %v962_v24 }
  0xe8   :  { %v944_v27 = vpop.f32.mrf.mxu0  ;;  %v965_v28 = vpop.f32.mrf.mxu1 }
  0xe9   :  { %v710_v43 = vadd.f32 %v964_v41, %v670_v40 }
  0xea   :  { %v966_v29 = vpop.f32.mrf.mxu1 }
 0x102   :  { %v984_v30 = vpop.f32.mrf.mxu0 }
 0x104   :  { %v985_v31 = vpop.f32.mrf.mxu0  ;;  %v1006_v32 = vpop.f32.mrf.mxu1 }
 0x105   :  { %v986_v42 = vadd.f32 %v985_v31, %v984_v30 }
 0x106   :  { %v987_v33 = vpop.f32.mrf.mxu0  ;;  %v1007_v34 = vpop.f32.mrf.mxu1 }
 0x107   :  { %v750_v44 = vadd.f32 %v986_v42, %v710_v43  ;;  %v1008_v45 = vadd.f32 %v1007_v34, %v1006_v32 }
 0x108   :  { %v988_v35 = vpop.f32.mrf.mxu0  ;;  %v1009_v36 = vpop.f32.mrf.mxu1 }
 0x109   :  { %v790_v46 = vadd.f32 %v1008_v45, %v750_v44 }
 0x10a   :  { %v1010_v37 = vpop.f32.mrf.mxu1 }
 0x122   :  { %v829_v47 = vpop.f32.mrf.mxu0 }
 0x123   :  { %v830_v48 = vadd.f32 %v829_v47, %v790_v46 }
 0x124   :  { %v1039_v49 = vpop.f32.mrf.mxu0 }
 0x125   :  { %v835_v50 = vmax.f32 %v830_v48, 0.0 }
 0x126   :  { %v832_v51 = vpop.f32.mrf.mxu0 }
 0x127   :  { %v836_v52 = vpack.c.bf16 %v835_v50, %v835_v50 }
 0x128   :  { %v1040_v53 = vpop.f32.mrf.mxu0 }
 0x129   :  { %837 = vst [vmem:[%s1386_s3] sm:$0xf] %v836_v52 }

// kernel: depth_pro_scaled.19
= control target key start
LH: loop header
LB: loop body
LE: loop exit
PB: predicated region body
PF: predicated region fallthrough
CT: control target
= control target key end

     0   :  { %s2943_s0 = inlined_call_operand.vmem [shape: f32[2], index: 0, kind: input, shape index: {}]   ;;  %s2944_s1 = inlined_call_operand.vmem [shape: bf16[2,18,18,128], index: 1, kind: input, shape index: {}, may-alias: {1,2,3}]   ;;  %s2945_s2 = inlined_call_operand.vmem [shape: bf16[2,18,18,128], index: 2, kind: input, shape index: {}, may-alias: {1,2,3}]   ;;  %s2946_s3 = inlined_call_operand.vmem [shape: bf16[2,18,18,128], index: 3, kind: input, shape index: {}, may-alias: {1,2,3}]   ;;  %s2947_s4 = inlined_call_operand.vmem [shape: bf16[1152,128], index: 4, kind: input, shape index: {}]   ;;  %s2948_s5 = inlined_call_operand.vmem [shape: f32[1,128], index: 5, kind: input, shape index: {}]   ;;  %s2949_s6 = inlined_call_operand.vmem [shape: f32[1,128], index: 6, kind: input, shape index: {}]   ;;  %s2950_s7 = inlined_call_operand.<no memory space> [shape: f32[1,1], index: 7, kind: input, shape index: {}]   ;;  %s2951_s8 = inlined_call_operand.hbm [shape: f32[2,16,1,16], index: 8, kind: output, shape index: {}]  }
   0x1   :  { %2954 = sst [smem:[#allocation11_spill]] %s2943_s0  ;;  %v13_v0 = vstv %s2950_s7 }
   0x2   :  { %14 = vst [vmem:[#allocation2] sm:$0x1] %v13_v0 }
   0x3   :  { %15 = vsyncpa [#allocation5], 0 }
   0x4   :  { %16 = vsyncpa [#allocation4], 0 }
   0x5   :  { %18 = vsyncpa [#allocation4 + $0x1], 0  ;;  %s2426_s29 = smov 0   ;;  %s2428_s30 = smov 0  }
   0x6   :  { %s2430_s9 = smov 0   ;;  %s2432_s10 = smov 0  }
   0x7   :  { %s2434_s11 = smov 0   ;;  %s2436_s12 = smov 0  }
   0x8   :  { %s2438_s13 = smov 0   ;;  %s2440_s14 = smov 0  }
   0x9 LB: > { %s1726_s7 = sadd.s32 4294967295, %s2371_s14   ;;  %s1727_s15 = sadd.s32 4294967294, %s2371_s14   ;;  %s2371_s14 = sphi %s2440_s14, %s24_s14   ;;  %s2367_s13 = sphi %s2438_s13, %s2971_s13   ;;  %s2363_s12 = sphi %s2436_s12, %s2970_s12   ;;  %s2359_s11 = sphi %s2434_s11, %s2969_s11   ;;  %s2355_s10 = sphi %s2432_s10, %s2968_s10   ;;  %s2351_s9 = sphi %s2430_s9, %s2967_s9   ;;  %s2347_s30 = sphi %s2428_s30, %s2966_s30   ;;  %s2343_s29 = sphi %s2426_s29, %s2965_s29  }
   0xa   : > { %s33_s16 = sadd.s32 1, %s2363_s12  ;;  %s36_s17 = sadd.s32 1, %s2367_s13 }
   0xb   : > { %p34_p0 = scmp.ge.s32.totalorder %s33_s16, 16  ;;  %s238_s18 = sadd.s32 1, %s2351_s9 }
   0xc   : > { %p248_p1 = scmp.ne.s32.totalorder %s2351_s9, %s2347_s30  ;;  %p249_p2 = scmp.eq.s32.totalorder %s1726_s7, 31 }
   0xd   : > { %s2973_s16 = smov (%p34_p0, %s33_s16), 0  ;;  %s2975_s17 = smov (!%p34_p0, %s36_s17), %s2367_s13 }
   0xe   : > { %2955 = sst [smem:[#allocation9_spill]] %s2973_s16  ;;  %s234_s19 = ssub.s32 %s2363_s12, %s2973_s16 }
   0xf   : > { %p2478_p3 = por %p249_p2, %p248_p1  ;;  %p38_p4 = scmp.ge.s32.totalorder %s2975_s17, 2 }
  0x10   : > { %p254_p5 = scmp.ne.s32.totalorder %s2347_s30, %s2343_s29  ;;  %p255_p6 = scmp.eq.s32.totalorder %s1727_s15, 31 }
  0x11   : > { %p1728_p7 = scmp.ge.s32.totalorder %s2371_s14, 1  ;;  %s2977_s17 = smov (%p38_p4, %s2975_s17), 0 }
  0x12   : > { %2957 = sst [smem:[#allocation10_spill]] %s2977_s17  ;;  %p2487_p8 = por %p255_p6, %p254_p5 }
  0x13   : > { %p262_p9 = scmp.lt.s32.totalorder %s2371_s14, 33  ;;  %s233_s22 = ssub.s32 %s2367_s13, %s2977_s17 }
  0x14   : > { %s2958_s21 = scalar_select %p2487_p8, 1, 0 }
  0x15   : > { %s235_s23 = sor.u32 %s234_s19, %s233_s22  ;;  %p2494_p10 = pnand %p1728_p7, %p262_p9 }
  0x16   : > { %p236_p11 = scmp.eq.s32.totalorder %s235_s23, 0  ;;  %p2498_p12 = scmp.eq.s32.totalorder %s1726_s7, 0 }
  0x17   : > { %p2100_p13 = pneg %p2494_p10  ;;  %s2961_s0 = sld [smem:[#allocation11_spill]] }
  0x18   : > { %s2508_s15 = scalar_select %p236_p11, %s2351_s9, %s238_s18  }
  0x19   : > { %p2101_p0 = pnand %p2498_p12, %p2100_p13 }
  0x1b   : > { %p2262_p2 = pneg %p2101_p0 }
  0x1d   : > { %s275_s28 = sshll.u32 %s2961_s0, 4  ;;  %s276_s28 = int_to_ptr.vmem [resolvable:$true] %s275_s28 }
  0x1e   : > { %s2260_s19 = scalar_lea.vmem %s276_s28, 16  ;;  %p2268_p6 = scmp.lt.s32.totalorder %s276_s28, %s276_s28 }
  0x1f   : > { %p2261_p1 = scmp.ne.s32.totalorder %s276_s28, %s2260_s19  ;;  %p2269_p7 = scmp.lt.s32.totalorder %s2260_s19, %s2260_s19 }
  0x21   : > { %p2263_p4 = pnand %p2262_p2, %p2261_p1  ;;  %p2270_p9 = por %p2269_p7, %p2268_p6 }
  0x23   : > { %p2264_p5 = pneg %p2263_p4 }
  0x25   : > { %p2271_p8 = pnand %p2270_p9, %p2264_p5 }
  0x27   : > { %2274 = shalt.err (!%p2271_p8)
}
  0x28   : > { %s2373_s7 = smov [#allocation3]   ;;  %340 = sbr.rel (%p2494_p10) target bundleno = 649 (0x289), region = 52 }
  0x29   : > { %2103 = dma.vmem_to_smem (!%p2101_p0), %s276_s28, 16, %s2373_s7, [#allocation5]  }
  0x2d   : > { %2334 = dma.done.wait (%p2498_p12), [#allocation5], 16  }
  0x2e   : > { %2336 = vsyncadd (%p2498_p12), [#allocation5], 4294967280 }
  0x2f   : > { %346 = sfence }
  0x30   : > { %v2180_v1 = vld [vmem:[%s2947_s4 + $0x78] sm:$0xff]   ;;  %v2374_v2 = vmov 0.0   ;;  %v2182_v4 = vld [vmem:[%s2947_s4 + $0x70] sm:$0xff]   ;;  %vm2375_vm0 = vmmov 0   ;;  %p398_p8 = scmp.lt.s32.totalorder %s2359_s11, 1  ;;  %p400_p10 = scmp.lt.s32.totalorder %s2355_s10, 17 }
  0x31   : > { %1903 = vmatprep.subr.bf16.mxu0 %v2374_v2  ;;  %1923 = vmatprep.subr.bf16.mxu1 %v2374_v2  ;;  %v2181_v3 = vld [vmem:[%s2947_s4 + $0x38] sm:$0xff]   ;;  %v2183_v5 = vld [vmem:[%s2947_s4 + $0x30] sm:$0xff]   ;;  %v2184_v6 = vld [vmem:[%s2947_s4 + $0x68] sm:$0xff]   ;;  %s407_s24 = sadd.s32 1, %s2355_s10  ;;  %vm480_vm1 = vsmask.f32 7424 }
  0x32   : > { %1904 = vmatpush3.bf16.msra.mxu0 %v2180_v1  ;;  %1919 = vmatprep.mubr.msk.bf16.mxu0 %vm2375_vm0, %v2374_v2  ;;  %s399_s19 = scalar_select %p398_p8, %s2359_s11, 1  ;;  %v2185_v7 = vld [vmem:[%s2947_s4 + $0x28] sm:$0xff]   ;;  %v2186_v8 = vld [vmem:[%s2947_s4 + $0x60] sm:$0xff]   ;;  %v2188_v10 = vld [vmem:[%s2947_s4 + $0x58] sm:$0xff]   ;;  %vm689_vm2 = vcmask 1046528   ;;  %vm1578_vm3 = vcmask 122880  }
  0x33   : > { %1924 = vmatpush3.bf16.msra.mxu1 %v2181_v3  ;;  %1905 = vmatprep.subr.bf16.mxu0 %v2374_v2  ;;  %s401_s7 = scalar_select %p400_p10, %s2355_s10, 17  ;;  %v2187_v9 = vld [vmem:[%s2947_s4 + $0x20] sm:$0xff]   ;;  %v2189_v11 = vld [vmem:[%s2947_s4 + $0x18] sm:$0xff]   ;;  %v2190_v14 = vld [vmem:[%s2947_s4 + $0x50] sm:$0xff]  }
  0x34   : > { %1925 = vmatprep.subr.bf16.mxu1 %v2374_v2  ;;  %1939 = vmatprep.mubr.msk.bf16.mxu1 %vm2375_vm0, %v2374_v2  ;;  %s2545_s23 = smul.u32 54, %s399_s19  ;;  %p410_p11 = scmp.lt.s32.totalorder %s407_s24, 17  ;;  %v2191_v15 = vld [vmem:[%s2947_s4 + $0x10] sm:$0xff]   ;;  %v2192_v17 = vld [vmem:[%s2947_s4 + $0x48] sm:$0xff]   ;;  %v2194_v22 = vld [vmem:[%s2947_s4 + $0x40] sm:$0xff]  }
  0x35   : > { %s2090_s26 = smul.u32 3, %s401_s7  ;;  %v2193_v21 = vld [vmem:[%s2947_s4 + $0x8] sm:$0xff]   ;;  %v2195_v23 = vld [vmem:[%s2947_s4] sm:$0xff]   ;;  %v2198_v27 = vld [vmem:[%s2947_s4 + $0xb8] sm:$0xff]   ;;  %s430_s28 = sld [smem:[#allocation3 + %s2359_s11]] }
  0x36   : > { %1906 = vmatpush3.bf16.msra.mxu0 %v2182_v4  ;;  %s2979_s24 = smov (!%p410_p11, %s407_s24), 17  ;;  %v2199_v28 = vld [vmem:[%s2947_s4 + $0xf8] sm:$0xff]   ;;  %v2200_v29 = vld [vmem:[%s2947_s4 + $0xb0] sm:$0xff]   ;;  %v2202_v31 = vld [vmem:[%s2947_s4 + $0xa8] sm:$0xff]  }
  0x37   : > { %1926 = vmatpush3.bf16.msra.mxu1 %v2183_v5  ;;  %1907 = vmatprep.subr.bf16.mxu0 %v2374_v2  ;;  %s404_s27 = sadd.s32 %s2545_s23, %s2090_s26  ;;  %s2092_s26 = smul.u32 3, %s2979_s24  ;;  %v2201_v30 = vld [vmem:[%s2947_s4 + $0xf0] sm:$0xff]   ;;  %v2203_v32 = vld [vmem:[%s2947_s4 + $0xe8] sm:$0xff]   ;;  %v2204_v33 = vld [vmem:[%s2947_s4 + $0xa0] sm:$0xff]  }
  0x38   : > { %1927 = vmatprep.subr.bf16.mxu1 %v2374_v2  ;;  %s1733_s22 = sshll.u32 %s404_s27, 2  ;;  %v2205_v34 = vld [vmem:[%s2947_s4 + $0xe0] sm:$0xff]   ;;  %v2206_v35 = vld [vmem:[%s2947_s4 + $0x98] sm:$0xff]   ;;  %v2208_v37 = vld [vmem:[%s2947_s4 + $0x90] sm:$0xff]  }
  0x39   : > { %s406_s0 = scalar_lea.vmem %s2944_s1, %s1733_s22  ;;  %s414_s17 = sadd.s32 %s2092_s26, %s2545_s23  ;;  %v2207_v36 = vld [vmem:[%s2947_s4 + $0xd8] sm:$0xff]   ;;  %v2209_v38 = vld [vmem:[%s2947_s4 + $0xd0] sm:$0xff]   ;;  %v2210_v39 = vld [vmem:[%s2947_s4 + $0x88] sm:$0xff]  }
  0x3a   : > { %1908 = vmatpush3.bf16.msra.mxu0 %v2184_v6  ;;  %v2573_v12 = vld [vmem:[%s406_s0] sm:$0xff]   ;;  %v2575_v13 = vld [vmem:[%s406_s0 + $0x8] ss:$0 sps:$4 sm:$0x11]   ;;  %s1734_s7 = sshll.u32 %s414_s17, 2  ;;  %s418_s17 = sadd.s32 2, %s2355_s10 }
  0x3b   : > { %1928 = vmatpush3.bf16.msra.mxu1 %v2185_v7  ;;  %1909 = vmatprep.subr.bf16.mxu0 %v2374_v2  ;;  %v484_v16 = vshll.u32 %v2573_v12, 16  ;;  %v482_v18 = vshrl.u32 %v2573_v12, 16  ;;  %v489_v20 = vshll.u32 %v2575_v13, 16  ;;  %s2621_s27 = scalar_lea.vmem %s2945_s2, %s1734_s7  ;;  %p421_p12 = scmp.lt.s32.totalorder %s418_s17, 17  ;;  %v2211_v40 = vld [vmem:[%s2947_s4 + $0xc8] sm:$0xff]   ;;  %v690_v41 = vrot.slane %v2573_v12, 1 }
  0x3c   : > { %1929 = vmatprep.subr.bf16.mxu1 %v2374_v2  ;;  %v2212_v42 = vld [vmem:[%s2947_s4 + $0x80] sm:$0xff]   ;;  %v691_v43 = vrot.slane %v2575_v13, 1  ;;  %v2214_v45 = vld [vmem:[%s2947_s4 + $0x138] sm:$0xff]   ;;  %v2217_v49 = vld [vmem:[%s2947_s4 + $0x130] sm:$0xff]  }
  0x3d   : > { %v486_v19 = vrot.slane %v484_v16, 1  ;;  %v491_v25 = vrot.slane %v489_v20, 1  ;;  %s2981_s17 = smov (!%p421_p12, %s418_s17), 17  ;;  %v2213_v44 = vld [vmem:[%s2947_s4 + $0xc0] sm:$0xff]   ;;  %v2216_v48 = vld [vmem:[%s2947_s4 + $0x178] sm:$0xff]   ;;  %v2218_v50 = vld [vmem:[%s2947_s4 + $0x170] sm:$0xff]  }
  0x3e   : > { %1910 = vmatpush3.bf16.msra.mxu0 %v2186_v8  ;;  %s2093_s24 = smul.u32 3, %s2981_s17  ;;  %v692_v46 = vsel %vm689_vm2, %v690_v41, %v691_v43  ;;  %v2689_v47 = vld [vmem:[%s2621_s27] sm:$0xff]   ;;  %v2219_v51 = vld [vmem:[%s2947_s4 + $0x128] sm:$0xff]   ;;  %v2223_v55 = vld [vmem:[%s2947_s4 + $0x118] sm:$0xff]  }
  0x3f   : > { %1930 = vmatpush3.bf16.msra.mxu1 %v2187_v9  ;;  %1911 = vmatprep.subr.bf16.mxu0 %v2374_v2  ;;  %v487_v24 = vor.u32 %v486_v19, %v482_v18  ;;  %v2220_v52 = vld [vmem:[%s2947_s4 + $0x168] sm:$0xff]   ;;  %v2221_v53 = vld [vmem:[%s2947_s4 + $0x120] sm:$0xff]   ;;  %v2224_v56 = vld [vmem:[%s2947_s4 + $0x158] sm:$0xff]   ;;  %v920_v59 = vshll.u32 %v2689_v47, 16  ;;  %v918_v62 = vshrl.u32 %v2689_v47, 16  ;;  %v1037_v7 = vrot.slane %v2689_v47, 1 }
  0x40   : > { %1931 = vmatprep.subr.bf16.mxu1 %v2374_v2  ;;  %s425_s17 = sadd.s32 %s2093_s24, %s2545_s23  ;;  %v2222_v54 = vld [vmem:[%s2947_s4 + $0x160] sm:$0xff]   ;;  %v2225_v57 = vld [vmem:[%s2947_s4 + $0x110] sm:$0xff]   ;;  %v2231_v58 = vld [vmem:[%s2621_s27 + $0x8] ss:$0 sps:$4 sm:$0x11]  }
  0x41   : > { %v492_v26 = vsel %vm480_vm1, %v487_v24, %v491_v25  ;;  %s1735_s19 = sshll.u32 %s425_s17, 2  ;;  %v2226_v60 = vld [vmem:[%s2947_s4 + $0x150] sm:$0xff]   ;;  %v2227_v61 = vld [vmem:[%s2947_s4 + $0x108] sm:$0xff]   ;;  %v922_v63 = vrot.slane %v920_v59, 1  ;;  %v925_v0 = vshll.u32 %v2231_v58, 16  ;;  %v2229_v3 = vld [vmem:[%s2947_s4 + $0x100] sm:$0xff]  }
  0x42   : > { %1912 = vmatpush3.bf16.msra.mxu0 %v2188_v10  ;;  %s2707_s25 = scalar_lea.vmem %s2946_s3, %s1735_s19  ;;  %v2228_v1 = vld [vmem:[%s2947_s4 + $0x148] sm:$0xff]   ;;  %v2230_v6 = vld [vmem:[%s2947_s4 + $0x140] sm:$0xff]   ;;  %v1038_v8 = vrot.slane %v2231_v58, 1  ;;  %v2232_v10 = vld [vmem:[%s2947_s4 + $0x1b8] sm:$0xff]   ;;  %v2376_v58 = vmov 0   ;;  %s396_s19 = sand.u32 1, %s2347_s30  }
  0x43   : > { %1932 = vmatpush3.bf16.msra.mxu1 %v2189_v11  ;;  %1913 = vmatprep.subr.bf16.mxu0 %v2374_v2  ;;  %v923_v4 = vor.u32 %v922_v63, %v918_v62  ;;  %v927_v5 = vrot.slane %v925_v0, 1  ;;  %v2234_v13 = vld [vmem:[%s2947_s4 + $0x1b0] sm:$0xff]   ;;  %v2237_v16 = vld [vmem:[%s2947_s4 + $0x1e8] sm:$0xff]   ;;  %v2239_v18 = vld [vmem:[%s2947_s4 + $0x1e0] sm:$0xff]   ;;  %s397_s27 = scalar_lea.vmem [#allocation6], %s396_s19  ;;  %s1581_s26 = scalar_lea.sflag [#allocation4], %s396_s19 }
  0x44   : > { %1933 = vmatprep.subr.bf16.mxu1 %v2374_v2  ;;  %v1039_v11 = vsel %vm689_vm2, %v1037_v7, %v1038_v8  ;;  %v2240_v19 = vld [vmem:[%s2947_s4 + $0x198] sm:$0xff]   ;;  %v2250_v24 = vld [vmem:[%s2707_s25 + $0x8] ss:$0 sps:$4 sm:$0x11]   ;;  %v2255_v41 = vld [vmem:[%s2947_s4 + $0x210] sm:$0xff]   ;;  %2179 = vset.pattern.permute.xlu0 %v2376_v58  ;;  %s1595_s18 = sshll.u32 %s397_s27, 4  ;;  %s1596_s18 = int_to_ptr.vmem [resolvable:$true] %s1595_s18 }
  0x45   : > { %v928_v9 = vsel %vm480_vm1, %v923_v4, %v927_v5  ;;  %v2241_v20 = vld [vmem:[%s2947_s4 + $0x1d8] sm:$0xff]   ;;  %v2257_v43 = vld [vmem:[%s2947_s4 + $0x200] sm:$0xff]   ;;  %s2275_s17 = scalar_lea.vmem %s1596_s18, 16 }
  0x46   : > { %1914 = vmatpush3.bf16.msra.mxu0 %v2190_v14  ;;  %v2235_v14 = vld [vmem:[%s2947_s4 + $0x1f0] sm:$0xff]   ;;  %p2276_p13 = scmp.ne.s32.totalorder %s1596_s18, %s2275_s17 }
  0x47   : > { %1934 = vmatpush3.bf16.msra.mxu1 %v2191_v15  ;;  %1915 = vmatprep.subr.bf16.mxu0 %v2374_v2  ;;  %v2236_v15 = vld [vmem:[%s2947_s4 + $0x1a8] sm:$0xff]  }
  0x48   : > { %1935 = vmatprep.subr.bf16.mxu1 %v2374_v2  ;;  %p2277_p0 = pnand %p2276_p13, %p2478_p3 }
  0x4a   : > { %1916 = vmatpush3.bf16.msra.mxu0 %v2192_v17  ;;  %v2238_v17 = vld [vmem:[%s2947_s4 + $0x1a0] sm:$0xff]   ;;  %p2278_p1 = pneg %p2277_p0 }
  0x4b   : > { %1936 = vmatpush3.bf16.msra.mxu1 %v2193_v21  ;;  %1917 = vmatprep.subr.bf16.mxu0 %v2374_v2  ;;  %v2812_v21 = vld [vmem:[%s2707_s25] sm:$0xff]   ;;  %s1815_s25 = sshll.u32 %s2359_s11, 4  ;;  %s2377_s11 = smov [#allocation6]  }
  0x4c   : > { %1937 = vmatprep.subr.bf16.mxu1 %v2374_v2  ;;  %v1267_v25 = vshll.u32 %v2812_v21, 16  ;;  %s1591_s23 = sadd.s32 %s2355_s10, %s1815_s25  ;;  %s2279_s10 = sshll.u32 %s2377_s11, 4  ;;  %s2280_s10 = int_to_ptr.vmem [resolvable:$false] %s2279_s10 }
  0x4d   : > { %s1816_s24 = sshll.u32 %s1591_s23, 4  ;;  %s2281_s0 = scalar_lea.vmem %s2280_s10, 32 }
  0x4e   : > { %1918 = vmatpush3.bf16.msra.mxu0 %v2194_v22  ;;  %v2242_v22 = vld [vmem:[%s2947_s4 + $0x190] sm:$0xff]   ;;  %s2897_s7 = scalar_lea.hbm %s2951_s8, %s1816_s24  ;;  %p2282_p2 = scmp.lt.s32.totalorder %s1596_s18, %s2280_s10 }
  0x4f   : > { %1938 = vmatpush3.bf16.msra.mxu1 %v2195_v23  ;;  %1943 = vmatprep.subr.bf16.mxu0 %v2374_v2  ;;  %v2243_v23 = vld [vmem:[%s2947_s4 + $0x1d0] sm:$0xff]   ;;  %p2283_p4 = scmp.lt.s32.totalorder %s2281_s0, %s2275_s17 }
  0x50   : > { %1963 = vmatprep.subr.bf16.mxu1 %v2374_v2 }
  0x51   : > { %1920 = vmatmul.mubr.bf16.vlgmr.msra.gmra.mxu0 %v492_v26  ;;  %v2244_v26 = vld [vmem:[%s2947_s4 + $0x188] sm:$0xff]   ;;  %p2284_p5 = por %p2283_p4, %p2282_p2 }
  0x52   : > { %1940 = vmatmul.mubr.bf16.vlgmr.msra.gmra.mxu1 %v2573_v12  ;;  %1944 = vmatpush3.bf16.msra.mxu0 %v2198_v27  ;;  %v2233_v12 = vld [vmem:[%s2947_s4 + $0x1f8] sm:$0xff]   ;;  %v2245_v27 = vld [vmem:[%s2947_s4 + $0x1c8] sm:$0xff]  }
  0x53   : > { %1964 = vmatpush3.bf16.msra.mxu1 %v2199_v28  ;;  %1945 = vmatprep.subr.bf16.mxu0 %v2374_v2  ;;  %v1265_v28 = vshrl.u32 %v2812_v21, 16  ;;  %p2285_p6 = pnand %p2284_p5, %p2278_p1 }
  0x54   : > { %1965 = vmatprep.subr.bf16.mxu1 %v2374_v2  ;;  %1959 = vmatprep.mubr.msk.bf16.mxu0 %vm2375_vm0, %v2374_v2 }
  0x55   : > { %1979 = vmatprep.mubr.msk.bf16.mxu1 %vm2375_vm0, %v2374_v2 }
  0x56   : > { %1946 = vmatpush3.bf16.msra.mxu0 %v2200_v29  ;;  %v1269_v29 = vrot.slane %v1267_v25, 1 }
  0x57   : > { %1966 = vmatpush3.bf16.msra.mxu1 %v2201_v30  ;;  %1947 = vmatprep.subr.bf16.mxu0 %v2374_v2  ;;  %v1272_v30 = vshll.u32 %v2250_v24, 16 }
  0x58   : > { %1967 = vmatprep.subr.bf16.mxu1 %v2374_v2 }
  0x5a   : > { %1948 = vmatpush3.bf16.msra.mxu0 %v2202_v31  ;;  %v2246_v31 = vld [vmem:[%s2947_s4 + $0x180] sm:$0xff]  }
  0x5b   : > { %1968 = vmatpush3.bf16.msra.mxu1 %v2203_v32  ;;  %1949 = vmatprep.subr.bf16.mxu0 %v2374_v2  ;;  %v2247_v32 = vld [vmem:[%s2947_s4 + $0x1c0] sm:$0xff]  }
  0x5c   : > { %1969 = vmatprep.subr.bf16.mxu1 %v2374_v2 }
  0x5e   : > { %1950 = vmatpush3.bf16.msra.mxu0 %v2204_v33  ;;  %v1270_v33 = vor.u32 %v1269_v29, %v1265_v28 }
  0x5f   : > { %1970 = vmatpush3.bf16.msra.mxu1 %v2205_v34  ;;  %1951 = vmatprep.subr.bf16.mxu0 %v2374_v2  ;;  %v1274_v34 = vrot.slane %v1272_v30, 1 }
  0x60   : > { %1971 = vmatprep.subr.bf16.mxu1 %v2374_v2 }
  0x62   : > { %1952 = vmatpush3.bf16.msra.mxu0 %v2206_v35  ;;  %v2249_v35 = vld [vmem:[%s2947_s4 + $0x238] sm:$0xff]  }
  0x63   : > { %1972 = vmatpush3.bf16.msra.mxu1 %v2207_v36  ;;  %1953 = vmatprep.subr.bf16.mxu0 %v2374_v2  ;;  %v1275_v36 = vsel %vm480_vm1, %v1270_v33, %v1274_v34 }
  0x64   : > { %1973 = vmatprep.subr.bf16.mxu1 %v2374_v2 }
  0x66   : > { %1954 = vmatpush3.bf16.msra.mxu0 %v2208_v37  ;;  %v2251_v37 = vld [vmem:[%s2947_s4 + $0x230] sm:$0xff]  }
  0x67   : > { %1974 = vmatpush3.bf16.msra.mxu1 %v2209_v38  ;;  %1955 = vmatprep.subr.bf16.mxu0 %v2374_v2  ;;  %v2252_v38 = vld [vmem:[%s2947_s4 + $0x228] sm:$0xff]  }
  0x68   : > { %1975 = vmatprep.subr.bf16.mxu1 %v2374_v2 }
  0x6a   : > { %1956 = vmatpush3.bf16.msra.mxu0 %v2210_v39  ;;  %v2253_v39 = vld [vmem:[%s2947_s4 + $0x220] sm:$0xff]  }
  0x6b   : > { %1976 = vmatpush3.bf16.msra.mxu1 %v2211_v40  ;;  %1957 = vmatprep.subr.bf16.mxu0 %v2374_v2  ;;  %v2254_v40 = vld [vmem:[%s2947_s4 + $0x218] sm:$0xff]  }
  0x6c   : > { %1977 = vmatprep.subr.bf16.mxu1 %v2374_v2 }
  0x6e   : > { %1958 = vmatpush3.bf16.msra.mxu0 %v2212_v42  ;;  %v2256_v42 = vld [vmem:[%s2947_s4 + $0x208] sm:$0xff]  }
  0x6f   : > { %1978 = vmatpush3.bf16.msra.mxu1 %v2213_v44  ;;  %1983 = vmatprep.subr.bf16.mxu0 %v2374_v2  ;;  %v1384_v44 = vrot.slane %v2812_v21, 1 }
  0x70   : > { %2003 = vmatprep.subr.bf16.mxu1 %v2374_v2 }
  0x71   : > { %1960 = vmatmul.mubr.bf16.vlgmr.msra.gmra.mxu0 %v692_v46 }
  0x72   : > { %1984 = vmatpush3.bf16.msra.mxu0 %v2214_v45  ;;  %1980 = vmatmul.mubr.bf16.vlgmr.msra.gmra.mxu1 %v2689_v47  ;;  %v1385_v45 = vrot.slane %v2250_v24, 1 }
  0x73   : > { %2004 = vmatpush3.bf16.msra.mxu1 %v2216_v48  ;;  %1985 = vmatprep.subr.bf16.mxu0 %v2374_v2 }
  0x74   : > { %2005 = vmatprep.subr.bf16.mxu1 %v2374_v2  ;;  %1999 = vmatprep.mubr.msk.bf16.mxu0 %vm2375_vm0, %v2374_v2  ;;  %v1386_v46 = vsel %vm689_vm2, %v1384_v44, %v1385_v45  ;;  %v1497_v44 = vlaneseq }
  0x75   : > { %2019 = vmatprep.mubr.msk.bf16.mxu1 %vm2375_vm0, %v2374_v2 }
  0x76   : > { %1986 = vmatpush3.bf16.msra.mxu0 %v2217_v49  ;;  %v1498_v45 = vshrl.u32 %v1497_v44, 7 }
  0x77   : > { %2006 = vmatpush3.bf16.msra.mxu1 %v2218_v50  ;;  %1987 = vmatprep.subr.bf16.mxu0 %v2374_v2 }
  0x78   : > { %2007 = vmatprep.subr.bf16.mxu1 %v2374_v2 }
  0x7a   : > { %1988 = vmatpush3.bf16.msra.mxu0 %v2219_v51 }
  0x7b   : > { %2008 = vmatpush3.bf16.msra.mxu1 %v2220_v52  ;;  %1989 = vmatprep.subr.bf16.mxu0 %v2374_v2 }
  0x7c   : > { %2009 = vmatprep.subr.bf16.mxu1 %v2374_v2 }
  0x7e   : > { %1990 = vmatpush3.bf16.msra.mxu0 %v2221_v53 }
  0x7f   : > { %2010 = vmatpush3.bf16.msra.mxu1 %v2222_v54  ;;  %1991 = vmatprep.subr.bf16.mxu0 %v2374_v2 }
  0x80   : > { %2011 = vmatprep.subr.bf16.mxu1 %v2374_v2 }
  0x82   : > { %1992 = vmatpush3.bf16.msra.mxu0 %v2223_v55 }
  0x83   : > { %2012 = vmatpush3.bf16.msra.mxu1 %v2224_v56  ;;  %1993 = vmatprep.subr.bf16.mxu0 %v2374_v2 }
  0x84   : > { %2013 = vmatprep.subr.bf16.mxu1 %v2374_v2 }
  0x86   : > { %1994 = vmatpush3.bf16.msra.mxu0 %v2225_v57  ;;  %v1491_v57 = vld [vmem:[#allocation2] sm:$0x1] }
  0x87   : > { %2014 = vmatpush3.bf16.msra.mxu1 %v2226_v60  ;;  %1995 = vmatprep.subr.bf16.mxu0 %v2374_v2 }
  0x88   : > { %2015 = vmatprep.subr.bf16.mxu1 %v2374_v2  ;;  %1494 = vperm.xlu0 %2179, %v1491_v57  }
  0x8a   : > { %1996 = vmatpush3.bf16.msra.mxu0 %v2227_v61 }
  0x8b   : > { %2016 = vmatpush3.bf16.msra.mxu1 %v2228_v1  ;;  %1997 = vmatprep.subr.bf16.mxu0 %v2374_v2 }
  0x8c   : > { %2017 = vmatprep.subr.bf16.mxu1 %v2374_v2 }
  0x8e   : > { %1998 = vmatpush3.bf16.msra.mxu0 %v2229_v3 }
  0x8f   : > { %2018 = vmatpush3.bf16.msra.mxu1 %v2230_v6  ;;  %2023 = vmatprep.subr.bf16.mxu0 %v2374_v2 }
  0x90   : > { %2043 = vmatprep.subr.bf16.mxu1 %v2374_v2 }
  0x91   : > { %2000 = vmatmul.mubr.bf16.vlgmr.msra.gmra.mxu0 %v928_v9 }
  0x92   : > { %2024 = vmatpush3.bf16.msra.mxu0 %v2232_v10  ;;  %2020 = vmatmul.mubr.bf16.vlgmr.msra.gmra.mxu1 %v1039_v11 }
  0x93   : > { %2044 = vmatpush3.bf16.msra.mxu1 %v2233_v12  ;;  %2025 = vmatprep.subr.bf16.mxu0 %v2374_v2 }
  0x94   : > { %2045 = vmatprep.subr.bf16.mxu1 %v2374_v2  ;;  %2039 = vmatprep.mubr.msk.bf16.mxu0 %vm2375_vm0, %v2374_v2 }
  0x95   : > { %2059 = vmatprep.mubr.msk.bf16.mxu1 %vm2375_vm0, %v2374_v2 }
  0x96   : > { %2026 = vmatpush3.bf16.msra.mxu0 %v2234_v13 }
  0x97   : > { %2046 = vmatpush3.bf16.msra.mxu1 %v2235_v14  ;;  %2027 = vmatprep.subr.bf16.mxu0 %v2374_v2 }
  0x98   : > { %2047 = vmatprep.subr.bf16.mxu1 %v2374_v2 }
  0x9a   : > { %2028 = vmatpush3.bf16.msra.mxu0 %v2236_v15 }
  0x9b   : > { %2048 = vmatpush3.bf16.msra.mxu1 %v2237_v16  ;;  %2029 = vmatprep.subr.bf16.mxu0 %v2374_v2 }
  0x9c   : > { %2049 = vmatprep.subr.bf16.mxu1 %v2374_v2 }
  0x9e   : > { %2030 = vmatpush3.bf16.msra.mxu0 %v2238_v17 }
  0x9f   : > { %2050 = vmatpush3.bf16.msra.mxu1 %v2239_v18  ;;  %2031 = vmatprep.subr.bf16.mxu0 %v2374_v2 }
  0xa0   : > { %2051 = vmatprep.subr.bf16.mxu1 %v2374_v2 }
  0xa2   : > { %2032 = vmatpush3.bf16.msra.mxu0 %v2240_v19 }
  0xa3   : > { %2052 = vmatpush3.bf16.msra.mxu1 %v2241_v20  ;;  %2033 = vmatprep.subr.bf16.mxu0 %v2374_v2 }
  0xa4   : > { %2053 = vmatprep.subr.bf16.mxu1 %v2374_v2 }
  0xa6   : > { %2034 = vmatpush3.bf16.msra.mxu0 %v2242_v22 }
  0xa7   : > { %2054 = vmatpush3.bf16.msra.mxu1 %v2243_v23  ;;  %2035 = vmatprep.subr.bf16.mxu0 %v2374_v2 }
  0xa8   : > { %2055 = vmatprep.subr.bf16.mxu1 %v2374_v2 }
  0xaa   : > { %2036 = vmatpush3.bf16.msra.mxu0 %v2244_v26 }
  0xab   : > { %2056 = vmatpush3.bf16.msra.mxu1 %v2245_v27  ;;  %2037 = vmatprep.subr.bf16.mxu0 %v2374_v2 }
  0xac   : > { %2057 = vmatprep.subr.bf16.mxu1 %v2374_v2 }
  0xae   : > { %2038 = vmatpush3.bf16.msra.mxu0 %v2246_v31 }
  0xaf   : > { %2058 = vmatpush3.bf16.msra.mxu1 %v2247_v32  ;;  %2063 = vmatprep.subr.bf16.mxu0 %v2374_v2 }
  0xb0   : > { %2083 = vmatprep.subr.mxu1 %v2374_v2 }
  0xb1   : > { %2040 = vmatmul.mubr.bf16.vlgmr.msra.gmra.mxu0 %v2812_v21 }
  0xb2   : > { %2064 = vmatpush3.bf16.msra.mxu0 %v2249_v35  ;;  %2060 = vmatmul.mubr.bf16.vlgmr.msra.gmra.mxu1 %v1275_v36 }
  0xb3   : > { %2065 = vmatprep.subr.bf16.mxu0 %v2374_v2  ;;  %2079 = vmatprep.mubr.msk.bf16.mxu0 %vm2375_vm0, %v2374_v2 }
  0xb4   : > { %2087 = vmatprep.mubr.msk.f32.mxu1 %vm2375_vm0, %v2374_v2 }
  0xb6   : > { %2066 = vmatpush3.bf16.msra.mxu0 %v2251_v37  ;;  %v1814_v37 = vld [vmem:[%s2948_s5] ss:$0 sm:$0xff] }
  0xb7   : > { %2067 = vmatprep.subr.bf16.mxu0 %v2374_v2 }
  0xba   : > { %2068 = vmatpush3.bf16.msra.mxu0 %v2252_v38 }
  0xbb   : > { %2069 = vmatprep.subr.bf16.mxu0 %v2374_v2 }
  0xbe   : > { %2070 = vmatpush3.bf16.msra.mxu0 %v2253_v39 }
  0xbf   : > { %2071 = vmatprep.subr.bf16.mxu0 %v2374_v2 }
  0xc2   : > { %2072 = vmatpush3.bf16.msra.mxu0 %v2254_v40 }
  0xc3   : > { %2073 = vmatprep.subr.bf16.mxu0 %v2374_v2 }
  0xc6   : > { %2074 = vmatpush3.bf16.msra.mxu0 %v2255_v41 }
  0xc7   : > { %2075 = vmatprep.subr.bf16.mxu0 %v2374_v2 }
  0xca   : > { %2076 = vmatpush3.bf16.msra.mxu0 %v2256_v42 }
  0xcb   : > { %2077 = vmatprep.subr.bf16.mxu0 %v2374_v2 }
  0xce   : > { %2078 = vmatpush3.bf16.msra.mxu0 %v2257_v43  ;;  %v1490_v43 = vld [vmem:[%s2949_s6] sm:$0x1] }
  0xd1   : > { %2080 = vmatmul.mubr.bf16.vlgmr.msra.gmra.mxu0 %v1386_v46  ;;  %v1499_v46 = vsub.s32 0, %v1498_v45 }
 0x111   : > { %v576_v47 = vpop.f32.mrf.mxu0 }
 0x112   : > { %v666_v48 = vpop.f32.mrf.mxu1 }
 0x113   : > { %v667_v49 = vadd.f32 %v666_v48, %v576_v47  ;;  %v1921_v50 = vpop.f32.mrf.mxu0  ;;  %v1495_v47 = vpop.permute.xlu0 %1494 }
 0x114   : > { %v1941_v51 = vpop.f32.mrf.mxu1  ;;  %v1500_v48 = vrot.slane %v1495_v47, %v1499_v46 }
 0x115   : > { %v579_v52 = vpop.f32.mrf.mxu0  ;;  %v1572_v51 = vstv %s430_s28 }
 0x116   : > { %v669_v53 = vpop.f32.mrf.mxu1 }
 0x117   : > { %v670_v54 = vadd.f32 %v669_v53, %v579_v52  ;;  %v1922_v55 = vpop.f32.mrf.mxu0 }
 0x118   : > { %v1942_v56 = vpop.f32.mrf.mxu1 }
 0x131   : > { %v776_v59 = vpop.f32.mrf.mxu0 }
 0x132   : > { %v783_v60 = vadd.f32 %v776_v59, %v667_v49  ;;  %v889_v61 = vpop.f32.mrf.mxu1 }
 0x133   : > { %v1961_v62 = vpop.f32.mrf.mxu0 }
 0x134   : > { %v896_v63 = vadd.f32 %v889_v61, %v783_v60  ;;  %v1981_v0 = vpop.f32.mrf.mxu1 }
 0x135   : > { %v779_v1 = vpop.f32.mrf.mxu0 }
 0x136   : > { %v784_v3 = vadd.f32 %v779_v1, %v670_v54  ;;  %v892_v4 = vpop.f32.mrf.mxu1 }
 0x137   : > { %v1962_v5 = vpop.f32.mrf.mxu0 }
 0x138   : > { %v897_v6 = vadd.f32 %v892_v4, %v784_v3  ;;  %v1982_v7 = vpop.f32.mrf.mxu1 }
 0x151   : > { %v1012_v8 = vpop.f32.mrf.mxu0 }
 0x152   : > { %v1019_v9 = vadd.f32 %v1012_v8, %v896_v63  ;;  %v1123_v10 = vpop.f32.mrf.mxu1 }
 0x153   : > { %v2001_v11 = vpop.f32.mrf.mxu0 }
 0x154   : > { %v1130_v12 = vadd.f32 %v1123_v10, %v1019_v9  ;;  %v2021_v13 = vpop.f32.mrf.mxu1 }
 0x155   : > { %v1015_v14 = vpop.f32.mrf.mxu0 }
 0x156   : > { %v1126_v15 = vpop.f32.mrf.mxu1  ;;  %v1020_v26 = vadd.f32 %v1015_v14, %v897_v6 }
 0x157   : > { %v2002_v16 = vpop.f32.mrf.mxu0 }
 0x158   : > { %v2022_v17 = vpop.f32.mrf.mxu1  ;;  %v1131_v27 = vadd.f32 %v1126_v15, %v1020_v26 }
 0x171   : > { %v1236_v18 = vpop.f32.mrf.mxu0 }
 0x172   : > { %v1359_v19 = vpop.f32.mrf.mxu1  ;;  %v1243_v28 = vadd.f32 %v1236_v18, %v1130_v12 }
 0x173   : > { %v2041_v20 = vpop.f32.mrf.mxu0 }
 0x174   : > { %v2061_v21 = vpop.f32.mrf.mxu1  ;;  %v1366_v32 = vadd.f32 %v1359_v19, %v1243_v28 }
 0x175   : > { %v1239_v22 = vpop.f32.mrf.mxu0 }
 0x176   : > { %v1362_v23 = vpop.f32.mrf.mxu1  ;;  %v1244_v29 = vadd.f32 %v1239_v22, %v1131_v27 }
 0x177   : > { %v2042_v24 = vpop.f32.mrf.mxu0 }
 0x178   : > { %v2062_v25 = vpop.f32.mrf.mxu1  ;;  %v1367_v33 = vadd.f32 %v1362_v23, %v1244_v29 }
 0x191   : > { %v1470_v30 = vpop.f32.mrf.mxu0 }
 0x192   : > { %v1477_v35 = vadd.f32 %v1470_v30, %v1366_v32 }
 0x193   : > { %v2081_v31 = vpop.f32.mrf.mxu0 }
 0x194   : > { %v1486_v40 = vadd.f32 %v1814_v37, %v1477_v35 }
 0x195   : > { %v1473_v34 = vpop.f32.mrf.mxu0 }
 0x196   : > { %v1478_v36 = vadd.f32 %v1473_v34, %v1367_v33  ;;  %v1488_v42 = vmax.f32 %v1486_v40, 0.0 }
 0x197   : > { %v2082_v38 = vpop.f32.mrf.mxu0 }
 0x198   : > { %v1487_v39 = vadd.f32 %v1814_v37, %v1478_v36 }
 0x19a   : > { %v1489_v41 = vmax.f32 %v1487_v39, 0.0 }
 0x19c   : > { %2084 = vmatpush3.xpose.msra.mxu1 %v1489_v41 }
 0x19d   : > { %2085 = vmatprep.subr.mxu1 %v2374_v2 }
 0x1a0   : > { %2086 = vmatpush3.xpose.msra.mxu1 %v1488_v42 }
 0x1a3   : > { %2088 = vmatmul.mubr.f32.vlgmr.msra.gmra.mxu1 %v1490_v43 }
 0x263   : > { %v1567_v49 = vpop.f32.mrf.mxu1 }
 0x264   : > { %v1568_v50 = vadd.f32 %v1567_v49, %v1500_v48 }
 0x265   : > { %v2089_v2 = vpop.f32.mrf.mxu1 }
 0x266   : > { %v1571_v52 = vmax.f32 %v1568_v50, 0.0 }
 0x268   : > { %v1573_v53 = vmul.f32 %v1572_v51, %v1571_v52 }
 0x26a   : > { %v1574_v54 = vmax.f32 %v1573_v53, 0.0001 }
 0x26c   : > { %v1575_v55 = vmin.f32 %v1574_v54, 10000.0 }
 0x26e   : > { %2258 = vrcp.f32 %v1575_v55 }
 0x27b   : > { %v2259_v56 = vpop.eup %2258 }
 0x27c   : > { %1579 = vst.msk [vmem:[%s397_s27] sm:$0x1] %vm1578_vm3, %v2259_v56 }
 0x27d   : > { %2288 = shalt.err (!%p2285_p6)
}
 0x27e   : > { %s2289_s28 = scalar_lea.hbm %s2897_s7, 16  ;;  %s2293_s23 = scalar_lea.hbm %s2951_s8, 512 }
 0x27f   : > { %p2290_p7 = scmp.ne.s32.totalorder %s2897_s7, %s2289_s28  ;;  %p2294_p10 = scmp.lt.s32.totalorder %s2897_s7, %s2951_s8 }
 0x280   : > { %p2295_p11 = scmp.lt.s32.totalorder %s2293_s23, %s2289_s28 }
 0x281   : > { %p2291_p9 = pnand %p2290_p7, %p2478_p3 }
 0x282   : > { %p2296_p12 = por %p2295_p11, %p2294_p10 }
 0x283   : > { %p2292_p8 = pneg %p2291_p9 }
 0x285   : > { %p2297_p13 = pnand %p2296_p12, %p2292_p8 }
 0x287   : > { %2300 = shalt.err (!%p2297_p13)
}
 0x288   : > { %2098 = dma.vmem_to_hbm [thread:$0]  (%p2478_p3), %s1596_s18, 16, %s2897_s7, %s1581_s26  }
 0x289 PF: > { %p2110_p0 = scmp.ge.s32.totalorder %s2371_s14, 2  ;;  %s1607_s16 = sand.u32 1, %s2343_s29  }
 0x28a   : > { %p2962_p1 = scmp.ne.s32.totalorder %s2958_s21, 0  ;;  %s1608_s22 = scalar_lea.sflag [#allocation4], %s1607_s16 }
 0x28c   : > { %p2105_p2 = pnand %p2110_p0, %p2962_p1 }
 0x28e   : > { %p2106_p4 = pneg %p2105_p2 }
 0x290   : > { %2338 = dma.done.wait (%p2106_p4), %s1608_s22, 16  }
 0x291   : > { %2340 = vsyncadd (%p2106_p4), %s1608_s22, 4294967280  ;;  %s24_s14 = sadd.s32 1, %s2371_s14   ;;  %s2963_s20 = sld [smem:[#allocation9_spill]] }
 0x292   : > { %p21_p5 = scmp.ge.s32.totalorder %s24_s14, 34   ;;  %s2964_s18 = sld [smem:[#allocation10_spill]] }
 0x293   : > { %s2965_s29 = smov %s2347_s30  ;;  %s2966_s30 = smov %s2351_s9 }
 0x294   : > { %s2967_s9 = smov %s2508_s15  ;;  %s2968_s10 = smov %s2363_s12 }
 0x295   : > { %s2969_s11 = smov %s2367_s13  ;;  %23 = sbr.rel (!%p21_p5) target bundleno = 9 (0x9), region = 98 }
 0x297   : > { %s2970_s12 = smov %s2963_s20 }
 0x298   : > { %s2971_s13 = smov %s2964_s18 }
 0x29a   :  { %1612 = vsyncpa [#allocation4], 1 }
 0x29b   :  { %1614 = vsyncpa [#allocation4 + $0x1], 1 }
 0x29c   :  { %1615 = vsyncpa [#allocation5], 1 }
 0x29d   :  { %1617 = vsyncpa [#allocation5 + $0x1], 1 }

</bundles_post_ra>
